<compile_context>
chip_gen: v7x
topology: tpu7x:2x2x1
jax: 0.10.0
libtpu: 0.0.40
codegen_flags: <defaults>
</compile_context>

<pallas_src>
import functools

import jax
import jax.numpy as jnp
from jax.experimental import pallas as pl
from jax.experimental.pallas import tpu as pltpu


# ---------------------------------------------------------------------------
# lgamma: recurrence shift by 5 + Stirling series (valid for z > 0, f32).
#   lgamma(z) = lgamma(z + 5) - log(z (z+1)(z+2)(z+3)(z+4))
#   lgamma(w) ~ (w - 0.5) log w - w + 0.5 log(2 pi)
#               + 1/(12 w) - 1/(360 w^3) + 1/(1260 w^5) - 1/(1680 w^7)
# Only 2 logs + 1 approx reciprocal per call; the rest is cheap VPU work.
# ---------------------------------------------------------------------------
_HALF_LOG_2PI = 0.9189385332046727  # 0.5 * log(2*pi)


def _lgamma(z):
    prod = z * (z + 1.0) * (z + 2.0) * (z + 3.0) * (z + 4.0)
    w = z + 5.0                                # w >= 5 for any z > 0
    r = pl.reciprocal(w, approx=True)          # EUP slot, no Newton follow-up
    r2 = r * r
    series = r * (1.0 / 12.0
                  + r2 * (-1.0 / 360.0
                          + r2 * (1.0 / 1260.0
                                  + r2 * (-1.0 / 1680.0))))
    return (w - 0.5) * jnp.log(w) - w + _HALF_LOG_2PI + series - jnp.log(prod)
    # TODO(synk): prod ~ z^5 overflows f32 for z > ~5e7; counts that large are
    # out of scope for scRNA-style data.


# ---------------------------------------------------------------------------
# Pallas kernel: per-tile ZINB NLL, folded into an (8,128) partial-sum slab
# per row block (resident across the column grid axis).
# ---------------------------------------------------------------------------
def _zinb_kernel(x_ref, mean_ref, disp_ref, pi_ref, out_ref,
                 *, ridge_lambda, n_rows, n_cols, need_mask):
    i = pl.program_id(0)   # row-block index ("parallel")
    j = pl.program_id(1)   # col-block index ("arbitrary", reduction)

    x = x_ref[...].astype(jnp.float32)
    mean = mean_ref[...].astype(jnp.float32)
    disp = disp_ref[...].astype(jnp.float32)
    pi = pi_ref[...].astype(jnp.float32)

    row_tile, col_tile = x.shape

    mask = None
    if need_mask:
        row_ids = jax.lax.broadcasted_iota(jnp.int32, (row_tile, col_tile), 0) \
            + i * row_tile
        col_ids = jax.lax.broadcasted_iota(jnp.int32, (row_tile, col_tile), 1) \
            + j * col_tile
        mask = (row_ids < n_rows) & (col_ids < n_cols)
        # Sanitize out-of-bounds garbage BEFORE any arithmetic so no inf/nan
        # is ever produced (padded lanes may hold arbitrary stale VMEM data).
        x = jnp.where(mask, x, 1.0)
        mean = jnp.where(mask, mean, 1.0)
        disp = jnp.where(mask, disp, 1.0)
        pi = jnp.where(mask, pi, 0.5)

    eps = 1e-10

    # Shared logs (each used 2-3 times below).
    l_disp = jnp.log(disp + eps)
    l_mean = jnp.log(mean + eps)
    l_dm = jnp.log(disp + mean + eps)

    # Negative-binomial branch.
    t1 = _lgamma(disp + eps) + _lgamma(x + 1.0) - _lgamma(x + disp + eps)
    # log(1 + mean/(disp+eps)) == log(disp+mean+eps) - log(disp+eps)
    t2 = (disp + x) * (l_dm - l_disp) + x * (l_disp - l_mean)
    nb_case = t1 + t2 - jnp.log(1.0 - pi + eps)

    # Zero-inflation branch: pow(disp/(disp+mean+eps), disp) via exp of logs.
    zero_nb = jnp.exp(disp * (l_disp - l_dm))
    zero_case = -jnp.log(pi + (1.0 - pi) * zero_nb + eps)

    result = jnp.where(x <= 1e-08, zero_case, nb_case)
    if ridge_lambda > 0.0:
        result = result + ridge_lambda * jnp.square(pi)
    if need_mask:
        result = jnp.where(mask, result, 0.0)

    # Fold the tile down to (8, 128) with lane/sublane-aligned vreg adds (VPU
    # only: no cross-lane XLU reduce, no per-step scalar RMW).
    part = result[:, 0:128]
    for c in range(1, col_tile // 128):
        part = part + result[:, c * 128:(c + 1) * 128]
    p8 = part[0:8, :]
    for r in range(1, row_tile // 8):
        p8 = p8 + part[r * 8:(r + 1) * 8, :]

    @pl.when(j == 0)
    def _():
        out_ref[...] = jnp.zeros_like(out_ref)

    out_ref[...] += p8


# ---------------------------------------------------------------------------
# Wrapper
# ---------------------------------------------------------------------------
def _round_up(a, b):
    return ((a + b - 1) // b) * b


def zinb_loss(x, mean, disp, pi, scale_factor=1.0, ridge_lambda=0.0,
              *, max_row_tile=256, max_col_tile=1024):
    """Pallas implementation of ZINBLoss.forward. Returns a scalar f32 loss.

    `scale_factor` is accepted for signature parity with the PyTorch module,
    which never uses it in the forward computation.
    """
    del scale_factor  # unused in the reference forward pass (kept for parity)
    assert x.shape == mean.shape == disp.shape == pi.shape
    assert x.ndim == 2
    assert max_row_tile % 8 == 0 and max_col_tile % 128 == 0
    n_rows, n_cols = x.shape

    # Tile sizes: big enough to amortize per-step overhead (~0.35 us/step),
    # small enough that 4 inputs x 2 pipeline buffers stays well under the
    # v7x scoped-VMEM budget.
    row_tile = min(max_row_tile, _round_up(n_rows, 8))
    col_tile = min(max_col_tile, _round_up(n_cols, 128))
    grid_rows = pl.cdiv(n_rows, row_tile)
    grid_cols = pl.cdiv(n_cols, col_tile)
    need_mask = (n_rows % row_tile != 0) or (n_cols % col_tile != 0)

    tile_spec = pl.BlockSpec((row_tile, col_tile), lambda i, j: (i, j))
    out_spec = pl.BlockSpec((8, 128), lambda i, j: (i, 0))

    kernel = functools.partial(
        _zinb_kernel,
        ridge_lambda=float(ridge_lambda),
        n_rows=n_rows,
        n_cols=n_cols,
        need_mask=need_mask,
    )

    partials = pl.pallas_call(
        kernel,
        out_shape=jax.ShapeDtypeStruct((grid_rows * 8, 128), jnp.float32),
        grid_spec=pltpu.PrefetchScalarGridSpec(
            num_scalar_prefetch=0,
            grid=(grid_rows, grid_cols),
            in_specs=[tile_spec, tile_spec, tile_spec, tile_spec],
            out_specs=out_spec,
        ),
        compiler_params=pltpu.CompilerParams(
            dimension_semantics=("parallel", "arbitrary"),
        ),
    )(x, mean, disp, pi)

    # Tiny final reduction + normalization in plain XLA.
    return jnp.sum(partials) / float(n_rows * n_cols)


# ---------------------------------------------------------------------------
# Pure-JAX reference (sanity check only)
# ---------------------------------------------------------------------------
def zinb_loss_ref(x, mean, disp, pi, ridge_lambda=0.0):
    eps = 1e-10
    lgamma = jax.scipy.special.gammaln
    t1 = lgamma(disp + eps) + lgamma(x + 1.0) - lgamma(x + disp + eps)
    t2 = (disp + x) * jnp.log(1.0 + mean / (disp + eps)) \
        + x * (jnp.log(disp + eps) - jnp.log(mean + eps))
    nb_case = t1 + t2 - jnp.log(1.0 - pi + eps)
    zero_nb = jnp.power(disp / (disp + mean + eps), disp)
    zero_case = -jnp.log(pi + (1.0 - pi) * zero_nb + eps)
    result = jnp.where(x <= 1e-08, zero_case, nb_case)
    if ridge_lambda > 0:
        result = result + ridge_lambda * jnp.square(pi)
    return jnp.mean(result)


if __name__ == "__main__":
    key = jax.random.PRNGKey(0)
    k1, k2, k3, k4, k5 = jax.random.split(key, 5)

    N, G = 64, 256  # (cells, genes)

    # Count-like data with a decent fraction of exact zeros (exercises the
    # zero-inflation branch of the where()).
    u = jax.random.uniform(k1, (N, G), minval=1e-4, maxval=1.0)
    raw = jnp.round(-3.0 * jnp.log(u))                      # exp-distributed counts
    zero_mask = jax.random.uniform(k2, (N, G)) < 0.4
    x = jnp.where(zero_mask, 0.0, raw).astype(jnp.float32)

    mean = (jax.nn.softplus(jax.random.normal(k3, (N, G))) * 2.0 + 0.1).astype(jnp.float32)
    disp = (jax.nn.softplus(jax.random.normal(k4, (N, G))) + 0.1).astype(jnp.float32)
    pi = jax.nn.sigmoid(jax.random.normal(k5, (N, G))).astype(jnp.float32)

    # 1) Default tiling (single block).
    loss = jax.block_until_ready(
        zinb_loss(x, mean, disp, pi, scale_factor=1.0, ridge_lambda=0.0))
    ref = zinb_loss_ref(x, mean, disp, pi)
    assert jnp.allclose(loss, ref, rtol=1e-3, atol=1e-3), (loss, ref)

    # 2) Multi-block grid (cross-column accumulation + per-row-block partials)
    #    plus a nonzero ridge term.
    loss2 = jax.block_until_ready(
        zinb_loss(x, mean, disp, pi, ridge_lambda=0.1,
                  max_row_tile=16, max_col_tile=128))
    ref2 = zinb_loss_ref(x, mean, disp, pi, ridge_lambda=0.1)
    assert jnp.allclose(loss2, ref2, rtol=1e-3, atol=1e-3), (loss2, ref2)

    # 3) Ragged shapes (exercises the tail-masking path).
    xr, mr, dr, pr = x[:50, :200], mean[:50, :200], disp[:50, :200], pi[:50, :200]
    loss3 = jax.block_until_ready(zinb_loss(xr, mr, dr, pr))
    ref3 = zinb_loss_ref(xr, mr, dr, pr)
    assert jnp.allclose(loss3, ref3, rtol=1e-3, atol=1e-3), (loss3, ref3)

    print("KERNEL_OK")
</pallas_src>

<mosaic_0001>
module attributes {stable_mosaic.version = 11 : i64} {
  func.func @_zinb_kernel(%arg0: i32, %arg1: i32, %arg2: memref<64x256xf32, #tpu.memory_space<vmem>>, %arg3: memref<64x256xf32, #tpu.memory_space<vmem>>, %arg4: memref<64x256xf32, #tpu.memory_space<vmem>>, %arg5: memref<64x256xf32, #tpu.memory_space<vmem>>, %arg6: memref<8x128xf32, #tpu.memory_space<vmem>>) attributes {dimension_semantics = [#tpu.dimension_semantics<parallel>, #tpu.dimension_semantics<arbitrary>], iteration_bounds = array<i64: 1, 1>, scalar_prefetch = 0 : i64, scratch_operands = 0 : i64, tpu.core_type = #tpu.core_type<tc>, window_params = [{transform_indices = @transform_0, window_bounds = array<i64: 64, 256>}, {transform_indices = @transform_1, window_bounds = array<i64: 64, 256>}, {transform_indices = @transform_2, window_bounds = array<i64: 64, 256>}, {transform_indices = @transform_3, window_bounds = array<i64: 64, 256>}, {transform_indices = @transform_4, window_bounds = array<i64: 8, 128>}]} {
    %c0 = arith.constant 0 : index
    %c0_0 = arith.constant 0 : index
    %0 = vector.load %arg2[%c0, %c0_0] : memref<64x256xf32, #tpu.memory_space<vmem>>, vector<64x256xf32>
    %c0_1 = arith.constant 0 : index
    %c0_2 = arith.constant 0 : index
    %1 = vector.load %arg3[%c0_1, %c0_2] : memref<64x256xf32, #tpu.memory_space<vmem>>, vector<64x256xf32>
    %c0_3 = arith.constant 0 : index
    %c0_4 = arith.constant 0 : index
    %2 = vector.load %arg4[%c0_3, %c0_4] : memref<64x256xf32, #tpu.memory_space<vmem>>, vector<64x256xf32>
    %c0_5 = arith.constant 0 : index
    %c0_6 = arith.constant 0 : index
    %3 = vector.load %arg5[%c0_5, %c0_6] : memref<64x256xf32, #tpu.memory_space<vmem>>, vector<64x256xf32>
    %cst = arith.constant 1.000000e-10 : f32
    %4 = vector.broadcast %cst : f32 to vector<64x256xf32>
    %5 = arith.addf %2, %4 : vector<64x256xf32>
    %6 = math.log %5 : vector<64x256xf32>
    %cst_7 = arith.constant 1.000000e-10 : f32
    %7 = vector.broadcast %cst_7 : f32 to vector<64x256xf32>
    %8 = arith.addf %1, %7 : vector<64x256xf32>
    %9 = math.log %8 : vector<64x256xf32>
    %10 = arith.addf %2, %1 : vector<64x256xf32>
    %cst_8 = arith.constant 1.000000e-10 : f32
    %11 = vector.broadcast %cst_8 : f32 to vector<64x256xf32>
    %12 = arith.addf %10, %11 : vector<64x256xf32>
    %13 = math.log %12 : vector<64x256xf32>
    %cst_9 = arith.constant 1.000000e-10 : f32
    %14 = vector.broadcast %cst_9 : f32 to vector<64x256xf32>
    %15 = arith.addf %2, %14 : vector<64x256xf32>
    %cst_10 = arith.constant 1.000000e+00 : f32
    %16 = vector.broadcast %cst_10 : f32 to vector<64x256xf32>
    %17 = arith.addf %15, %16 : vector<64x256xf32>
    %18 = arith.mulf %15, %17 : vector<64x256xf32>
    %cst_11 = arith.constant 2.000000e+00 : f32
    %19 = vector.broadcast %cst_11 : f32 to vector<64x256xf32>
    %20 = arith.addf %15, %19 : vector<64x256xf32>
    %21 = arith.mulf %18, %20 : vector<64x256xf32>
    %cst_12 = arith.constant 3.000000e+00 : f32
    %22 = vector.broadcast %cst_12 : f32 to vector<64x256xf32>
    %23 = arith.addf %15, %22 : vector<64x256xf32>
    %24 = arith.mulf %21, %23 : vector<64x256xf32>
    %cst_13 = arith.constant 4.000000e+00 : f32
    %25 = vector.broadcast %cst_13 : f32 to vector<64x256xf32>
    %26 = arith.addf %15, %25 : vector<64x256xf32>
    %27 = arith.mulf %24, %26 : vector<64x256xf32>
    %cst_14 = arith.constant 5.000000e+00 : f32
    %28 = vector.broadcast %cst_14 : f32 to vector<64x256xf32>
    %29 = arith.addf %15, %28 : vector<64x256xf32>
    %30 = tpu.reciprocal %29 {approx = true} : vector<64x256xf32> -> vector<64x256xf32>
    %31 = arith.mulf %30, %30 : vector<64x256xf32>
    %cst_15 = arith.constant -5.95238118E-4 : f32
    %32 = vector.broadcast %cst_15 : f32 to vector<64x256xf32>
    %33 = arith.mulf %31, %32 : vector<64x256xf32>
    %cst_16 = arith.constant 7.93650805E-4 : f32
    %34 = vector.broadcast %cst_16 : f32 to vector<64x256xf32>
    %35 = arith.addf %34, %33 : vector<64x256xf32>
    %36 = arith.mulf %31, %35 : vector<64x256xf32>
    %cst_17 = arith.constant -0.00277777785 : f32
    %37 = vector.broadcast %cst_17 : f32 to vector<64x256xf32>
    %38 = arith.addf %37, %36 : vector<64x256xf32>
    %39 = arith.mulf %31, %38 : vector<64x256xf32>
    %cst_18 = arith.constant 0.0833333358 : f32
    %40 = vector.broadcast %cst_18 : f32 to vector<64x256xf32>
    %41 = arith.addf %40, %39 : vector<64x256xf32>
    %42 = arith.mulf %30, %41 : vector<64x256xf32>
    %cst_19 = arith.constant 5.000000e-01 : f32
    %43 = vector.broadcast %cst_19 : f32 to vector<64x256xf32>
    %44 = arith.subf %29, %43 : vector<64x256xf32>
    %45 = math.log %29 : vector<64x256xf32>
    %46 = arith.mulf %44, %45 : vector<64x256xf32>
    %47 = arith.subf %46, %29 : vector<64x256xf32>
    %cst_20 = arith.constant 0.918938517 : f32
    %48 = vector.broadcast %cst_20 : f32 to vector<64x256xf32>
    %49 = arith.addf %47, %48 : vector<64x256xf32>
    %50 = arith.addf %49, %42 : vector<64x256xf32>
    %51 = math.log %27 : vector<64x256xf32>
    %52 = arith.subf %50, %51 : vector<64x256xf32>
    %cst_21 = arith.constant 1.000000e+00 : f32
    %53 = vector.broadcast %cst_21 : f32 to vector<64x256xf32>
    %54 = arith.addf %0, %53 : vector<64x256xf32>
    %cst_22 = arith.constant 1.000000e+00 : f32
    %55 = vector.broadcast %cst_22 : f32 to vector<64x256xf32>
    %56 = arith.addf %54, %55 : vector<64x256xf32>
    %57 = arith.mulf %54, %56 : vector<64x256xf32>
    %cst_23 = arith.constant 2.000000e+00 : f32
    %58 = vector.broadcast %cst_23 : f32 to vector<64x256xf32>
    %59 = arith.addf %54, %58 : vector<64x256xf32>
    %60 = arith.mulf %57, %59 : vector<64x256xf32>
    %cst_24 = arith.constant 3.000000e+00 : f32
    %61 = vector.broadcast %cst_24 : f32 to vector<64x256xf32>
    %62 = arith.addf %54, %61 : vector<64x256xf32>
    %63 = arith.mulf %60, %62 : vector<64x256xf32>
    %cst_25 = arith.constant 4.000000e+00 : f32
    %64 = vector.broadcast %cst_25 : f32 to vector<64x256xf32>
    %65 = arith.addf %54, %64 : vector<64x256xf32>
    %66 = arith.mulf %63, %65 : vector<64x256xf32>
    %cst_26 = arith.constant 5.000000e+00 : f32
    %67 = vector.broadcast %cst_26 : f32 to vector<64x256xf32>
    %68 = arith.addf %54, %67 : vector<64x256xf32>
    %69 = tpu.reciprocal %68 {approx = true} : vector<64x256xf32> -> vector<64x256xf32>
    %70 = arith.mulf %69, %69 : vector<64x256xf32>
    %cst_27 = arith.constant -5.95238118E-4 : f32
    %71 = vector.broadcast %cst_27 : f32 to vector<64x256xf32>
    %72 = arith.mulf %70, %71 : vector<64x256xf32>
    %cst_28 = arith.constant 7.93650805E-4 : f32
    %73 = vector.broadcast %cst_28 : f32 to vector<64x256xf32>
    %74 = arith.addf %73, %72 : vector<64x256xf32>
    %75 = arith.mulf %70, %74 : vector<64x256xf32>
    %cst_29 = arith.constant -0.00277777785 : f32
    %76 = vector.broadcast %cst_29 : f32 to vector<64x256xf32>
    %77 = arith.addf %76, %75 : vector<64x256xf32>
    %78 = arith.mulf %70, %77 : vector<64x256xf32>
    %cst_30 = arith.constant 0.0833333358 : f32
    %79 = vector.broadcast %cst_30 : f32 to vector<64x256xf32>
    %80 = arith.addf %79, %78 : vector<64x256xf32>
    %81 = arith.mulf %69, %80 : vector<64x256xf32>
    %cst_31 = arith.constant 5.000000e-01 : f32
    %82 = vector.broadcast %cst_31 : f32 to vector<64x256xf32>
    %83 = arith.subf %68, %82 : vector<64x256xf32>
    %84 = math.log %68 : vector<64x256xf32>
    %85 = arith.mulf %83, %84 : vector<64x256xf32>
    %86 = arith.subf %85, %68 : vector<64x256xf32>
    %cst_32 = arith.constant 0.918938517 : f32
    %87 = vector.broadcast %cst_32 : f32 to vector<64x256xf32>
    %88 = arith.addf %86, %87 : vector<64x256xf32>
    %89 = arith.addf %88, %81 : vector<64x256xf32>
    %90 = math.log %66 : vector<64x256xf32>
    %91 = arith.subf %89, %90 : vector<64x256xf32>
    %92 = arith.addf %52, %91 : vector<64x256xf32>
    %93 = arith.addf %0, %2 : vector<64x256xf32>
    %cst_33 = arith.constant 1.000000e-10 : f32
    %94 = vector.broadcast %cst_33 : f32 to vector<64x256xf32>
    %95 = arith.addf %93, %94 : vector<64x256xf32>
    %cst_34 = arith.constant 1.000000e+00 : f32
    %96 = vector.broadcast %cst_34 : f32 to vector<64x256xf32>
    %97 = arith.addf %95, %96 : vector<64x256xf32>
    %98 = arith.mulf %95, %97 : vector<64x256xf32>
    %cst_35 = arith.constant 2.000000e+00 : f32
    %99 = vector.broadcast %cst_35 : f32 to vector<64x256xf32>
    %100 = arith.addf %95, %99 : vector<64x256xf32>
    %101 = arith.mulf %98, %100 : vector<64x256xf32>
    %cst_36 = arith.constant 3.000000e+00 : f32
    %102 = vector.broadcast %cst_36 : f32 to vector<64x256xf32>
    %103 = arith.addf %95, %102 : vector<64x256xf32>
    %104 = arith.mulf %101, %103 : vector<64x256xf32>
    %cst_37 = arith.constant 4.000000e+00 : f32
    %105 = vector.broadcast %cst_37 : f32 to vector<64x256xf32>
    %106 = arith.addf %95, %105 : vector<64x256xf32>
    %107 = arith.mulf %104, %106 : vector<64x256xf32>
    %cst_38 = arith.constant 5.000000e+00 : f32
    %108 = vector.broadcast %cst_38 : f32 to vector<64x256xf32>
    %109 = arith.addf %95, %108 : vector<64x256xf32>
    %110 = tpu.reciprocal %109 {approx = true} : vector<64x256xf32> -> vector<64x256xf32>
    %111 = arith.mulf %110, %110 : vector<64x256xf32>
    %cst_39 = arith.constant -5.95238118E-4 : f32
    %112 = vector.broadcast %cst_39 : f32 to vector<64x256xf32>
    %113 = arith.mulf %111, %112 : vector<64x256xf32>
    %cst_40 = arith.constant 7.93650805E-4 : f32
    %114 = vector.broadcast %cst_40 : f32 to vector<64x256xf32>
    %115 = arith.addf %114, %113 : vector<64x256xf32>
    %116 = arith.mulf %111, %115 : vector<64x256xf32>
    %cst_41 = arith.constant -0.00277777785 : f32
    %117 = vector.broadcast %cst_41 : f32 to vector<64x256xf32>
    %118 = arith.addf %117, %116 : vector<64x256xf32>
    %119 = arith.mulf %111, %118 : vector<64x256xf32>
    %cst_42 = arith.constant 0.0833333358 : f32
    %120 = vector.broadcast %cst_42 : f32 to vector<64x256xf32>
    %121 = arith.addf %120, %119 : vector<64x256xf32>
    %122 = arith.mulf %110, %121 : vector<64x256xf32>
    %cst_43 = arith.constant 5.000000e-01 : f32
    %123 = vector.broadcast %cst_43 : f32 to vector<64x256xf32>
    %124 = arith.subf %109, %123 : vector<64x256xf32>
    %125 = math.log %109 : vector<64x256xf32>
    %126 = arith.mulf %124, %125 : vector<64x256xf32>
    %127 = arith.subf %126, %109 : vector<64x256xf32>
    %cst_44 = arith.constant 0.918938517 : f32
    %128 = vector.broadcast %cst_44 : f32 to vector<64x256xf32>
    %129 = arith.addf %127, %128 : vector<64x256xf32>
    %130 = arith.addf %129, %122 : vector<64x256xf32>
    %131 = math.log %107 : vector<64x256xf32>
    %132 = arith.subf %130, %131 : vector<64x256xf32>
    %133 = arith.subf %92, %132 : vector<64x256xf32>
    %134 = arith.addf %2, %0 : vector<64x256xf32>
    %135 = arith.subf %13, %6 : vector<64x256xf32>
    %136 = arith.mulf %134, %135 : vector<64x256xf32>
    %137 = arith.subf %6, %9 : vector<64x256xf32>
    %138 = arith.mulf %0, %137 : vector<64x256xf32>
    %139 = arith.addf %136, %138 : vector<64x256xf32>
    %140 = arith.addf %133, %139 : vector<64x256xf32>
    %cst_45 = arith.constant 1.000000e+00 : f32
    %141 = vector.broadcast %cst_45 : f32 to vector<64x256xf32>
    %142 = arith.subf %141, %3 : vector<64x256xf32>
    %cst_46 = arith.constant 1.000000e-10 : f32
    %143 = vector.broadcast %cst_46 : f32 to vector<64x256xf32>
    %144 = arith.addf %142, %143 : vector<64x256xf32>
    %145 = math.log %144 : vector<64x256xf32>
    %146 = arith.subf %140, %145 : vector<64x256xf32>
    %147 = arith.subf %6, %13 : vector<64x256xf32>
    %148 = arith.mulf %2, %147 : vector<64x256xf32>
    %149 = math.exp %148 : vector<64x256xf32>
    %cst_47 = arith.constant 1.000000e+00 : f32
    %150 = vector.broadcast %cst_47 : f32 to vector<64x256xf32>
    %151 = arith.subf %150, %3 : vector<64x256xf32>
    %152 = arith.mulf %151, %149 : vector<64x256xf32>
    %153 = arith.addf %3, %152 : vector<64x256xf32>
    %cst_48 = arith.constant 1.000000e-10 : f32
    %154 = vector.broadcast %cst_48 : f32 to vector<64x256xf32>
    %155 = arith.addf %153, %154 : vector<64x256xf32>
    %156 = math.log %155 : vector<64x256xf32>
    %cst_49 = arith.constant 0.000000e+00 : f32
    %157 = vector.broadcast %cst_49 : f32 to vector<64x256xf32>
    %158 = arith.subf %157, %156 : vector<64x256xf32>
    %cst_50 = arith.constant 9.99999993E-9 : f32
    %159 = vector.broadcast %cst_50 : f32 to vector<64x256xf32>
    %160 = arith.cmpf ole, %0, %159 : vector<64x256xf32>
    %161 = arith.select %160, %158, %146 : vector<64x256xi1>, vector<64x256xf32>
    %162 = vector.extract_strided_slice %161 {offsets = [0, 0], sizes = [64, 128], strides = [1, 1]} : vector<64x256xf32> to vector<64x128xf32>
    %163 = vector.extract_strided_slice %161 {offsets = [0, 128], sizes = [64, 128], strides = [1, 1]} : vector<64x256xf32> to vector<64x128xf32>
    %164 = arith.addf %162, %163 : vector<64x128xf32>
    %165 = vector.extract_strided_slice %164 {offsets = [0, 0], sizes = [8, 128], strides = [1, 1]} : vector<64x128xf32> to vector<8x128xf32>
    %166 = vector.extract_strided_slice %164 {offsets = [8, 0], sizes = [8, 128], strides = [1, 1]} : vector<64x128xf32> to vector<8x128xf32>
    %167 = arith.addf %165, %166 : vector<8x128xf32>
    %168 = vector.extract_strided_slice %164 {offsets = [16, 0], sizes = [8, 128], strides = [1, 1]} : vector<64x128xf32> to vector<8x128xf32>
    %169 = arith.addf %167, %168 : vector<8x128xf32>
    %170 = vector.extract_strided_slice %164 {offsets = [24, 0], sizes = [8, 128], strides = [1, 1]} : vector<64x128xf32> to vector<8x128xf32>
    %171 = arith.addf %169, %170 : vector<8x128xf32>
    %172 = vector.extract_strided_slice %164 {offsets = [32, 0], sizes = [8, 128], strides = [1, 1]} : vector<64x128xf32> to vector<8x128xf32>
    %173 = arith.addf %171, %172 : vector<8x128xf32>
    %174 = vector.extract_strided_slice %164 {offsets = [40, 0], sizes = [8, 128], strides = [1, 1]} : vector<64x128xf32> to vector<8x128xf32>
    %175 = arith.addf %173, %174 : vector<8x128xf32>
    %176 = vector.extract_strided_slice %164 {offsets = [48, 0], sizes = [8, 128], strides = [1, 1]} : vector<64x128xf32> to vector<8x128xf32>
    %177 = arith.addf %175, %176 : vector<8x128xf32>
    %178 = vector.extract_strided_slice %164 {offsets = [56, 0], sizes = [8, 128], strides = [1, 1]} : vector<64x128xf32> to vector<8x128xf32>
    %179 = arith.addf %177, %178 : vector<8x128xf32>
    %c0_i32 = arith.constant 0 : i32
    %180 = arith.cmpi eq, %arg1, %c0_i32 : i32
    %181 = arith.extui %180 : i1 to i32
    %c0_i32_51 = arith.constant 0 : i32
    %182 = arith.cmpi ne, %181, %c0_i32_51 : i32
    scf.if %182 {
      %cst_56 = arith.constant 0.000000e+00 : f32
      %186 = vector.broadcast %cst_56 : f32 to vector<8x128xf32>
      %c0_57 = arith.constant 0 : index
      %c0_58 = arith.constant 0 : index
      %187 = vector.load %arg6[%c0_57, %c0_58] : memref<8x128xf32, #tpu.memory_space<vmem>>, vector<8x128xf32>
      tpu.vector_store %arg6[%c0_57, %c0_58], %186 {strides = array<i32>} : memref<8x128xf32, #tpu.memory_space<vmem>>, vector<8x128xf32>,
    } else {
    }
    %c0_52 = arith.constant 0 : index
    %c0_53 = arith.constant 0 : index
    %183 = vector.load %arg6[%c0_52, %c0_53] : memref<8x128xf32, #tpu.memory_space<vmem>>, vector<8x128xf32>
    %184 = arith.addf %183, %179 : vector<8x128xf32>
    %c0_54 = arith.constant 0 : index
    %c0_55 = arith.constant 0 : index
    %185 = vector.load %arg6[%c0_54, %c0_55] : memref<8x128xf32, #tpu.memory_space<vmem>>, vector<8x128xf32>
    tpu.vector_store %arg6[%c0_54, %c0_55], %184 {strides = array<i32>} : memref<8x128xf32, #tpu.memory_space<vmem>>, vector<8x128xf32>,
    return
  }
  func.func @transform_0(%arg0: i32, %arg1: i32) -> (i32, i32) {
    %c0_i32 = arith.constant 0 : i32
    return %arg0, %arg1 : i32, i32
  }
  func.func @transform_1(%arg0: i32, %arg1: i32) -> (i32, i32) {
    %c0_i32 = arith.constant 0 : i32
    return %arg0, %arg1 : i32, i32
  }
  func.func @transform_2(%arg0: i32, %arg1: i32) -> (i32, i32) {
    %c0_i32 = arith.constant 0 : i32
    return %arg0, %arg1 : i32, i32
  }
  func.func @transform_3(%arg0: i32, %arg1: i32) -> (i32, i32) {
    %c0_i32 = arith.constant 0 : i32
    return %arg0, %arg1 : i32, i32
  }
  func.func @transform_4(%arg0: i32, %arg1: i32) -> (i32, i32) {
    %c0_i32 = arith.constant 0 : i32
    %c0_i32_0 = arith.constant 0 : i32
    return %arg0, %c0_i32 : i32, i32
  }
}

</mosaic_0001>

<bundles_post_ra>
// kernel: tpu_custom_call.1
= control target key start
LH: loop header
LB: loop body
LE: loop exit
PB: predicated region body
PF: predicated region fallthrough
CT: control target
= control target key end

     0   :  { %9 = vsyncpa [#allocation3], 0  ;;  %s5896_s0 = inlined_call_operand.hbm [shape: f32[64,256], index: 0, kind: input, shape index: {}]   ;;  %s5897_s1 = inlined_call_operand.hbm [shape: f32[64,256], index: 1, kind: input, shape index: {}]   ;;  %s5898_s2 = inlined_call_operand.hbm [shape: f32[64,256], index: 2, kind: input, shape index: {}]   ;;  %s5899_s3 = inlined_call_operand.hbm [shape: f32[64,256], index: 3, kind: input, shape index: {}]   ;;  %s5900_s4 = inlined_call_operand.hbm [shape: f32[8,128], index: 4, kind: output, shape index: {}]  }
   0x1   :  { %10 = vsyncpa [#allocation6], 0 }
   0x2   :  { %11 = vsyncpa [#allocation9], 0 }
   0x3   :  { %12 = vsyncpa [#allocation4], 0  ;;  %s2847_s15 = smov [#allocation5]   ;;  %s2848_s17 = smov [#allocation2]  }
   0x4   :  { %s30_s16 = sshll.u32 %s2847_s15, 4  ;;  %s18_s18 = sshll.u32 %s2848_s17, 4  ;;  %s31_s16 = int_to_ptr.vmem [resolvable:$true] %s30_s16  ;;  %s2879_s18 = int_to_ptr.vmem [resolvable:$true] %s18_s18 }
   0x5   :  { %s2729_s21 = scalar_lea.hbm %s5897_s1, 2048 }
   0x6   :  { %p2730_p0 = scmp.ne.s32.totalorder %s5897_s1, %s2729_s21  ;;  %p2733_p1 = scmp.lt.u32.totalorder %s2729_s21, %s5897_s1 }
   0x8   :  { %p2735_p2 = pnand %p2733_p1, %p2730_p0 }
   0xa   :  { %2738 = shalt.err (!%p2735_p2)
}
   0xb   :  { %s2739_s26 = scalar_lea.vmem %s31_s16, 2048  ;;  %p2744_p4 = scmp.lt.s32.totalorder %s31_s16, %s31_s16 }
   0xc   :  { %p2740_p3 = scmp.ne.s32.totalorder %s31_s16, %s2739_s26  ;;  %p2745_p5 = scmp.lt.s32.totalorder %s2739_s26, %s2739_s26 }
   0xe   :  { %p2746_p6 = por %p2745_p5, %p2744_p4 }
  0x10   :  { %p2747_p7 = pnand %p2746_p6, %p2740_p3 }
  0x12   :  { %2750 = shalt.err (!%p2747_p7)
}
  0x13   :  { %s2849_s27 = smov 256   ;;  %s2850_s28 = smov 16  }
  0x14   :  { %36 = dma.hbm_to_vmem [thread:$0]  %s5897_s1, 2048, %s31_s16, [#allocation6], %s2849_s27, %s2849_s27, %s2850_s28  }
  0x15   :  { %s2751_s7 = scalar_lea.hbm %s5896_s0, 2048 }
  0x16   :  { %p2752_p8 = scmp.ne.s32.totalorder %s5896_s0, %s2751_s7  ;;  %p2755_p9 = scmp.lt.u32.totalorder %s2751_s7, %s5896_s0 }
  0x18   :  { %p2757_p10 = pnand %p2755_p9, %p2752_p8 }
  0x1a   :  { %2760 = shalt.err (!%p2757_p10)
}
  0x1b   :  { %s2761_s12 = scalar_lea.vmem %s2879_s18, 2048  ;;  %p2766_p12 = scmp.lt.s32.totalorder %s2879_s18, %s2879_s18 }
  0x1c   :  { %p2762_p11 = scmp.ne.s32.totalorder %s2879_s18, %s2761_s12  ;;  %p2767_p13 = scmp.lt.s32.totalorder %s2761_s12, %s2761_s12 }
  0x1e   :  { %p2768_p0 = por %p2767_p13, %p2766_p12 }
  0x20   :  { %p2769_p1 = pnand %p2768_p0, %p2762_p11 }
  0x22   :  { %2772 = shalt.err (!%p2769_p1)
}
  0x23   :  { %24 = dma.hbm_to_vmem [thread:$0]  %s5896_s0, 2048, %s2879_s18, [#allocation3], %s2849_s27, %s2849_s27, %s2850_s28  }
  0x24   :  { %s2851_s14 = smov [#allocation7]   ;;  %s2852_s16 = smov [#allocation8]  }
  0x25   :  { %s42_s15 = sshll.u32 %s2851_s14, 4  ;;  %s54_s17 = sshll.u32 %s2852_s16, 4  ;;  %s43_s15 = int_to_ptr.vmem [resolvable:$true] %s42_s15  ;;  %s2916_s17 = int_to_ptr.vmem [resolvable:$true] %s54_s17 }
  0x26   :  { %s2773_s21 = scalar_lea.hbm %s5898_s2, 2048 }
  0x27   :  { %p2774_p2 = scmp.ne.s32.totalorder %s5898_s2, %s2773_s21  ;;  %p2777_p3 = scmp.lt.u32.totalorder %s2773_s21, %s5898_s2 }
  0x29   :  { %p2779_p4 = pnand %p2777_p3, %p2774_p2 }
  0x2b   :  { %2782 = shalt.err (!%p2779_p4)
}
  0x2c   :  { %s2783_s0 = scalar_lea.vmem %s43_s15, 2048  ;;  %p2788_p6 = scmp.lt.s32.totalorder %s43_s15, %s43_s15 }
  0x2d   :  { %p2784_p5 = scmp.ne.s32.totalorder %s43_s15, %s2783_s0  ;;  %p2789_p7 = scmp.lt.s32.totalorder %s2783_s0, %s2783_s0 }
  0x2f   :  { %p2790_p8 = por %p2789_p7, %p2788_p6 }
  0x31   :  { %p2791_p9 = pnand %p2790_p8, %p2784_p5 }
  0x33   :  { %2794 = shalt.err (!%p2791_p9)
}
  0x34   :  { %48 = dma.hbm_to_vmem [thread:$0]  %s5898_s2, 2048, %s43_s15, [#allocation6], %s2849_s27, %s2849_s27, %s2850_s28  }
  0x35   :  { %s2795_s5 = scalar_lea.hbm %s5899_s3, 2048 }
  0x36   :  { %p2796_p10 = scmp.ne.s32.totalorder %s5899_s3, %s2795_s5  ;;  %p2799_p11 = scmp.lt.u32.totalorder %s2795_s5, %s5899_s3 }
  0x38   :  { %p2801_p12 = pnand %p2799_p11, %p2796_p10 }
  0x3a   :  { %2804 = shalt.err (!%p2801_p12)
}
  0x3b   :  { %s2805_s10 = scalar_lea.vmem %s2916_s17, 2048  ;;  %p2810_p0 = scmp.lt.s32.totalorder %s2916_s17, %s2916_s17 }
  0x3c   :  { %p2806_p13 = scmp.ne.s32.totalorder %s2916_s17, %s2805_s10  ;;  %p2811_p1 = scmp.lt.s32.totalorder %s2805_s10, %s2805_s10 }
  0x3e   :  { %p2812_p2 = por %p2811_p1, %p2810_p0 }
  0x40   :  { %p2813_p3 = pnand %p2812_p2, %p2806_p13 }
  0x42   :  { %2816 = shalt.err (!%p2813_p3)
}
  0x43   :  { %60 = dma.hbm_to_vmem [thread:$0]  %s5899_s3, 2048, %s2916_s17, [#allocation9], %s2849_s27, %s2849_s27, %s2850_s28  }
  0x44   :  { %2839 = dma.done.wait [#allocation3], 2048  }
  0x45   :  { %2840 = vsyncadd [#allocation3], 4294965248 }
  0x46   :  { %2841 = dma.done.wait [#allocation6], 4096  }
  0x47   :  { %2842 = vsyncadd [#allocation6], 4294963200 }
  0x48   :  { %2843 = dma.done.wait [#allocation9], 2048  }
  0x49   :  { %2844 = vsyncadd [#allocation9], 4294965248  ;;  %v89_v0 = vld [vmem:[#allocation5] sm:$0xff]  ;;  %v90_v1 = vld [vmem:[#allocation5 + $0x8] sm:$0xff]  ;;  %s2853_s3 = smov [#allocation10]  }
  0x4a   :  { %v185_v2 = vadd.f32 1e-10, %v89_v0  ;;  %v91_v3 = vld [vmem:[#allocation5 + $0x10] sm:$0xff]  ;;  %v186_v4 = vadd.f32 1e-10, %v90_v1  ;;  %v92_v5 = vld [vmem:[#allocation5 + $0x18] sm:$0xff] }
  0x4b   :  { %v187_v6 = vadd.f32 1e-10, %v91_v3  ;;  %v93_v7 = vld [vmem:[#allocation5 + $0x20] sm:$0xff]  ;;  %v188_v8 = vadd.f32 1e-10, %v92_v5  ;;  %v106_v11 = vld [vmem:[#allocation7 + $0x8] sm:$0xff] }
  0x4c   :  { %2185 = vlog2.f32 %v185_v2  ;;  %v105_v9 = vld [vmem:[#allocation7] sm:$0xff]  ;;  %v189_v10 = vadd.f32 1e-10, %v93_v7  ;;  %v107_v13 = vld [vmem:[#allocation7 + $0x10] sm:$0xff]  ;;  %v2955_v14 = vadd.f32 1e-10, %v106_v11  ;;  %v2984_v31 = vadd.f32 %v106_v11, %v90_v1 }
  0x4d   :  { %2187 = vlog2.f32 %v186_v4  ;;  %v2953_v12 = vadd.f32 1e-10, %v105_v9  ;;  %v108_v15 = vld [vmem:[#allocation7 + $0x18] sm:$0xff]  ;;  %v2957_v16 = vadd.f32 1e-10, %v107_v13  ;;  %v109_v17 = vld [vmem:[#allocation7 + $0x20] sm:$0xff]  ;;  %v2982_v30 = vadd.f32 %v105_v9, %v89_v0 }
  0x4e   :  { %2189 = vlog2.f32 %v187_v6  ;;  %v2960_v18 = vadd.f32 1e-10, %v108_v15  ;;  %v2963_v19 = vld [vmem:[#allocation5 + $0x28] sm:$0xff]  ;;  %v2965_v21 = vadd.f32 1e-10, %v109_v17  ;;  %v2968_v22 = vld [vmem:[#allocation5 + $0x30] sm:$0xff]  ;;  %v2995_v37 = vadd.f32 %v107_v13, %v91_v3 }
  0x4f   :  { %2191 = vlog2.f32 %v188_v8  ;;  %6229 = vst [vmem:[#allocation15_spill] sm:$0xff] %v2957_v16  ;;  %v110_v20 = vld [vmem:[#allocation7 + $0x28] sm:$0xff]  ;;  %v2970_v23 = vld [vmem:[#allocation5 + $0x38] sm:$0xff]  ;;  %v111_v24 = vld [vmem:[#allocation7 + $0x30] sm:$0xff]  ;;  %v2997_v38 = vadd.f32 %v108_v15, %v92_v5  ;;  %v3008_v44 = vadd.f32 %v109_v17, %v93_v7  ;;  %v190_v11 = vadd.f32 1e-10, %v2963_v19 }
  0x50   :  { %2193 = vlog2.f32 %v189_v10  ;;  %v2972_v25 = vadd.f32 1e-10, %v110_v20  ;;  %v2975_v26 = vld [vmem:[#allocation5 + $0x40] sm:$0xff]  ;;  %v2977_v27 = vld [vmem:[#allocation5 + $0x48] sm:$0xff]  ;;  %v112_v28 = vld [vmem:[#allocation7 + $0x38] sm:$0xff]  ;;  %v3011_v45 = vadd.f32 %v110_v20, %v2963_v19  ;;  %v3023_v52 = vadd.f32 %v111_v24, %v2968_v22  ;;  %s2118_s27 = sshll.u32 %s2853_s3, 4  ;;  %s2119_s27 = int_to_ptr.vmem [resolvable:$true] %s2118_s27 }
  0x51   :  { %2195 = vlog2.f32 %v2953_v12  ;;  %v2979_v29 = vadd.f32 1e-10, %v111_v24  ;;  %v2988_v33 = vld [vmem:[#allocation5 + $0x50] sm:$0xff]  ;;  %v2990_v34 = vld [vmem:[#allocation5 + $0x58] sm:$0xff]  ;;  %v113_v35 = vld [vmem:[#allocation7 + $0x40] sm:$0xff]  ;;  %v3026_v53 = vadd.f32 %v112_v28, %v2970_v23  ;;  %v3077_v24 = vadd.f32 1.0, %v2953_v12  ;;  %p2822_p5 = scmp.lt.s32.totalorder %s2119_s27, %s2119_s27 }
  0x52   :  { %2197 = vlog2.f32 %v2955_v14  ;;  %v2992_v36 = vadd.f32 1e-10, %v112_v28  ;;  %v3001_v40 = vld [vmem:[#allocation5 + $0x60] sm:$0xff]  ;;  %v3003_v41 = vld [vmem:[#allocation5 + $0x68] sm:$0xff]  ;;  %v3005_v43 = vadd.f32 1e-10, %v113_v35  ;;  %v3036_v59 = vadd.f32 %v113_v35, %v2975_v26 }
  0x53   :  { %2199 = vlog2.f32 %v2957_v16  ;;  %v114_v42 = vld [vmem:[#allocation7 + $0x48] sm:$0xff]  ;;  %v3015_v47 = vld [vmem:[#allocation5 + $0x70] sm:$0xff]  ;;  %v3017_v48 = vld [vmem:[#allocation5 + $0x78] sm:$0xff]  ;;  %v191_v20 = vadd.f32 1e-10, %v2968_v22  ;;  %v3080_v28 = vadd.f32 1.0, %v2955_v14 }
  0x54   :  { %2201 = vlog2.f32 %v2960_v18  ;;  %v115_v49 = vld [vmem:[#allocation7 + $0x50] sm:$0xff]  ;;  %v116_v50 = vld [vmem:[#allocation7 + $0x58] sm:$0xff]  ;;  %v3019_v51 = vadd.f32 1e-10, %v114_v42  ;;  %v117_v55 = vld [vmem:[#allocation7 + $0x60] sm:$0xff]  ;;  %v3046_v1 = vadd.f32 %v114_v42, %v2977_v27  ;;  %s2817_s28 = scalar_lea.vmem %s2119_s27, 128 }
  0x55   :  { %2203 = vlog2.f32 %v2965_v21  ;;  %v118_v56 = vld [vmem:[#allocation7 + $0x68] sm:$0xff]  ;;  %v3030_v57 = vadd.f32 1e-10, %v115_v49  ;;  %v3032_v58 = vadd.f32 1e-10, %v116_v50  ;;  %v119_v61 = vld [vmem:[#allocation7 + $0x70] sm:$0xff]  ;;  %v3052_v4 = vadd.f32 %v115_v49, %v2988_v33  ;;  %p2818_p4 = scmp.ne.s32.totalorder %s2119_s27, %s2817_s28  ;;  %p2823_p6 = scmp.lt.s32.totalorder %s2817_s28, %s2817_s28 }
  0x56   :  { %v2986_v32 = vpop.eup %2185  ;;  %2205 = vlog2.f32 %v2972_v25  ;;  %v120_v62 = vld [vmem:[#allocation7 + $0x78] sm:$0xff]  ;;  %v3040_v63 = vadd.f32 1e-10, %v117_v55  ;;  %v3042_v0 = vadd.f32 1e-10, %v118_v56  ;;  %v3055_v5 = vadd.f32 %v116_v50, %v2990_v34 }
  0x57   :  { %v2999_v39 = vpop.eup %2187  ;;  %2207 = vlog2.f32 %v2979_v29  ;;  %v3048_v3 = vadd.f32 1e-10, %v119_v61  ;;  %v3057_v7 = vadd.f32 1e-10, %v120_v62  ;;  %v3061_v8 = vadd.f32 %v117_v55, %v3001_v40  ;;  %p2824_p7 = por %p2823_p6, %p2822_p5 }
  0x58   :  { %v3013_v46 = vpop.eup %2189  ;;  %2209 = vlog2.f32 %v2992_v36  ;;  %v3064_v9 = vadd.f32 %v118_v56, %v3003_v41  ;;  %v3069_v13 = vadd.f32 %v119_v61, %v3015_v47  ;;  %v3072_v15 = vadd.f32 %v120_v62, %v3017_v48 }
  0x59   :  { %v3028_v54 = vpop.eup %2191  ;;  %2211 = vlog2.f32 %v3005_v43  ;;  %6230 = vst [vmem:[#allocation16_spill] sm:$0xff] %v3057_v7  ;;  %v192_v19 = vadd.f32 1e-10, %v2970_v23  ;;  %v3087_v49 = vadd.f32 1.0, %v2957_v16  ;;  %v193_v22 = vadd.f32 1e-10, %v2975_v26  ;;  %p2825_p8 = pnand %p2824_p7, %p2818_p4 }
  0x5a   :  { %v3038_v60 = vpop.eup %2193  ;;  %2213 = vlog2.f32 %v3019_v51  ;;  %v194_v56 = vadd.f32 1e-10, %v2977_v27  ;;  %v199_v27 = vadd.f32 1e-10, %v3015_v47  ;;  %v3120_v47 = vmul.f32 0.6931472, %v3028_v54 }
  0x5b   :  { %v2196_v2 = vpop.eup %2195  ;;  %2215 = vlog2.f32 %v3030_v57  ;;  %6232 = vst [vmem:[#allocation18_spill] sm:$0xff] %v3087_v49 }
  0x5c   :  { %v2198_v6 = vpop.eup %2197  ;;  %2217 = vlog2.f32 %v3032_v58  ;;  %v3082_v42 = vmul.f32 0.6931472, %v2196_v2  ;;  %v195_v2 = vadd.f32 1e-10, %v2988_v33  ;;  %6242 = vst [vmem:[#allocation28_spill] sm:$0xff] %v3120_v47 }
  0x5d   :  { %v2200_v10 = vpop.eup %2199  ;;  %2219 = vlog2.f32 %v3040_v63  ;;  %v3089_v55 = vmul.f32 0.6931472, %v2198_v6  ;;  %v197_v6 = vadd.f32 1e-10, %v3001_v40 }
  0x5e   :  { %v2202_v17 = vpop.eup %2201  ;;  %2221 = vlog2.f32 %v3042_v0  ;;  %6231 = vst [vmem:[#allocation17_spill] sm:$0xff] %v3082_v42  ;;  %v3094_v62 = vmul.f32 0.6931472, %v2200_v10  ;;  %v196_v42 = vadd.f32 1e-10, %v2990_v34 }
  0x5f   :  { %v2204_v35 = vpop.eup %2203  ;;  %2223 = vlog2.f32 %v3048_v3  ;;  %6233 = vst [vmem:[#allocation19_spill] sm:$0xff] %v3089_v55  ;;  %v3098_v16 = vmul.f32 0.6931472, %v2202_v17  ;;  %v198_v55 = vadd.f32 1e-10, %v3003_v41 }
  0x60   :  { %v2206_v50 = vpop.eup %2205  ;;  %2225 = vlog2.f32 %v3057_v7  ;;  %6234 = vst [vmem:[#allocation20_spill] sm:$0xff] %v3094_v62  ;;  %v3102_v26 = vmul.f32 0.6931472, %v2204_v35  ;;  %v200_v10 = vadd.f32 1e-10, %v3017_v48 }
  0x61   :  { %v2208_v61 = vpop.eup %2207  ;;  %2227 = vlog2.f32 %v190_v11  ;;  %6235 = vst [vmem:[#allocation21_spill] sm:$0xff] %v3098_v16  ;;  %v3106_v62 = vmul.f32 0.6931472, %v2206_v50  ;;  %v3109_v34 = vmul.f32 0.6931472, %v2986_v32 }
  0x62   :  { %v2210_v23 = vpop.eup %2209  ;;  %2229 = vlog2.f32 %v191_v20  ;;  %6236 = vst [vmem:[#allocation22_spill] sm:$0xff] %v3102_v26  ;;  %v3112_v11 = vmul.f32 0.6931472, %v2999_v39  ;;  %v3114_v41 = vmul.f32 0.6931472, %v2208_v61 }
  0x63   :  { %v2212_v49 = vpop.eup %2211  ;;  %2231 = vlog2.f32 %v192_v19  ;;  %6237 = vst [vmem:[#allocation23_spill] sm:$0xff] %v3106_v62  ;;  %6238 = vst [vmem:[#allocation24_spill] sm:$0xff] %v3109_v34  ;;  %v3117_v17 = vmul.f32 0.6931472, %v3013_v46  ;;  %v3122_v20 = vmul.f32 0.6931472, %v2210_v23 }
  0x64   :  { %v2214_v33 = vpop.eup %2213  ;;  %6239 = vst [vmem:[#allocation25_spill] sm:$0xff] %v3112_v11  ;;  %2233 = vlog2.f32 %v193_v22  ;;  %6240 = vst [vmem:[#allocation26_spill] sm:$0xff] %v3114_v41  ;;  %v3125_v32 = vmul.f32 0.6931472, %v3038_v60  ;;  %v249_v39 = vadd.f32 1e-10, %v2982_v30 }
  0x65   :  { %v2216_v40 = vpop.eup %2215  ;;  %6241 = vst [vmem:[#allocation27_spill] sm:$0xff] %v3117_v17  ;;  %2235 = vlog2.f32 %v194_v56  ;;  %6243 = vst [vmem:[#allocation29_spill] sm:$0xff] %v3122_v20  ;;  %v3128_v19 = vmul.f32 0.6931472, %v2212_v49  ;;  %v250_v46 = vadd.f32 1e-10, %v2984_v31 }
  0x66   :  { %v2218_v48 = vpop.eup %2217  ;;  %6244 = vst [vmem:[#allocation30_spill] sm:$0xff] %v3125_v32  ;;  %2237 = vlog2.f32 %v195_v2  ;;  %v251_v50 = vadd.f32 1e-10, %v2995_v37  ;;  %v3132_v22 = vmul.f32 0.6931472, %v2214_v33  ;;  %v342_v20 = vadd.f32 2.0, %v3042_v0 }
  0x67   :  { %v2220_v35 = vpop.eup %2219  ;;  %6245 = vst [vmem:[#allocation31_spill] sm:$0xff] %v3128_v19  ;;  %2239 = vlog2.f32 %v196_v42  ;;  %v252_v56 = vadd.f32 1e-10, %v2997_v38  ;;  %v253_v60 = vadd.f32 1e-10, %v3008_v44 }
  0x68   :  { %v2222_v54 = vpop.eup %2221  ;;  %6246 = vst [vmem:[#allocation32_spill] sm:$0xff] %v3132_v22  ;;  %2241 = vlog2.f32 %v197_v6  ;;  %v3136_v2 = vmul.f32 0.6931472, %v2216_v40  ;;  %v254_v30 = vadd.f32 1e-10, %v3011_v45 }
  0x69   :  { %v2224_v61 = vpop.eup %2223  ;;  %2243 = vlog2.f32 %v198_v55  ;;  %v255_v42 = vadd.f32 1e-10, %v3023_v52  ;;  %v3140_v31 = vmul.f32 0.6931472, %v2218_v48  ;;  %v256_v37 = vadd.f32 1e-10, %v3026_v53 }
  0x6a   :  { %6247 = vst [vmem:[#allocation33_spill] sm:$0xff] %v3136_v2  ;;  %v2226_v49 = vpop.eup %2225  ;;  %2245 = vlog2.f32 %v199_v27  ;;  %v257_v23 = vadd.f32 1e-10, %v3036_v59  ;;  %v3144_v38 = vmul.f32 0.6931472, %v2220_v35  ;;  %v301_v35 = vadd.f32 1.0, %v2965_v21 }
  0x6b   :  { %6248 = vst [vmem:[#allocation34_spill] sm:$0xff] %v3140_v31  ;;  %v2228_v6 = vpop.eup %2227  ;;  %2247 = vlog2.f32 %v200_v10  ;;  %v258_v44 = vadd.f32 1e-10, %v3046_v1  ;;  %v259_v55 = vadd.f32 1e-10, %v3052_v4  ;;  %v339_v31 = vadd.f32 2.0, %v3030_v57 }
  0x6c   :  { %6249 = vst [vmem:[#allocation35_spill] sm:$0xff] %v3144_v38  ;;  %v2230_v33 = vpop.eup %2229  ;;  %v3148_v45 = vmul.f32 0.6931472, %v2222_v54  ;;  %v260_v52 = vadd.f32 1e-10, %v3055_v5  ;;  %2249 = vlog2.f32 %v249_v39  ;;  %v300_v5 = vadd.f32 1.0, %v2960_v18 }
  0x6d   :  { %v261_v40 = vadd.f32 1e-10, %v3061_v8  ;;  %v2232_v27 = vpop.eup %2231  ;;  %v3152_v53 = vmul.f32 0.6931472, %v2224_v61  ;;  %v262_v59 = vadd.f32 1e-10, %v3064_v9  ;;  %2251 = vlog2.f32 %v250_v46 }
  0x6e   :  { %6250 = vst [vmem:[#allocation36_spill] sm:$0xff] %v3148_v45  ;;  %v3156_v48 = vadd.f32 1e-10, %v3069_v13  ;;  %v2234_v1 = vpop.eup %2233  ;;  %v3158_v10 = vmul.f32 0.6931472, %v2226_v49  ;;  %2253 = vlog2.f32 %v251_v50  ;;  %v302_v9 = vadd.f32 1.0, %v2972_v25 }
  0x6f   :  { %6251 = vst [vmem:[#allocation37_spill] sm:$0xff] %v3152_v53  ;;  %v3161_v4 = vadd.f32 1e-10, %v3072_v15  ;;  %v2236_v8 = vpop.eup %2235  ;;  %v3164_v39 = vmul.f32 0.6931472, %v2228_v6  ;;  %2255 = vlog2.f32 %v252_v56  ;;  %v303_v46 = vadd.f32 1.0, %v2979_v29 }
  0x70   :  { %6252 = vst [vmem:[#allocation38_spill] sm:$0xff] %v3158_v10  ;;  %v2238_v13 = vpop.eup %2237  ;;  %v3168_v54 = vmul.f32 0.6931472, %v2230_v33  ;;  %2257 = vlog2.f32 %v253_v60  ;;  %v304_v15 = vadd.f32 1.0, %v2992_v36  ;;  %v3172_v50 = vmul.f32 0.6931472, %v2232_v27 }
  0x71   :  { %6253 = vst [vmem:[#allocation39_spill] sm:$0xff] %v3164_v39  ;;  %v2240_v61 = vpop.eup %2239  ;;  %2259 = vlog2.f32 %v254_v30  ;;  %v305_v49 = vadd.f32 1.0, %v3005_v43  ;;  %v306_v56 = vadd.f32 1.0, %v3019_v51  ;;  %v3176_v39 = vmul.f32 0.6931472, %v2234_v1 }
  0x72   :  { %6254 = vst [vmem:[#allocation40_spill] sm:$0xff] %v3168_v54  ;;  %6255 = vst [vmem:[#allocation41_spill] sm:$0xff] %v3172_v50  ;;  %v2242_v6 = vpop.eup %2241  ;;  %2261 = vlog2.f32 %v255_v42  ;;  %v307_v33 = vadd.f32 1.0, %v3030_v57  ;;  %v308_v60 = vadd.f32 1.0, %v3032_v58  ;;  %v3180_v32 = vmul.f32 0.6931472, %v2236_v8 }
  0x73   :  { %6256 = vst [vmem:[#allocation42_spill] sm:$0xff] %v3176_v39  ;;  %v2244_v54 = vpop.eup %2243  ;;  %2263 = vlog2.f32 %v256_v37  ;;  %v309_v27 = vadd.f32 1.0, %v3040_v63  ;;  %v310_v30 = vadd.f32 1.0, %v3042_v0  ;;  %v3184_v47 = vmul.f32 0.6931472, %v2238_v13 }
  0x74   :  { %6257 = vst [vmem:[#allocation43_spill] sm:$0xff] %v3180_v32  ;;  %v2246_v50 = vpop.eup %2245  ;;  %2265 = vlog2.f32 %v257_v23  ;;  %v311_v1 = vadd.f32 1.0, %v3048_v3  ;;  %v312_v42 = vadd.f32 1.0, %v3057_v7  ;;  %v3188_v17 = vmul.f32 0.6931472, %v2240_v61  ;;  %v6261_v23 = vld [vmem:[#allocation15_spill] sm:$0xff] }
  0x75   :  { %6258 = vst [vmem:[#allocation44_spill] sm:$0xff] %v3184_v47  ;;  %v2248_v39 = vpop.eup %2247  ;;  %2267 = vlog2.f32 %v258_v44  ;;  %v3192_v8 = vmul.f32 %v3077_v24, %v2953_v12  ;;  %v3196_v37 = vmul.f32 %v3080_v28, %v2955_v14  ;;  %v3198_v13 = vmul.f32 0.6931472, %v2242_v6  ;;  %v6262_v47 = vld [vmem:[#allocation18_spill] sm:$0xff] }
  0x76   :  { %6259 = vst [vmem:[#allocation45_spill] sm:$0xff] %v3188_v17  ;;  %v2250_v32 = vpop.eup %2249  ;;  %2269 = vlog2.f32 %v259_v55  ;;  %v3202_v11 = vmul.f32 %v6262_v47, %v6261_v23  ;;  %v3205_v61 = vmul.f32 %v300_v5, %v2960_v18  ;;  %v3207_v17 = vmul.f32 0.6931472, %v2244_v54 }
  0x77   :  { %6260 = vst [vmem:[#allocation46_spill] sm:$0xff] %v3198_v13  ;;  %v2252_v44 = vpop.eup %2251  ;;  %2271 = vlog2.f32 %v260_v52  ;;  %v317_v24 = vmul.f32 %v301_v35, %v2965_v21  ;;  %v3211_v28 = vmul.f32 %v302_v9, %v2972_v25  ;;  %v3213_v6 = vmul.f32 0.6931472, %v2246_v50 }
  0x78   :  { %6263 = vst [vmem:[#allocation15_spill] sm:$0xff] %v3207_v17  ;;  %v2254_v34 = vpop.eup %2253  ;;  %2273 = vlog2.f32 %v261_v40  ;;  %v319_v55 = vmul.f32 %v303_v46, %v2979_v29  ;;  %v320_v47 = vmul.f32 %v304_v15, %v2992_v36  ;;  %v3217_v5 = vmul.f32 0.6931472, %v2248_v39 }
  0x79   :  { %6264 = vst [vmem:[#allocation18_spill] sm:$0xff] %v3213_v6  ;;  %v2256_v13 = vpop.eup %2255  ;;  %2275 = vlog2.f32 %v262_v59  ;;  %v321_v54 = vmul.f32 %v305_v49, %v3005_v43  ;;  %v322_v52 = vmul.f32 %v306_v56, %v3019_v51  ;;  %v3221_v17 = vmul.f32 0.6931472, %v2250_v32 }
  0x7a   :  { %6265 = vst [vmem:[#allocation47_spill] sm:$0xff] %v3217_v5  ;;  %v2258_v35 = vpop.eup %2257  ;;  %2277 = vlog2.f32 %v3156_v48  ;;  %v323_v9 = vmul.f32 %v307_v33, %v3030_v57  ;;  %v324_v40 = vmul.f32 %v308_v60, %v3032_v58  ;;  %v3226_v50 = vmul.f32 0.6931472, %v2252_v44 }
  0x7b   :  { %6266 = vst [vmem:[#allocation48_spill] sm:$0xff] %v3221_v17  ;;  %v2260_v46 = vpop.eup %2259  ;;  %2279 = vlog2.f32 %v3161_v4  ;;  %v325_v59 = vmul.f32 %v309_v27, %v3040_v63  ;;  %v326_v39 = vmul.f32 %v310_v30, %v3042_v0  ;;  %v3231_v49 = vmul.f32 0.6931472, %v2254_v34 }
  0x7c   :  { %6267 = vst [vmem:[#allocation49_spill] sm:$0xff] %v3226_v50  ;;  %v2262_v15 = vpop.eup %2261  ;;  %v327_v32 = vmul.f32 %v311_v1, %v3048_v3  ;;  %v328_v48 = vmul.f32 %v312_v42, %v3057_v7  ;;  %v329_v56 = vadd.f32 2.0, %v2953_v12  ;;  %v3236_v60 = vmul.f32 0.6931472, %v2256_v13 }
  0x7d   :  { %6268 = vst [vmem:[#allocation50_spill] sm:$0xff] %v3231_v49  ;;  %v2264_v33 = vpop.eup %2263  ;;  %v3238_v44 = vmul.f32 0.6931472, %v2258_v35  ;;  %v330_v4 = vadd.f32 2.0, %v2955_v14  ;;  %v331_v27 = vadd.f32 2.0, %v6261_v23  ;;  %v332_v34 = vadd.f32 2.0, %v2960_v18 }
  0x7e   :  { %6269 = vst [vmem:[#allocation51_spill] sm:$0xff] %v3236_v60  ;;  %v2266_v5 = vpop.eup %2265  ;;  %v3242_v30 = vmul.f32 0.6931472, %v2260_v46  ;;  %v333_v1 = vadd.f32 2.0, %v2965_v21  ;;  %v334_v42 = vadd.f32 2.0, %v2972_v25  ;;  %v335_v13 = vadd.f32 2.0, %v2979_v29 }
  0x7f   :  { %6270 = vst [vmem:[#allocation52_spill] sm:$0xff] %v3238_v44  ;;  %v2268_v6 = vpop.eup %2267  ;;  %v3247_v10 = vmul.f32 0.6931472, %v2262_v15  ;;  %v336_v35 = vadd.f32 2.0, %v2992_v36  ;;  %v337_v53 = vadd.f32 2.0, %v3005_v43  ;;  %v338_v46 = vadd.f32 2.0, %v3019_v51 }
  0x80   :  { %6271 = vst [vmem:[#allocation53_spill] sm:$0xff] %v3242_v30  ;;  %v2270_v45 = vpop.eup %2269  ;;  %v3252_v38 = vmul.f32 0.6931472, %v2264_v33  ;;  %v340_v2 = vadd.f32 2.0, %v3032_v58  ;;  %v3257_v19 = vmul.f32 0.6931472, %v2266_v5  ;;  %v346_v62 = vmul.f32 %v330_v4, %v3196_v37 }
  0x81   :  { %6272 = vst [vmem:[#allocation54_spill] sm:$0xff] %v3247_v10  ;;  %v2272_v22 = vpop.eup %2271  ;;  %v341_v15 = vadd.f32 2.0, %v3040_v63  ;;  %v343_v10 = vadd.f32 2.0, %v3048_v3  ;;  %v3262_v30 = vmul.f32 0.6931472, %v2268_v6  ;;  %v344_v33 = vadd.f32 2.0, %v3057_v7 }
  0x82   :  { %6273 = vst [vmem:[#allocation55_spill] sm:$0xff] %v3252_v38  ;;  %6274 = vst [vmem:[#allocation56_spill] sm:$0xff] %v3257_v19  ;;  %v2274_v41 = vpop.eup %2273  ;;  %v345_v38 = vmul.f32 %v329_v56, %v3192_v8  ;;  %v3267_v26 = vmul.f32 0.6931472, %v2270_v45  ;;  %v347_v5 = vmul.f32 %v331_v27, %v3202_v11  ;;  %v348_v19 = vmul.f32 %v332_v34, %v3205_v61 }
  0x83   :  { %6275 = vst [vmem:[#allocation57_spill] sm:$0xff] %v3262_v30  ;;  %v2276_v44 = vpop.eup %2275  ;;  %v349_v60 = vmul.f32 %v333_v1, %v317_v24  ;;  %v3271_v49 = vmul.f32 0.6931472, %v2272_v22  ;;  %v350_v6 = vmul.f32 %v334_v42, %v3211_v28  ;;  %v351_v30 = vmul.f32 %v335_v13, %v319_v55 }
  0x84   :  { %6276 = vst [vmem:[#allocation58_spill] sm:$0xff] %v3267_v26  ;;  %v2278_v16 = vpop.eup %2277  ;;  %v352_v50 = vmul.f32 %v336_v35, %v320_v47  ;;  %v3274_v7 = vmul.f32 0.6931472, %v2274_v41  ;;  %v353_v8 = vmul.f32 %v337_v53, %v321_v54  ;;  %v354_v37 = vmul.f32 %v338_v46, %v322_v52 }
  0x85   :  { %6277 = vst [vmem:[#allocation59_spill] sm:$0xff] %v3271_v49  ;;  %v2280_v17 = vpop.eup %2279  ;;  %v355_v56 = vmul.f32 %v339_v31, %v323_v9  ;;  %v3276_v45 = vmul.f32 0.6931472, %v2276_v44  ;;  %v356_v4 = vmul.f32 %v340_v2, %v324_v40  ;;  %v357_v11 = vmul.f32 %v341_v15, %v325_v59  ;;  %v6282_v59 = vld [vmem:[#allocation16_spill] sm:$0xff] }
  0x86   :  { %6278 = vst [vmem:[#allocation60_spill] sm:$0xff] %v3274_v7  ;;  %v358_v27 = vmul.f32 %v342_v20, %v326_v39  ;;  %v3278_v61 = vmul.f32 0.6931472, %v2278_v16  ;;  %v359_v24 = vmul.f32 %v343_v10, %v327_v32  ;;  %v360_v22 = vmul.f32 %v344_v33, %v328_v48 }
  0x87   :  { %6279 = vst [vmem:[#allocation61_spill] sm:$0xff] %v3276_v45  ;;  %v361_v34 = vadd.f32 3.0, %v2953_v12  ;;  %v3281_v28 = vmul.f32 0.6931472, %v2280_v17  ;;  %v362_v55 = vadd.f32 3.0, %v2955_v14  ;;  %v363_v41 = vadd.f32 3.0, %v6261_v23 }
  0x88   :  { %6280 = vst [vmem:[#allocation62_spill] sm:$0xff] %v3278_v61  ;;  %v364_v53 = vadd.f32 3.0, %v2960_v18  ;;  %v365_v31 = vadd.f32 3.0, %v2965_v21  ;;  %v366_v2 = vadd.f32 3.0, %v2972_v25  ;;  %v367_v20 = vadd.f32 3.0, %v2979_v29 }
  0x89   :  { %6281 = vst [vmem:[#allocation63_spill] sm:$0xff] %v3281_v28  ;;  %v368_v16 = vadd.f32 3.0, %v2992_v36  ;;  %v369_v10 = vadd.f32 3.0, %v3005_v43  ;;  %v370_v47 = vadd.f32 3.0, %v3019_v51  ;;  %v371_v17 = vadd.f32 3.0, %v3030_v57 }
  0x8a   :  { %v372_v54 = vadd.f32 3.0, %v3032_v58  ;;  %v373_v52 = vadd.f32 3.0, %v3040_v63  ;;  %v374_v9 = vadd.f32 3.0, %v3042_v0  ;;  %v375_v40 = vadd.f32 3.0, %v3048_v3 }
  0x8b   :  { %v376_v39 = vadd.f32 3.0, %v6282_v59  ;;  %v377_v32 = vmul.f32 %v361_v34, %v345_v38  ;;  %v378_v48 = vmul.f32 %v362_v55, %v346_v62  ;;  %v379_v44 = vmul.f32 %v363_v41, %v347_v5 }
  0x8c   :  { %v380_v1 = vmul.f32 %v364_v53, %v348_v19  ;;  %v381_v42 = vmul.f32 %v365_v31, %v349_v60  ;;  %v382_v13 = vmul.f32 %v366_v2, %v350_v6  ;;  %v383_v35 = vmul.f32 %v367_v20, %v351_v30 }
  0x8d   :  { %v384_v46 = vmul.f32 %v368_v16, %v352_v50  ;;  %v385_v15 = vmul.f32 %v369_v10, %v353_v8  ;;  %v386_v33 = vmul.f32 %v370_v47, %v354_v37  ;;  %v387_v28 = vmul.f32 %v371_v17, %v355_v56 }
  0x8e   :  { %v388_v61 = vmul.f32 %v372_v54, %v356_v4  ;;  %v389_v45 = vmul.f32 %v373_v52, %v357_v11  ;;  %v390_v7 = vmul.f32 %v374_v9, %v358_v27  ;;  %v3298_v49 = vmul.f32 %v375_v40, %v359_v24  ;;  %v6283_v24 = vld [vmem:[#allocation16_spill] sm:$0xff] }
  0x8f   :  { %v3300_v26 = vmul.f32 %v376_v39, %v360_v22  ;;  %v393_v59 = vadd.f32 4.0, %v2953_v12  ;;  %v394_v62 = vadd.f32 4.0, %v2955_v14  ;;  %v395_v19 = vadd.f32 4.0, %v6261_v23 }
  0x90   :  { %v396_v38 = vadd.f32 4.0, %v2960_v18  ;;  %v397_v50 = vadd.f32 4.0, %v2965_v21  ;;  %v398_v60 = vadd.f32 4.0, %v2972_v25  ;;  %v399_v30 = vadd.f32 4.0, %v2979_v29 }
  0x91   :  { %v400_v5 = vadd.f32 4.0, %v2992_v36  ;;  %v401_v6 = vadd.f32 4.0, %v3005_v43  ;;  %v402_v8 = vadd.f32 4.0, %v3019_v51  ;;  %v403_v37 = vadd.f32 4.0, %v3030_v57 }
  0x92   :  { %v404_v56 = vadd.f32 4.0, %v3032_v58  ;;  %v405_v4 = vadd.f32 4.0, %v3040_v63  ;;  %v406_v11 = vadd.f32 4.0, %v3042_v0  ;;  %v3317_v27 = vadd.f32 4.0, %v3048_v3 }
  0x93   :  { %v3320_v22 = vadd.f32 4.0, %v6283_v24  ;;  %v3322_v34 = vmul.f32 %v393_v59, %v377_v32  ;;  %v3324_v55 = vmul.f32 %v394_v62, %v378_v48  ;;  %v3326_v41 = vmul.f32 %v395_v19, %v379_v44  ;;  %v78_v62 = vld [vmem:[#allocation2 + $0x28] sm:$0xff]  ;;  %v79_v19 = vld [vmem:[#allocation2 + $0x30] sm:$0xff] }
  0x94   :  { %v3328_v53 = vmul.f32 %v396_v38, %v380_v1  ;;  %v3330_v31 = vmul.f32 %v397_v50, %v381_v42  ;;  %v3332_v2 = vmul.f32 %v398_v60, %v382_v13  ;;  %v3334_v20 = vmul.f32 %v399_v30, %v383_v35  ;;  %v74_v1 = vld [vmem:[#allocation2 + $0x8] sm:$0xff]  ;;  %v75_v42 = vld [vmem:[#allocation2 + $0x10] sm:$0xff]  ;;  %v76_v13 = vld [vmem:[#allocation2 + $0x18] sm:$0xff] }
  0x95   :  { %6284 = vst [vmem:[#allocation16_spill] sm:$0xff] %v3322_v34  ;;  %6285 = vst [vmem:[#allocation64_spill] sm:$0xff] %v3324_v55  ;;  %v3337_v16 = vadd.f32 5.0, %v2953_v12  ;;  %v3339_v10 = vmul.f32 %v400_v5, %v384_v46  ;;  %v3341_v47 = vmul.f32 %v401_v6, %v385_v15  ;;  %v3343_v17 = vmul.f32 %v402_v8, %v386_v33  ;;  %v77_v33 = vld [vmem:[#allocation2 + $0x20] sm:$0xff]  ;;  %v80_v30 = vld [vmem:[#allocation2 + $0x38] sm:$0xff] }
  0x96   :  { %6286 = vst [vmem:[#allocation65_spill] sm:$0xff] %v3326_v41  ;;  %6287 = vst [vmem:[#allocation66_spill] sm:$0xff] %v3328_v53  ;;  %v3346_v54 = vadd.f32 5.0, %v2955_v14  ;;  %v3348_v52 = vmul.f32 %v403_v37, %v387_v28  ;;  %v3350_v9 = vmul.f32 %v404_v56, %v388_v61  ;;  %v3352_v40 = vmul.f32 %v405_v4, %v389_v45  ;;  %v81_v5 = vld [vmem:[#allocation2 + $0x40] sm:$0xff]  ;;  %v82_v56 = vld [vmem:[#allocation2 + $0x48] sm:$0xff] }
  0x97   :  { %6288 = vst [vmem:[#allocation67_spill] sm:$0xff] %v3330_v31  ;;  %6289 = vst [vmem:[#allocation68_spill] sm:$0xff] %v3332_v2  ;;  %v3355_v59 = vadd.f32 5.0, %v6261_v23  ;;  %v3357_v12 = vmul.f32 %v406_v11, %v390_v7  ;;  %v3360_v39 = vadd.f32 5.0, %v2960_v18  ;;  %v3363_v32 = vadd.f32 5.0, %v2965_v21  ;;  %v73_v7 = vld [vmem:[#allocation2] sm:$0xff] }
  0x98   :  { %6290 = vst [vmem:[#allocation69_spill] sm:$0xff] %v3334_v20  ;;  %6291 = vst [vmem:[#allocation70_spill] sm:$0xff] %v3339_v10  ;;  %v3366_v14 = vadd.f32 5.0, %v2972_v25  ;;  %v3369_v28 = vadd.f32 5.0, %v2979_v29  ;;  %v3372_v45 = vadd.f32 5.0, %v2992_v36  ;;  %v3375_v23 = vadd.f32 5.0, %v3005_v43 }
  0x99   :  { %6292 = vst [vmem:[#allocation71_spill] sm:$0xff] %v3341_v47  ;;  %6293 = vst [vmem:[#allocation72_spill] sm:$0xff] %v3343_v17  ;;  %2281 = vrcp.f32 %v3337_v16  ;;  %v3379_v18 = vadd.f32 5.0, %v3019_v51  ;;  %v3382_v21 = vadd.f32 5.0, %v3030_v57  ;;  %v3385_v25 = vadd.f32 5.0, %v3032_v58  ;;  %v83_v4 = vld [vmem:[#allocation2 + $0x50] sm:$0xff] }
  0x9a   :  { %6294 = vst [vmem:[#allocation73_spill] sm:$0xff] %v3348_v52  ;;  %6295 = vst [vmem:[#allocation74_spill] sm:$0xff] %v3350_v9  ;;  %2283 = vrcp.f32 %v3346_v54  ;;  %v3389_v29 = vadd.f32 5.0, %v3040_v63  ;;  %v3392_v36 = vadd.f32 5.0, %v3042_v0  ;;  %v3395_v43 = vadd.f32 5.0, %v3048_v3  ;;  %v84_v9 = vld [vmem:[#allocation2 + $0x58] sm:$0xff] }
  0x9b   :  { %6296 = vst [vmem:[#allocation75_spill] sm:$0xff] %v3352_v40  ;;  %6297 = vst [vmem:[#allocation76_spill] sm:$0xff] %v3357_v12  ;;  %2285 = vrcp.f32 %v3355_v59  ;;  %v3399_v51 = vadd.f32 5.0, %v6283_v24  ;;  %v3403_v57 = vadd.f32 -0.5, %v3337_v16  ;;  %v3406_v58 = vadd.f32 -0.5, %v3346_v54  ;;  %v85_v10 = vld [vmem:[#allocation2 + $0x60] sm:$0xff] }
  0x9c   :  { %6298 = vst [vmem:[#allocation77_spill] sm:$0xff] %v3363_v32  ;;  %6299 = vst [vmem:[#allocation78_spill] sm:$0xff] %v3366_v14  ;;  %2287 = vrcp.f32 %v3360_v39  ;;  %v3410_v63 = vadd.f32 -0.5, %v3355_v59  ;;  %v3413_v0 = vadd.f32 -0.5, %v3360_v39  ;;  %v3416_v3 = vadd.f32 -0.5, %v3363_v32 }
  0x9d   :  { %6300 = vst [vmem:[#allocation79_spill] sm:$0xff] %v3369_v28  ;;  %6301 = vst [vmem:[#allocation80_spill] sm:$0xff] %v3372_v45  ;;  %2289 = vrcp.f32 %v3363_v32  ;;  %v3420_v61 = vadd.f32 -0.5, %v3366_v14  ;;  %v3423_v48 = vadd.f32 -0.5, %v3369_v28  ;;  %v3426_v44 = vadd.f32 -0.5, %v3372_v45 }
  0x9e   :  { %6302 = vst [vmem:[#allocation81_spill] sm:$0xff] %v3375_v23  ;;  %6303 = vst [vmem:[#allocation82_spill] sm:$0xff] %v3379_v18  ;;  %2291 = vrcp.f32 %v3366_v14  ;;  %v3430_v35 = vadd.f32 -0.5, %v3375_v23  ;;  %v3433_v46 = vadd.f32 -0.5, %v3379_v18  ;;  %v3436_v15 = vadd.f32 -0.5, %v3382_v21 }
  0x9f   :  { %6304 = vst [vmem:[#allocation83_spill] sm:$0xff] %v3382_v21  ;;  %6305 = vst [vmem:[#allocation84_spill] sm:$0xff] %v3385_v25  ;;  %2293 = vrcp.f32 %v3369_v28  ;;  %v3440_v38 = vadd.f32 -0.5, %v3385_v25  ;;  %v3443_v50 = vadd.f32 -0.5, %v3389_v29  ;;  %v3446_v60 = vadd.f32 -0.5, %v3392_v36 }
  0xa0   :  { %6306 = vst [vmem:[#allocation85_spill] sm:$0xff] %v3389_v29  ;;  %6307 = vst [vmem:[#allocation86_spill] sm:$0xff] %v3392_v36  ;;  %2295 = vrcp.f32 %v3372_v45  ;;  %v3450_v6 = vadd.f32 -0.5, %v3395_v43  ;;  %v3453_v8 = vadd.f32 -0.5, %v3399_v51  ;;  %v3455_v37 = vadd.f32 1.0, %v73_v7 }
  0xa1   :  { %6308 = vst [vmem:[#allocation87_spill] sm:$0xff] %v3395_v43  ;;  %6309 = vst [vmem:[#allocation88_spill] sm:$0xff] %v3399_v51  ;;  %2297 = vrcp.f32 %v3375_v23  ;;  %v3458_v11 = vadd.f32 1.0, %v74_v1  ;;  %v3460_v24 = vadd.f32 1.0, %v75_v42  ;;  %v3462_v12 = vadd.f32 1.0, %v76_v13 }
  0xa2   :  { %6310 = vst [vmem:[#allocation89_spill] sm:$0xff] %v3403_v57  ;;  %6311 = vst [vmem:[#allocation90_spill] sm:$0xff] %v3406_v58  ;;  %2299 = vrcp.f32 %v3379_v18  ;;  %v3467_v52 = vadd.f32 1.0, %v77_v33  ;;  %v3469_v17 = vadd.f32 1.0, %v78_v62  ;;  %v3471_v7 = vadd.f32 1.0, %v79_v19  ;;  %v86_v33 = vld [vmem:[#allocation2 + $0x68] sm:$0xff] }
  0xa3   :  { %6312 = vst [vmem:[#allocation91_spill] sm:$0xff] %v3410_v63  ;;  %6313 = vst [vmem:[#allocation92_spill] sm:$0xff] %v3413_v0  ;;  %v3464_v40 = vpop.eup %2281  ;;  %2301 = vrcp.f32 %v3382_v21  ;;  %v3480_v42 = vadd.f32 1.0, %v80_v30  ;;  %v3482_v13 = vadd.f32 1.0, %v81_v5  ;;  %v3491_v19 = vadd.f32 1.0, %v82_v56  ;;  %v88_v30 = vld [vmem:[#allocation2 + $0x78] sm:$0xff] }
  0xa4   :  { %6314 = vst [vmem:[#allocation93_spill] sm:$0xff] %v3416_v3  ;;  %6315 = vst [vmem:[#allocation94_spill] sm:$0xff] %v3420_v61  ;;  %v3473_v47 = vpop.eup %2283  ;;  %2303 = vrcp.f32 %v3385_v25  ;;  %v3478_v1 = vmul.f32 %v3464_v40, %v3464_v40  ;;  %v3493_v2 = vadd.f32 1.0, %v83_v4  ;;  %v3536_v55 = vadd.f32 1.0, %v3455_v37 }
  0xa5   :  { %6316 = vst [vmem:[#allocation95_spill] sm:$0xff] %v3423_v48  ;;  %6317 = vst [vmem:[#allocation96_spill] sm:$0xff] %v3426_v44  ;;  %v3484_v20 = vpop.eup %2285  ;;  %2305 = vrcp.f32 %v3389_v29  ;;  %v3489_v62 = vmul.f32 %v3473_v47, %v3473_v47  ;;  %v3533_v44 = vadd.f32 1.0, %v88_v30  ;;  %v3546_v3 = vadd.f32 1.0, %v3458_v11 }
  0xa6   :  { %6318 = vst [vmem:[#allocation97_spill] sm:$0xff] %v3430_v35  ;;  %6319 = vst [vmem:[#allocation98_spill] sm:$0xff] %v3433_v46  ;;  %v3495_v31 = vpop.eup %2287  ;;  %2307 = vrcp.f32 %v3392_v36  ;;  %v3500_v5 = vmul.f32 %v3484_v20, %v3484_v20  ;;  %v3523_v46 = vadd.f32 1.0, %v86_v33 }
  0xa7   :  { %6320 = vst [vmem:[#allocation99_spill] sm:$0xff] %v3436_v15  ;;  %6321 = vst [vmem:[#allocation100_spill] sm:$0xff] %v3440_v38  ;;  %2309 = vrcp.f32 %v3395_v43  ;;  %v3510_v56 = vmul.f32 %v3495_v31, %v3495_v31  ;;  %v474_v4 = vmul.f32 -0.0005952381, %v3489_v62  ;;  %v3513_v38 = vadd.f32 1.0, %v85_v10 }
  0xa8   :  { %6322 = vst [vmem:[#allocation101_spill] sm:$0xff] %v3443_v50  ;;  %6323 = vst [vmem:[#allocation102_spill] sm:$0xff] %v3446_v60  ;;  %v3503_v60 = vadd.f32 1.0, %v84_v9  ;;  %v3505_v50 = vpop.eup %2289  ;;  %2311 = vrcp.f32 %v3399_v51  ;;  %v475_v53 = vmul.f32 -0.0005952381, %v3500_v5  ;;  %v3566_v43 = vadd.f32 1.0, %v3462_v12 }
  0xa9   :  { %6324 = vst [vmem:[#allocation103_spill] sm:$0xff] %v3450_v6  ;;  %6325 = vst [vmem:[#allocation104_spill] sm:$0xff] %v3453_v8  ;;  %v87_v8 = vld [vmem:[#allocation2 + $0x70] sm:$0xff]  ;;  %v473_v6 = vmul.f32 -0.0005952381, %v3478_v1  ;;  %v3515_v15 = vpop.eup %2291  ;;  %v3520_v9 = vmul.f32 %v3505_v50, %v3505_v50  ;;  %2313 = vlog2.f32 %v3337_v16 }
  0xaa   :  { %6326 = vst [vmem:[#allocation105_spill] sm:$0xff] %v3455_v37  ;;  %6327 = vst [vmem:[#allocation106_spill] sm:$0xff] %v3458_v11  ;;  %v3525_v35 = vpop.eup %2293  ;;  %v3529_v41 = vmul.f32 %v3515_v15, %v3515_v15  ;;  %v3531_v10 = vadd.f32 1.0, %v87_v8  ;;  %v476_v33 = vmul.f32 -0.0005952381, %v3510_v56  ;;  %2315 = vlog2.f32 %v3346_v54 }
  0xab   :  { %6328 = vst [vmem:[#allocation107_spill] sm:$0xff] %v3460_v24  ;;  %6329 = vst [vmem:[#allocation108_spill] sm:$0xff] %v3462_v12  ;;  %v3538_v48 = vpop.eup %2295  ;;  %v3542_v34 = vmul.f32 %v3525_v35, %v3525_v35  ;;  %v489_v61 = vadd.f32 0.0007936508, %v473_v6  ;;  %v477_v30 = vmul.f32 -0.0005952381, %v3520_v9  ;;  %2317 = vlog2.f32 %v3355_v59 }
  0xac   :  { %6330 = vst [vmem:[#allocation109_spill] sm:$0xff] %v3467_v52  ;;  %6331 = vst [vmem:[#allocation110_spill] sm:$0xff] %v3469_v17  ;;  %v3548_v0 = vpop.eup %2297  ;;  %v3552_v8 = vmul.f32 %v3538_v48, %v3538_v48  ;;  %v490_v51 = vadd.f32 0.0007936508, %v474_v4  ;;  %v491_v11 = vadd.f32 0.0007936508, %v475_v53  ;;  %2319 = vlog2.f32 %v3360_v39 }
  0xad   :  { %6332 = vst [vmem:[#allocation111_spill] sm:$0xff] %v3471_v7  ;;  %6333 = vst [vmem:[#allocation112_spill] sm:$0xff] %v3480_v42  ;;  %v3558_v37 = vpop.eup %2299  ;;  %v3562_v6 = vmul.f32 %v3548_v0, %v3548_v0  ;;  %v492_v12 = vadd.f32 0.0007936508, %v476_v33 }
  0xae   :  { %6334 = vst [vmem:[#allocation113_spill] sm:$0xff] %v3482_v13  ;;  %6335 = vst [vmem:[#allocation114_spill] sm:$0xff] %v3491_v19  ;;  %v3572_v4 = vmul.f32 %v3558_v37, %v3558_v37  ;;  %v506_v29 = vmul.f32 %v490_v51, %v3489_v62  ;;  %v507_v25 = vmul.f32 %v491_v11, %v3500_v5 }
  0xaf   :  { %6336 = vst [vmem:[#allocation115_spill] sm:$0xff] %v3493_v2  ;;  %6337 = vst [vmem:[#allocation116_spill] sm:$0xff] %v3503_v60 }
  0xb0   :  { %6338 = vst [vmem:[#allocation117_spill] sm:$0xff] %v3513_v38  ;;  %6339 = vst [vmem:[#allocation118_spill] sm:$0xff] %v3523_v46  ;;  %v505_v46 = vmul.f32 %v489_v61, %v3478_v1 }
  0xb1   :  { %6340 = vst [vmem:[#allocation119_spill] sm:$0xff] %v3531_v10  ;;  %6341 = vst [vmem:[#allocation120_spill] sm:$0xff] %v3533_v44  ;;  %v3568_v44 = vpop.eup %2301  ;;  %v3577_v10 = vadd.f32 1.0, %v3467_v52  ;;  %v482_v52 = vmul.f32 -0.0005952381, %v3572_v4 }
  0xb2   :  { %6342 = vst [vmem:[#allocation121_spill] sm:$0xff] %v3536_v55  ;;  %6343 = vst [vmem:[#allocation122_spill] sm:$0xff] %v3546_v3  ;;  %v3556_v55 = vadd.f32 1.0, %v3460_v24  ;;  %v478_v3 = vmul.f32 -0.0005952381, %v3529_v41  ;;  %v3579_v36 = vpop.eup %2303  ;;  %v3583_v53 = vmul.f32 %v3568_v44, %v3568_v44 }
  0xb3   :  { %6344 = vst [vmem:[#allocation123_spill] sm:$0xff] %v3548_v0  ;;  %6346 = vst [vmem:[#allocation125_spill] sm:$0xff] %v3558_v37  ;;  %v480_v24 = vmul.f32 -0.0005952381, %v3552_v8  ;;  %v3587_v38 = vpop.eup %2305  ;;  %v3591_v60 = vmul.f32 %v3579_v36, %v3579_v36  ;;  %v498_v18 = vadd.f32 0.0007936508, %v482_v52 }
  0xb4   :  { %6345 = vst [vmem:[#allocation124_spill] sm:$0xff] %v3556_v55  ;;  %6347 = vst [vmem:[#allocation126_spill] sm:$0xff] %v3566_v43  ;;  %v479_v55 = vmul.f32 -0.0005952381, %v3542_v34  ;;  %v481_v43 = vmul.f32 -0.0005952381, %v3562_v6  ;;  %v3595_v2 = vpop.eup %2307  ;;  %v3599_v19 = vmul.f32 %v3587_v38, %v3587_v38 }
  0xb5   :  { %6348 = vst [vmem:[#allocation127_spill] sm:$0xff] %v3568_v44  ;;  %6349 = vst [vmem:[#allocation128_spill] sm:$0xff] %v3577_v10  ;;  %v493_v10 = vadd.f32 0.0007936508, %v477_v30  ;;  %v483_v33 = vmul.f32 -0.0005952381, %v3583_v53  ;;  %v3603_v13 = vpop.eup %2309  ;;  %v3607_v42 = vmul.f32 %v3595_v2, %v3595_v2 }
  0xb6   :  { %6350 = vst [vmem:[#allocation129_spill] sm:$0xff] %v3579_v36  ;;  %6351 = vst [vmem:[#allocation130_spill] sm:$0xff] %v3587_v38  ;;  %v494_v61 = vadd.f32 0.0007936508, %v478_v3  ;;  %v484_v30 = vmul.f32 -0.0005952381, %v3591_v60  ;;  %v3610_v7 = vpop.eup %2311  ;;  %v471_v17 = vmul.f32 %v3603_v13, %v3603_v13 }
  0xb7   :  { %6352 = vst [vmem:[#allocation131_spill] sm:$0xff] %v3595_v2  ;;  %6353 = vst [vmem:[#allocation132_spill] sm:$0xff] %v3603_v13  ;;  %v495_v51 = vadd.f32 0.0007936508, %v479_v55  ;;  %v496_v21 = vadd.f32 0.0007936508, %v480_v24  ;;  %v472_v11 = vmul.f32 %v3610_v7, %v3610_v7  ;;  %v508_v55 = vmul.f32 %v492_v12, %v3510_v56 }
  0xb8   :  { %6354 = vst [vmem:[#allocation133_spill] sm:$0xff] %v3610_v7  ;;  %v485_v63 = vmul.f32 -0.0005952381, %v3599_v19  ;;  %v497_v3 = vadd.f32 0.0007936508, %v481_v43  ;;  %v509_v24 = vmul.f32 %v493_v10, %v3520_v9  ;;  %v510_v13 = vmul.f32 %v494_v61, %v3529_v41 }
  0xb9   :  { %v486_v58 = vmul.f32 -0.0005952381, %v3607_v42  ;;  %v499_v23 = vadd.f32 0.0007936508, %v483_v33  ;;  %v500_v45 = vadd.f32 0.0007936508, %v484_v30  ;;  %v511_v43 = vmul.f32 %v495_v51, %v3542_v34 }
  0xba   :  { %v487_v2 = vmul.f32 -0.0005952381, %v471_v17  ;;  %v501_v28 = vadd.f32 0.0007936508, %v485_v63  ;;  %v488_v38 = vmul.f32 -0.0005952381, %v472_v11  ;;  %v512_v57 = vmul.f32 %v496_v21, %v3552_v8 }
  0xbb   :  { %v502_v36 = vadd.f32 0.0007936508, %v486_v58  ;;  %v513_v7 = vmul.f32 %v497_v3, %v3562_v6  ;;  %v514_v33 = vmul.f32 %v498_v18, %v3572_v4  ;;  %v515_v63 = vmul.f32 %v499_v23, %v3583_v53 }
  0xbc   :  { %v503_v52 = vadd.f32 0.0007936508, %v487_v2  ;;  %v504_v30 = vadd.f32 0.0007936508, %v488_v38  ;;  %v516_v12 = vmul.f32 %v500_v45, %v3591_v60  ;;  %v521_v14 = vadd.f32 -0.0027777778, %v505_v46 }
  0xbd   :  { %v517_v10 = vmul.f32 %v501_v28, %v3599_v19  ;;  %v518_v58 = vmul.f32 %v502_v36, %v3607_v42  ;;  %v522_v61 = vadd.f32 -0.0027777778, %v506_v29  ;;  %v523_v44 = vadd.f32 -0.0027777778, %v507_v25 }
  0xbe   :  { %v519_v51 = vmul.f32 %v503_v52, %v471_v17  ;;  %v520_v2 = vmul.f32 %v504_v30, %v472_v11  ;;  %v524_v37 = vadd.f32 -0.0027777778, %v508_v55  ;;  %v525_v21 = vadd.f32 -0.0027777778, %v509_v24 }
  0xbf   :  { %v526_v32 = vadd.f32 -0.0027777778, %v510_v13  ;;  %v527_v3 = vadd.f32 -0.0027777778, %v511_v43  ;;  %v528_v0 = vadd.f32 -0.0027777778, %v512_v57  ;;  %v3632_v23 = vmul.f32 %v3317_v27, %v3298_v49 }
  0xc0   :  { %v529_v45 = vadd.f32 -0.0027777778, %v513_v7  ;;  %v530_v18 = vadd.f32 -0.0027777778, %v514_v33  ;;  %v531_v28 = vadd.f32 -0.0027777778, %v515_v63  ;;  %v537_v25 = vmul.f32 %v521_v14, %v3478_v1 }
  0xc1   :  { %6355 = vst [vmem:[#allocation134_spill] sm:$0xff] %v3632_v23  ;;  %v532_v46 = vadd.f32 -0.0027777778, %v516_v12  ;;  %v533_v36 = vadd.f32 -0.0027777778, %v517_v10  ;;  %v538_v13 = vmul.f32 %v522_v61, %v3489_v62  ;;  %v539_v57 = vmul.f32 %v523_v44, %v3500_v5 }
  0xc2   :  { %v534_v29 = vadd.f32 -0.0027777778, %v518_v58  ;;  %v535_v38 = vadd.f32 -0.0027777778, %v519_v51  ;;  %v536_v55 = vadd.f32 -0.0027777778, %v520_v2  ;;  %v540_v24 = vmul.f32 %v524_v37, %v3510_v56 }
  0xc3   :  { %v541_v43 = vmul.f32 %v525_v21, %v3520_v9  ;;  %v542_v49 = vmul.f32 %v526_v32, %v3529_v41  ;;  %v543_v27 = vmul.f32 %v527_v3, %v3542_v34  ;;  %v544_v7 = vmul.f32 %v528_v0, %v3552_v8 }
  0xc4   :  { %v545_v52 = vmul.f32 %v529_v45, %v3562_v6  ;;  %v546_v14 = vmul.f32 %v530_v18, %v3572_v4  ;;  %v547_v1 = vmul.f32 %v531_v28, %v3583_v53  ;;  %v548_v44 = vmul.f32 %v532_v46, %v3591_v60  ;;  %v2314_v53 = vpop.eup %2313  ;;  %v6361_v28 = vld [vmem:[#allocation78_spill] sm:$0xff]  ;;  %v6362_v46 = vld [vmem:[#allocation89_spill] sm:$0xff] }
  0xc5   :  { %v553_v62 = vadd.f32 0.083333336, %v537_v25  ;;  %v549_v37 = vmul.f32 %v533_v36, %v3599_v19  ;;  %v550_v41 = vmul.f32 %v534_v29, %v3607_v42  ;;  %v551_v34 = vmul.f32 %v535_v38, %v471_v17  ;;  %v2316_v3 = vpop.eup %2315  ;;  %v6363_v29 = vld [vmem:[#allocation129_spill] sm:$0xff]  ;;  %v6364_v25 = vld [vmem:[#allocation130_spill] sm:$0xff] }
  0xc6   :  { %v554_v32 = vadd.f32 0.083333336, %v538_v13  ;;  %v552_v0 = vmul.f32 %v536_v55, %v472_v11  ;;  %v555_v5 = vadd.f32 0.083333336, %v539_v57  ;;  %v556_v56 = vadd.f32 0.083333336, %v540_v24  ;;  %v2318_v36 = vpop.eup %2317 }
  0xc7   :  { %v557_v9 = vadd.f32 0.083333336, %v541_v43  ;;  %v3652_v8 = vmul.f32 %v3320_v22, %v3300_v26  ;;  %v558_v6 = vadd.f32 0.083333336, %v542_v49  ;;  %v559_v4 = vadd.f32 0.083333336, %v543_v27 }
  0xc8   :  { %v560_v60 = vadd.f32 0.083333336, %v544_v7  ;;  %v561_v33 = vadd.f32 0.083333336, %v545_v52  ;;  %v562_v30 = vadd.f32 0.083333336, %v546_v14  ;;  %v3655_v19 = vmul.f32 %v3464_v40, %v553_v62 }
  0xc9   :  { %6356 = vst [vmem:[#allocation135_spill] sm:$0xff] %v3652_v8  ;;  %v563_v63 = vadd.f32 0.083333336, %v547_v1  ;;  %v564_v17 = vadd.f32 0.083333336, %v548_v44  ;;  %v3658_v12 = vmul.f32 %v3473_v47, %v554_v32  ;;  %v3661_v26 = vmul.f32 %v3484_v20, %v555_v5  ;;  %v6357_v20 = vld [vmem:[#allocation123_spill] sm:$0xff] }
  0xca   :  { %v565_v42 = vadd.f32 0.083333336, %v549_v37  ;;  %v566_v11 = vadd.f32 0.083333336, %v550_v41  ;;  %v567_v10 = vadd.f32 0.083333336, %v551_v34  ;;  %v3664_v22 = vmul.f32 %v3495_v31, %v556_v56 }
  0xcb   :  { %v568_v58 = vadd.f32 0.083333336, %v552_v0  ;;  %v3667_v61 = vmul.f32 %v3505_v50, %v557_v9  ;;  %v3670_v40 = vmul.f32 %v3515_v15, %v558_v6  ;;  %v602_v51 = vmul.f32 0.6931472, %v2314_v53  ;;  %v6358_v31 = vld [vmem:[#allocation77_spill] sm:$0xff]  ;;  %v6360_v15 = vld [vmem:[#allocation127_spill] sm:$0xff] }
  0xcc   :  { %v3674_v47 = vmul.f32 %v3525_v35, %v559_v4  ;;  %v3677_v2 = vmul.f32 %v3538_v48, %v560_v60  ;;  %v3680_v21 = vmul.f32 %v6357_v20, %v561_v33  ;;  %2321 = vlog2.f32 %v6358_v31  ;;  %v6359_v50 = vld [vmem:[#allocation125_spill] sm:$0xff]  ;;  %v6365_v13 = vld [vmem:[#allocation79_spill] sm:$0xff]  ;;  %v6367_v49 = vld [vmem:[#allocation80_spill] sm:$0xff] }
  0xcd   :  { %v3684_v45 = vmul.f32 %v6359_v50, %v562_v30  ;;  %v3687_v18 = vmul.f32 %v6360_v15, %v563_v63  ;;  %2323 = vlog2.f32 %v6361_v28  ;;  %v633_v35 = vmul.f32 %v6362_v46, %v602_v51  ;;  %v6366_v57 = vld [vmem:[#allocation131_spill] sm:$0xff]  ;;  %v6368_v7 = vld [vmem:[#allocation132_spill] sm:$0xff]  ;;  %v6369_v14 = vld [vmem:[#allocation133_spill] sm:$0xff]  ;;  %v2320_v46 = vpop.eup %2319 }
  0xce   :  { %v3692_v48 = vmul.f32 %v6363_v29, %v564_v17  ;;  %v3695_v38 = vmul.f32 %v6364_v25, %v565_v42  ;;  %v604_v55 = vmul.f32 0.6931472, %v2316_v3  ;;  %2325 = vlog2.f32 %v6365_v13  ;;  %v6370_v44 = vld [vmem:[#allocation81_spill] sm:$0xff]  ;;  %v6371_v62 = vld [vmem:[#allocation90_spill] sm:$0xff]  ;;  %v6373_v34 = vld [vmem:[#allocation91_spill] sm:$0xff] }
  0xcf   :  { %v3699_v24 = vmul.f32 %v6366_v57, %v566_v11  ;;  %v606_v43 = vmul.f32 0.6931472, %v2318_v36  ;;  %2327 = vlog2.f32 %v6367_v49  ;;  %v649_v27 = vsub.f32 %v633_v35, %v3337_v16  ;;  %v6372_v41 = vld [vmem:[#allocation82_spill] sm:$0xff]  ;;  %v6375_v56 = vld [vmem:[#allocation111_spill] sm:$0xff]  ;;  %v6377_v4 = vld [vmem:[#allocation112_spill] sm:$0xff] }
  0xd0   :  { %v3704_v52 = vmul.f32 %v6368_v7, %v567_v10  ;;  %v3707_v1 = vmul.f32 %v6369_v14, %v568_v58  ;;  %2329 = vlog2.f32 %v6370_v44  ;;  %v634_v37 = vmul.f32 %v6371_v62, %v604_v55  ;;  %v6374_v0 = vld [vmem:[#allocation110_spill] sm:$0xff]  ;;  %v6376_v6 = vld [vmem:[#allocation83_spill] sm:$0xff]  ;;  %v6378_v53 = vld [vmem:[#allocation113_spill] sm:$0xff] }
  0xd1   :  { %2331 = vlog2.f32 %v6372_v41  ;;  %v635_v32 = vmul.f32 %v6373_v34, %v606_v43  ;;  %v766_v5 = vadd.f32 1.0, %v6374_v0  ;;  %v767_v9 = vadd.f32 1.0, %v6375_v56  ;;  %v6379_v30 = vld [vmem:[#allocation84_spill] sm:$0xff]  ;;  %v6380_v17 = vld [vmem:[#allocation114_spill] sm:$0xff]  ;;  %v6381_v11 = vld [vmem:[#allocation115_spill] sm:$0xff] }
  0xd2   :  { %2333 = vlog2.f32 %v6376_v6  ;;  %v650_v16 = vsub.f32 %v634_v37, %v3346_v54  ;;  %v768_v60 = vadd.f32 1.0, %v6377_v4  ;;  %v3719_v33 = vadd.f32 1.0, %v6378_v53  ;;  %v6382_v58 = vld [vmem:[#allocation85_spill] sm:$0xff]  ;;  %v6383_v51 = vld [vmem:[#allocation116_spill] sm:$0xff]  ;;  %v6387_v50 = vld [vmem:[#allocation118_spill] sm:$0xff] }
  0xd3   :  { %2335 = vlog2.f32 %v6379_v30  ;;  %v665_v63 = vadd.f32 0.9189385, %v649_v27  ;;  %v3723_v42 = vadd.f32 1.0, %v6380_v17  ;;  %v3726_v10 = vadd.f32 1.0, %v6381_v11  ;;  %v6385_v54 = vld [vmem:[#allocation117_spill] sm:$0xff]  ;;  %v6389_v35 = vld [vmem:[#allocation86_spill] sm:$0xff] }
  0xd4   :  { %2337 = vlog2.f32 %v6382_v58  ;;  %v3730_v20 = vadd.f32 1.0, %v6383_v51  ;;  %v3733_v3 = vadd.f32 1.0, %v6385_v54  ;;  %v3736_v15 = vadd.f32 1.0, %v6387_v50  ;;  %v6390_v29 = vld [vmem:[#allocation119_spill] sm:$0xff]  ;;  %v6392_v55 = vld [vmem:[#allocation120_spill] sm:$0xff]  ;;  %v6395_v62 = vld [vmem:[#allocation105_spill] sm:$0xff] }
  0xd5   :  { %2339 = vlog2.f32 %v6389_v35  ;;  %v651_v36 = vsub.f32 %v635_v32, %v3355_v59  ;;  %v3741_v25 = vadd.f32 1.0, %v6390_v29  ;;  %v3744_v57 = vadd.f32 1.0, %v6392_v55  ;;  %v6394_v7 = vld [vmem:[#allocation87_spill] sm:$0xff]  ;;  %v6396_v37 = vld [vmem:[#allocation121_spill] sm:$0xff]  ;;  %v6400_v32 = vld [vmem:[#allocation106_spill] sm:$0xff] }
  0xd6   :  { %6384 = vst [vmem:[#allocation123_spill] sm:$0xff] %v3730_v20  ;;  %6386 = vst [vmem:[#allocation77_spill] sm:$0xff] %v3733_v3  ;;  %v2322_v43 = vpop.eup %2321  ;;  %v608_v27 = vmul.f32 0.6931472, %v2320_v46  ;;  %2341 = vlog2.f32 %v6394_v7  ;;  %v666_v14 = vadd.f32 0.9189385, %v650_v16  ;;  %v3749_v34 = vmul.f32 %v6396_v37, %v6395_v62 }
  0xd7   :  { %6388 = vst [vmem:[#allocation125_spill] sm:$0xff] %v3736_v15  ;;  %6391 = vst [vmem:[#allocation127_spill] sm:$0xff] %v3741_v25  ;;  %v2324_v8 = vpop.eup %2323  ;;  %v610_v23 = vmul.f32 0.6931472, %v2322_v43  ;;  %v6398_v15 = vld [vmem:[#allocation88_spill] sm:$0xff]  ;;  %v3753_v59 = vadd.f32 %v665_v63, %v3655_v19  ;;  %v6401_v25 = vld [vmem:[#allocation122_spill] sm:$0xff] }
  0xd8   :  { %6393 = vst [vmem:[#allocation78_spill] sm:$0xff] %v3744_v57  ;;  %6397 = vst [vmem:[#allocation89_spill] sm:$0xff] %v3749_v34  ;;  %2343 = vlog2.f32 %v6398_v15  ;;  %v3757_v55 = vmul.f32 %v6401_v25, %v6400_v32  ;;  %v2326_v57 = vpop.eup %2325  ;;  %v612_v46 = vmul.f32 0.6931472, %v2324_v8  ;;  %v6403_v29 = vld [vmem:[#allocation92_spill] sm:$0xff]  ;;  %v6404_v16 = vld [vmem:[#allocation107_spill] sm:$0xff] }
  0xd9   :  { %6399 = vst [vmem:[#allocation129_spill] sm:$0xff] %v3753_v59  ;;  %v636_v50 = vmul.f32 %v6403_v29, %v608_v27  ;;  %v6405_v3 = vld [vmem:[#allocation124_spill] sm:$0xff]  ;;  %v6408_v34 = vld [vmem:[#allocation126_spill] sm:$0xff]  ;;  %v2328_v62 = vpop.eup %2327  ;;  %v614_v20 = vmul.f32 0.6931472, %v2326_v57  ;;  %v6410_v19 = vld [vmem:[#allocation93_spill] sm:$0xff]  ;;  %v3774_v29 = vadd.f32 %v666_v14, %v3658_v12  ;;  %v3780_v27 = vmul.f32 %v767_v9, %v6375_v56 }
  0xda   :  { %6402 = vst [vmem:[#allocation130_spill] sm:$0xff] %v3757_v55  ;;  %v3762_v54 = vmul.f32 %v6405_v3, %v6404_v16  ;;  %v6407_v37 = vld [vmem:[#allocation108_spill] sm:$0xff]  ;;  %v637_v63 = vmul.f32 %v6410_v19, %v610_v23  ;;  %v667_v51 = vadd.f32 0.9189385, %v651_v36  ;;  %v6411_v59 = vld [vmem:[#allocation109_spill] sm:$0xff]  ;;  %v2330_v8 = vpop.eup %2329  ;;  %v3777_v3 = vmul.f32 %v766_v5, %v6374_v0  ;;  %v6426_v56 = vld [vmem:[#allocation66_spill] sm:$0xff] }
  0xdb   :  { %v3766_v43 = vmul.f32 %v6408_v34, %v6407_v37  ;;  %v6412_v25 = vld [vmem:[#allocation128_spill] sm:$0xff]  ;;  %v616_v32 = vmul.f32 0.6931472, %v2328_v62  ;;  %6414 = vst [vmem:[#allocation132_spill] sm:$0xff] %v3774_v29  ;;  %6416 = vst [vmem:[#allocation81_spill] sm:$0xff] %v3780_v27  ;;  %v2332_v34 = vpop.eup %2331  ;;  %v3785_v19 = vmul.f32 %v768_v60, %v6377_v4  ;;  %v652_v14 = vsub.f32 %v636_v50, %v3360_v39  ;;  %v6424_v60 = vld [vmem:[#allocation97_spill] sm:$0xff] }
  0xdc   :  { %6406 = vst [vmem:[#allocation79_spill] sm:$0xff] %v3762_v54  ;;  %v3771_v55 = vmul.f32 %v6412_v25, %v6411_v59  ;;  %6415 = vst [vmem:[#allocation133_spill] sm:$0xff] %v3777_v3  ;;  %v618_v57 = vmul.f32 0.6931472, %v2330_v8  ;;  %v6418_v36 = vld [vmem:[#allocation16_spill] sm:$0xff]  ;;  %v2334_v25 = vpop.eup %2333  ;;  %v653_v8 = vsub.f32 %v637_v63, %v6358_v31  ;;  %v6425_v4 = vld [vmem:[#allocation98_spill] sm:$0xff] }
  0xdd   :  { %6409 = vst [vmem:[#allocation131_spill] sm:$0xff] %v3766_v43  ;;  %v6417_v43 = vld [vmem:[#allocation94_spill] sm:$0xff]  ;;  %2345 = vlog2.f32 %v6418_v36  ;;  %6419 = vst [vmem:[#allocation90_spill] sm:$0xff] %v3785_v19  ;;  %v620_v62 = vmul.f32 0.6931472, %v2332_v34  ;;  %v6421_v5 = vld [vmem:[#allocation64_spill] sm:$0xff]  ;;  %v2336_v3 = vpop.eup %2335 }
  0xde   :  { %6413 = vst [vmem:[#allocation80_spill] sm:$0xff] %v3771_v55  ;;  %v638_v23 = vmul.f32 %v6417_v43, %v612_v46  ;;  %v6420_v55 = vld [vmem:[#allocation95_spill] sm:$0xff]  ;;  %2347 = vlog2.f32 %v6421_v5  ;;  %v622_v9 = vmul.f32 0.6931472, %v2334_v25  ;;  %v6422_v27 = vld [vmem:[#allocation96_spill] sm:$0xff]  ;;  %v6423_v46 = vld [vmem:[#allocation65_spill] sm:$0xff]  ;;  %v2338_v43 = vpop.eup %2337  ;;  %v641_v19 = vmul.f32 %v6424_v60, %v618_v57 }
  0xdf   :  { %v639_v12 = vmul.f32 %v6420_v55, %v614_v20  ;;  %v640_v54 = vmul.f32 %v6422_v27, %v616_v32  ;;  %2349 = vlog2.f32 %v6423_v46  ;;  %v624_v36 = vmul.f32 0.6931472, %v2336_v3  ;;  %v2340_v20 = vpop.eup %2339  ;;  %v6427_v50 = vld [vmem:[#allocation99_spill] sm:$0xff]  ;;  %v6429_v27 = vld [vmem:[#allocation100_spill] sm:$0xff] }
  0xe0   :  { %v642_v34 = vmul.f32 %v6425_v4, %v620_v62  ;;  %2351 = vlog2.f32 %v6426_v56  ;;  %v626_v39 = vmul.f32 0.6931472, %v2338_v43  ;;  %v643_v55 = vmul.f32 %v6427_v50, %v622_v9  ;;  %v2342_v31 = vpop.eup %2341  ;;  %v6430_v62 = vld [vmem:[#allocation101_spill] sm:$0xff]  ;;  %v6431_v50 = vld [vmem:[#allocation102_spill] sm:$0xff] }
  0xe1   :  { %v654_v25 = vsub.f32 %v638_v23, %v6361_v28  ;;  %v3799_v32 = vadd.f32 %v667_v51, %v3661_v26  ;;  %v628_v63 = vmul.f32 0.6931472, %v2340_v20  ;;  %v644_v5 = vmul.f32 %v6429_v27, %v624_v36  ;;  %v6432_v23 = vld [vmem:[#allocation103_spill] sm:$0xff] }
  0xe2   :  { %v655_v3 = vsub.f32 %v639_v12, %v6365_v13  ;;  %v668_v57 = vadd.f32 0.9189385, %v652_v14  ;;  %v2344_v46 = vpop.eup %2343  ;;  %v630_v4 = vmul.f32 0.6931472, %v2342_v31  ;;  %v645_v56 = vmul.f32 %v6430_v62, %v626_v39  ;;  %v6433_v14 = vld [vmem:[#allocation104_spill] sm:$0xff] }
  0xe3   :  { %6428 = vst [vmem:[#allocation82_spill] sm:$0xff] %v3799_v32  ;;  %v656_v43 = vsub.f32 %v640_v54, %v6367_v49  ;;  %v669_v60 = vadd.f32 0.9189385, %v653_v8  ;;  %v632_v9 = vmul.f32 0.6931472, %v2344_v46  ;;  %v646_v28 = vmul.f32 %v6431_v50, %v628_v63  ;;  %v6481_v32 = vld [vmem:[#allocation130_spill] sm:$0xff] }
  0xe4   :  { %v657_v26 = vsub.f32 %v641_v19, %v6370_v44  ;;  %v658_v51 = vsub.f32 %v642_v34, %v6372_v41  ;;  %v647_v20 = vmul.f32 %v6432_v23, %v630_v4  ;;  %v659_v36 = vsub.f32 %v643_v55, %v6376_v6  ;;  %v6456_v23 = vld [vmem:[#allocation71_spill] sm:$0xff] }
  0xe5   :  { %v660_v13 = vsub.f32 %v644_v5, %v6379_v30  ;;  %v670_v12 = vadd.f32 0.9189385, %v654_v25  ;;  %v648_v31 = vmul.f32 %v6433_v14, %v632_v9  ;;  %v661_v39 = vsub.f32 %v645_v56, %v6382_v58  ;;  %v6461_v14 = vld [vmem:[#allocation77_spill] sm:$0xff]  ;;  %v6482_v29 = vld [vmem:[#allocation79_spill] sm:$0xff] }
  0xe6   :  { %v662_v49 = vsub.f32 %v646_v28, %v6389_v35  ;;  %v671_v54 = vadd.f32 0.9189385, %v655_v3  ;;  %v663_v63 = vsub.f32 %v647_v20, %v6394_v7  ;;  %v672_v44 = vadd.f32 0.9189385, %v656_v43  ;;  %v6443_v43 = vld [vmem:[#allocation67_spill] sm:$0xff]  ;;  %v6451_v28 = vld [vmem:[#allocation69_spill] sm:$0xff] }
  0xe7   :  { %v2346_v8 = vpop.eup %2345  ;;  %v3817_v41 = vmul.f32 %v3719_v33, %v6378_v53  ;;  %v3821_v6 = vmul.f32 %v3723_v42, %v6380_v17  ;;  %v664_v19 = vsub.f32 %v648_v31, %v6398_v15  ;;  %v673_v34 = vadd.f32 0.9189385, %v657_v26  ;;  %v6454_v26 = vld [vmem:[#allocation70_spill] sm:$0xff]  ;;  %v6457_v20 = vld [vmem:[#allocation116_spill] sm:$0xff] }
  0xe8   :  { %v2348_v30 = vpop.eup %2347  ;;  %v674_v58 = vadd.f32 0.9189385, %v658_v51  ;;  %v3826_v35 = vmul.f32 %v3726_v10, %v6381_v11  ;;  %v675_v7 = vadd.f32 0.9189385, %v659_v36  ;;  %v676_v25 = vadd.f32 0.9189385, %v660_v13 }
  0xe9   :  { %v2350_v55 = vpop.eup %2349  ;;  %v3829_v27 = vadd.f32 %v668_v57, %v3664_v22  ;;  %v3832_v33 = vadd.f32 %v669_v60, %v3667_v61  ;;  %v677_v5 = vadd.f32 0.9189385, %v661_v39  ;;  %v678_v3 = vadd.f32 0.9189385, %v662_v49  ;;  %v6458_v36 = vld [vmem:[#allocation123_spill] sm:$0xff]  ;;  %v6459_v13 = vld [vmem:[#allocation72_spill] sm:$0xff] }
  0xea   :  { %v2352_v42 = vpop.eup %2351  ;;  %v3835_v15 = vadd.f32 %v670_v12, %v3670_v40  ;;  %v3838_v46 = vadd.f32 %v671_v54, %v3674_v47  ;;  %v679_v10 = vadd.f32 0.9189385, %v663_v63  ;;  %v680_v4 = vadd.f32 0.9189385, %v664_v19  ;;  %v6460_v12 = vld [vmem:[#allocation117_spill] sm:$0xff]  ;;  %v6462_v39 = vld [vmem:[#allocation118_spill] sm:$0xff] }
  0xeb   :  { %6434 = vst [vmem:[#allocation91_spill] sm:$0xff] %v3829_v27  ;;  %6435 = vst [vmem:[#allocation110_spill] sm:$0xff] %v3832_v33  ;;  %v3841_v62 = vadd.f32 %v672_v44, %v3677_v2  ;;  %v3843_v56 = vmul.f32 0.6931472, %v2346_v8  ;;  %v3846_v22 = vadd.f32 %v673_v34, %v3680_v21  ;;  %v3848_v61 = vmul.f32 0.6931472, %v2348_v30 }
  0xec   :  { %6436 = vst [vmem:[#allocation83_spill] sm:$0xff] %v3835_v15  ;;  %6437 = vst [vmem:[#allocation113_spill] sm:$0xff] %v3838_v46  ;;  %v3850_v57 = vmul.f32 0.6931472, %v2350_v55  ;;  %2353 = vlog2.f32 %v6443_v43  ;;  %v3854_v40 = vadd.f32 %v674_v58, %v3684_v45  ;;  %v3857_v47 = vadd.f32 %v675_v7, %v3687_v18  ;;  %v6447_v2 = vld [vmem:[#allocation68_spill] sm:$0xff]  ;;  %v6463_v49 = vld [vmem:[#allocation125_spill] sm:$0xff] }
  0xed   :  { %6438 = vst [vmem:[#allocation84_spill] sm:$0xff] %v3841_v62  ;;  %6439 = vst [vmem:[#allocation114_spill] sm:$0xff] %v3843_v56  ;;  %v3859_v60 = vmul.f32 0.6931472, %v2352_v42  ;;  %2355 = vlog2.f32 %v6447_v2  ;;  %v3863_v9 = vadd.f32 %v676_v25, %v3692_v48  ;;  %v3866_v21 = vadd.f32 %v677_v5, %v3695_v38  ;;  %v6464_v8 = vld [vmem:[#allocation73_spill] sm:$0xff]  ;;  %v6465_v63 = vld [vmem:[#allocation119_spill] sm:$0xff] }
  0xee   :  { %6440 = vst [vmem:[#allocation115_spill] sm:$0xff] %v3846_v22  ;;  %6441 = vst [vmem:[#allocation85_spill] sm:$0xff] %v3848_v61  ;;  %v3869_v50 = vadd.f32 %v678_v3, %v3699_v24  ;;  %2357 = vlog2.f32 %v6451_v28  ;;  %v3873_v45 = vadd.f32 %v679_v10, %v3704_v52  ;;  %v3876_v18 = vadd.f32 %v680_v4, %v3707_v1  ;;  %v6466_v44 = vld [vmem:[#allocation127_spill] sm:$0xff]  ;;  %v6467_v19 = vld [vmem:[#allocation120_spill] sm:$0xff] }
  0xef   :  { %6442 = vst [vmem:[#allocation86_spill] sm:$0xff] %v3850_v57  ;;  %6444 = vst [vmem:[#allocation87_spill] sm:$0xff] %v3854_v40  ;;  %2359 = vlog2.f32 %v6454_v26  ;;  %v788_v52 = vmul.f32 %v6458_v36, %v6457_v20  ;;  %v789_v31 = vmul.f32 %v6461_v14, %v6460_v12  ;;  %v790_v54 = vmul.f32 %v6463_v49, %v6462_v39  ;;  %v6468_v34 = vld [vmem:[#allocation78_spill] sm:$0xff]  ;;  %v6469_v55 = vld [vmem:[#allocation105_spill] sm:$0xff] }
  0xf0   :  { %6445 = vst [vmem:[#allocation121_spill] sm:$0xff] %v3857_v47  ;;  %6446 = vst [vmem:[#allocation88_spill] sm:$0xff] %v3859_v60  ;;  %2361 = vlog2.f32 %v6456_v23  ;;  %v791_v30 = vmul.f32 %v6466_v44, %v6465_v63  ;;  %v792_v58 = vmul.f32 %v6468_v34, %v6467_v19  ;;  %v793_v7 = vadd.f32 2.0, %v6469_v55  ;;  %v6470_v25 = vld [vmem:[#allocation74_spill] sm:$0xff]  ;;  %v6472_v4 = vld [vmem:[#allocation75_spill] sm:$0xff] }
  0xf1   :  { %6448 = vst [vmem:[#allocation122_spill] sm:$0xff] %v3863_v9  ;;  %6449 = vst [vmem:[#allocation92_spill] sm:$0xff] %v3866_v21  ;;  %2363 = vlog2.f32 %v6459_v13  ;;  %v6471_v42 = vld [vmem:[#allocation106_spill] sm:$0xff]  ;;  %v795_v3 = vadd.f32 2.0, %v6404_v16  ;;  %v796_v10 = vadd.f32 2.0, %v6407_v37  ;;  %v797_v43 = vadd.f32 2.0, %v6411_v59 }
  0xf2   :  { %6450 = vst [vmem:[#allocation107_spill] sm:$0xff] %v3869_v50  ;;  %6452 = vst [vmem:[#allocation124_spill] sm:$0xff] %v3873_v45  ;;  %2365 = vlog2.f32 %v6464_v8  ;;  %v794_v5 = vadd.f32 2.0, %v6471_v42  ;;  %v798_v2 = vadd.f32 2.0, %v6374_v0  ;;  %v6473_v28 = vld [vmem:[#allocation111_spill] sm:$0xff]  ;;  %v6474_v23 = vld [vmem:[#allocation76_spill] sm:$0xff] }
  0xf3   :  { %6453 = vst [vmem:[#allocation108_spill] sm:$0xff] %v3876_v18  ;;  %2367 = vlog2.f32 %v6470_v25  ;;  %v799_v26 = vadd.f32 2.0, %v6473_v28  ;;  %v6475_v36 = vld [vmem:[#allocation112_spill] sm:$0xff]  ;;  %v801_v14 = vadd.f32 2.0, %v6378_v53  ;;  %v802_v49 = vadd.f32 2.0, %v6380_v17  ;;  %v6476_v44 = vld [vmem:[#allocation134_spill] sm:$0xff] }
  0xf4   :  { %2369 = vlog2.f32 %v6472_v4  ;;  %v800_v13 = vadd.f32 2.0, %v6475_v36  ;;  %v803_v34 = vadd.f32 2.0, %v6381_v11  ;;  %v804_v25 = vadd.f32 2.0, %v6457_v20  ;;  %v6477_v24 = vld [vmem:[#allocation135_spill] sm:$0xff]  ;;  %v6479_v57 = vld [vmem:[#allocation89_spill] sm:$0xff]  ;;  %v6501_v47 = vld [vmem:[#allocation118_spill] sm:$0xff] }
  0xf5   :  { %2371 = vlog2.f32 %v6474_v23  ;;  %v805_v4 = vadd.f32 2.0, %v6460_v12  ;;  %v806_v23 = vadd.f32 2.0, %v6462_v39  ;;  %v807_v38 = vadd.f32 2.0, %v6465_v63  ;;  %v6484_v18 = vld [vmem:[#allocation131_spill] sm:$0xff]  ;;  %v6485_v63 = vld [vmem:[#allocation80_spill] sm:$0xff] }
  0xf6   :  { %v2354_v8 = vpop.eup %2353  ;;  %2373 = vlog2.f32 %v6476_v44  ;;  %v808_v48 = vadd.f32 2.0, %v6467_v19  ;;  %v3924_v44 = vmul.f32 %v793_v7, %v6479_v57  ;;  %v3927_v61 = vmul.f32 %v794_v5, %v6481_v32  ;;  %v6486_v19 = vld [vmem:[#allocation133_spill] sm:$0xff]  ;;  %v6504_v9 = vld [vmem:[#allocation120_spill] sm:$0xff]  ;;  %v2676_v46 = vld [vmem:[#allocation2 + $0x28] sm:$0xff] }
  0xf7   :  { %v2356_v1 = vpop.eup %2355  ;;  %2375 = vlog2.f32 %v6477_v24  ;;  %v3921_v27 = vmul.f32 0.6931472, %v2354_v8  ;;  %v3930_v56 = vmul.f32 %v795_v3, %v6482_v29  ;;  %v812_v45 = vmul.f32 %v796_v10, %v6484_v18  ;;  %v6488_v57 = vld [vmem:[#allocation81_spill] sm:$0xff] }
  0xf8   :  { %v2358_v60 = vpop.eup %2357  ;;  %6480 = vst [vmem:[#allocation93_spill] sm:$0xff] %v3924_v44  ;;  %v3932_v24 = vmul.f32 0.6931472, %v2356_v1  ;;  %v813_v39 = vmul.f32 %v797_v43, %v6485_v63  ;;  %v814_v12 = vmul.f32 %v798_v2, %v6486_v19  ;;  %v815_v7 = vmul.f32 %v799_v26, %v6488_v57  ;;  %v6489_v44 = vld [vmem:[#allocation90_spill] sm:$0xff] }
  0xf9   :  { %6478 = vst [vmem:[#allocation126_spill] sm:$0xff] %v3921_v27  ;;  %v2360_v51 = vpop.eup %2359  ;;  %v3937_v50 = vmul.f32 0.6931472, %v2358_v60  ;;  %v816_v32 = vmul.f32 %v800_v13, %v6489_v44  ;;  %v817_v5 = vmul.f32 %v801_v14, %v3817_v41  ;;  %v818_v1 = vmul.f32 %v802_v49, %v3821_v6 }
  0xfa   :  { %6483 = vst [vmem:[#allocation109_spill] sm:$0xff] %v3932_v24  ;;  %v2362_v8 = vpop.eup %2361  ;;  %v3942_v3 = vmul.f32 0.6931472, %v2360_v51  ;;  %v819_v18 = vmul.f32 %v803_v34, %v3826_v35  ;;  %v820_v10 = vmul.f32 %v804_v25, %v788_v52  ;;  %v821_v19 = vmul.f32 %v805_v4, %v789_v31 }
  0xfb   :  { %6487 = vst [vmem:[#allocation128_spill] sm:$0xff] %v3937_v50  ;;  %v2364_v29 = vpop.eup %2363  ;;  %v3946_v43 = vmul.f32 0.6931472, %v2362_v8  ;;  %v822_v2 = vmul.f32 %v806_v23, %v790_v54  ;;  %v823_v51 = vmul.f32 %v807_v38, %v791_v30  ;;  %v824_v14 = vmul.f32 %v808_v48, %v792_v58 }
  0xfc   :  { %6490 = vst [vmem:[#allocation94_spill] sm:$0xff] %v3942_v3  ;;  %v2366_v63 = vpop.eup %2365  ;;  %v3950_v13 = vmul.f32 0.6931472, %v2364_v29  ;;  %v825_v52 = vadd.f32 3.0, %v6469_v55  ;;  %v826_v34 = vadd.f32 3.0, %v6471_v42  ;;  %v827_v4 = vadd.f32 3.0, %v6404_v16 }
  0xfd   :  { %6491 = vst [vmem:[#allocation16_spill] sm:$0xff] %v3946_v43  ;;  %v2368_v26 = vpop.eup %2367  ;;  %v3954_v49 = vmul.f32 0.6931472, %v2366_v63  ;;  %v828_v48 = vadd.f32 3.0, %v6407_v37  ;;  %v829_v44 = vadd.f32 3.0, %v6411_v59  ;;  %v830_v63 = vadd.f32 3.0, %v6374_v0 }
  0xfe   :  { %6492 = vst [vmem:[#allocation95_spill] sm:$0xff] %v3950_v13  ;;  %v2370_v6 = vpop.eup %2369  ;;  %v3960_v54 = vmul.f32 0.6931472, %v2368_v26  ;;  %v831_v26 = vadd.f32 3.0, %v6473_v28  ;;  %v833_v23 = vadd.f32 3.0, %v6378_v53  ;;  %v834_v35 = vadd.f32 3.0, %v6380_v17 }
  0xff   :  { %6493 = vst [vmem:[#allocation64_spill] sm:$0xff] %v3954_v49  ;;  %v2372_v31 = vpop.eup %2371  ;;  %v3966_v30 = vmul.f32 0.6931472, %v2370_v6  ;;  %v835_v29 = vadd.f32 3.0, %v6381_v11  ;;  %v836_v41 = vadd.f32 3.0, %v6457_v20  ;;  %v6500_v6 = vld [vmem:[#allocation117_spill] sm:$0xff]  ;;  %v843_v13 = vmul.f32 %v827_v4, %v3930_v56 }
 0x100   :  { %6494 = vst [vmem:[#allocation96_spill] sm:$0xff] %v3960_v54  ;;  %v2374_v38 = vpop.eup %2373  ;;  %v3968_v58 = vmul.f32 0.6931472, %v2372_v31  ;;  %v832_v31 = vadd.f32 3.0, %v6475_v36  ;;  %v837_v49 = vadd.f32 3.0, %v6500_v6  ;;  %v838_v40 = vadd.f32 3.0, %v6501_v47 }
 0x101   :  { %6495 = vst [vmem:[#allocation65_spill] sm:$0xff] %v3966_v30  ;;  %v2376_v8 = vpop.eup %2375  ;;  %v3973_v57 = vmul.f32 0.6931472, %v2374_v38  ;;  %v6503_v38 = vld [vmem:[#allocation119_spill] sm:$0xff]  ;;  %v840_v3 = vadd.f32 3.0, %v6504_v9  ;;  %v6505_v62 = vld [vmem:[#allocation93_spill] sm:$0xff]  ;;  %v845_v60 = vmul.f32 %v829_v44, %v813_v39  ;;  %v846_v30 = vmul.f32 %v830_v63, %v814_v12 }
 0x102   :  { %6496 = vst [vmem:[#allocation97_spill] sm:$0xff] %v3968_v58  ;;  %v3979_v25 = vmul.f32 0.6931472, %v2376_v8  ;;  %v839_v54 = vadd.f32 3.0, %v6503_v38  ;;  %v841_v50 = vmul.f32 %v825_v52, %v6505_v62  ;;  %v842_v8 = vmul.f32 %v826_v34, %v3927_v61 }
 0x103   :  { %6497 = vst [vmem:[#allocation98_spill] sm:$0xff] %v3973_v57  ;;  %v844_v58 = vmul.f32 %v828_v48, %v812_v45  ;;  %v847_v21 = vmul.f32 %v831_v26, %v815_v7  ;;  %v848_v15 = vmul.f32 %v832_v31, %v816_v32  ;;  %v849_v27 = vmul.f32 %v833_v23, %v817_v5 }
 0x104   :  { %6498 = vst [vmem:[#allocation66_spill] sm:$0xff] %v3979_v25  ;;  %v850_v22 = vmul.f32 %v834_v35, %v818_v1  ;;  %v851_v57 = vmul.f32 %v835_v29, %v819_v18  ;;  %v852_v43 = vmul.f32 %v836_v41, %v820_v10  ;;  %v853_v33 = vmul.f32 %v837_v49, %v821_v19  ;;  %v6507_v10 = vld [vmem:[#allocation119_spill] sm:$0xff]  ;;  %v2674_v25 = vld [vmem:[#allocation2 + $0x20] sm:$0xff] }
 0x105   :  { %v854_v9 = vmul.f32 %v838_v40, %v822_v2  ;;  %v855_v38 = vmul.f32 %v839_v54, %v823_v51  ;;  %v856_v62 = vmul.f32 %v840_v3, %v824_v14  ;;  %v857_v52 = vadd.f32 4.0, %v6469_v55  ;;  %v6508_v2 = vld [vmem:[#allocation120_spill] sm:$0xff] }
 0x106   :  { %v858_v24 = vadd.f32 4.0, %v6471_v42  ;;  %v859_v61 = vadd.f32 4.0, %v6404_v16  ;;  %v860_v56 = vadd.f32 4.0, %v6407_v37  ;;  %v861_v45 = vadd.f32 4.0, %v6411_v59 }
 0x107   :  { %v862_v12 = vadd.f32 4.0, %v6374_v0  ;;  %v863_v39 = vadd.f32 4.0, %v6473_v28  ;;  %v864_v7 = vadd.f32 4.0, %v6475_v36  ;;  %v865_v40 = vadd.f32 4.0, %v6378_v53 }
 0x108   :  { %v866_v32 = vadd.f32 4.0, %v6380_v17  ;;  %v867_v5 = vadd.f32 4.0, %v6381_v11  ;;  %v868_v3 = vadd.f32 4.0, %v6457_v20  ;;  %v869_v1 = vadd.f32 4.0, %v6500_v6 }
 0x109   :  { %v870_v18 = vadd.f32 4.0, %v6501_v47  ;;  %v871_v19 = vadd.f32 4.0, %v6507_v10  ;;  %v872_v41 = vadd.f32 4.0, %v6508_v2  ;;  %v4021_v51 = vmul.f32 %v857_v52, %v841_v50 }
 0x10a   :  { %v4023_v14 = vmul.f32 %v858_v24, %v842_v8  ;;  %v4025_v49 = vmul.f32 %v859_v61, %v843_v13  ;;  %v4027_v35 = vmul.f32 %v860_v56, %v844_v58  ;;  %v4029_v34 = vmul.f32 %v861_v45, %v845_v60  ;;  %v2665_v45 = vld [vmem:[#allocation7] sm:$0xff] }
 0x10b   :  { %6509 = vst [vmem:[#allocation99_spill] sm:$0xff] %v4021_v51  ;;  %v4031_v54 = vmul.f32 %v862_v12, %v846_v30  ;;  %v4033_v4 = vmul.f32 %v863_v39, %v847_v21  ;;  %v4036_v48 = vadd.f32 5.0, %v6469_v55  ;;  %v4038_v23 = vmul.f32 %v864_v7, %v848_v15  ;;  %v2666_v12 = vld [vmem:[#allocation2] sm:$0xff]  ;;  %v2667_v7 = vld [vmem:[#allocation7 + $0x8] sm:$0xff] }
 0x10c   :  { %6510 = vst [vmem:[#allocation100_spill] sm:$0xff] %v4023_v14  ;;  %6511 = vst [vmem:[#allocation101_spill] sm:$0xff] %v4025_v49  ;;  %v4040_v44 = vmul.f32 %v865_v40, %v849_v27  ;;  %v4042_v50 = vmul.f32 %v866_v32, %v850_v22  ;;  %v4045_v24 = vadd.f32 5.0, %v6471_v42  ;;  %v4047_v13 = vmul.f32 %v867_v5, %v851_v57  ;;  %v2668_v40 = vld [vmem:[#allocation2 + $0x8] sm:$0xff] }
 0x10d   :  { %6512 = vst [vmem:[#allocation102_spill] sm:$0xff] %v4027_v35  ;;  %6513 = vst [vmem:[#allocation103_spill] sm:$0xff] %v4029_v34  ;;  %v4049_v60 = vmul.f32 %v868_v3, %v852_v43  ;;  %v4051_v30 = vmul.f32 %v869_v1, %v853_v33  ;;  %v4054_v21 = vadd.f32 5.0, %v6404_v16  ;;  %v4056_v55 = vmul.f32 %v870_v18, %v854_v9  ;;  %v2669_v3 = vld [vmem:[#allocation7 + $0x10] sm:$0xff]  ;;  %v2687_v34 = vld [vmem:[#allocation7 + $0x58] sm:$0xff] }
 0x10e   :  { %6514 = vst [vmem:[#allocation104_spill] sm:$0xff] %v4031_v54  ;;  %6515 = vst [vmem:[#allocation67_spill] sm:$0xff] %v4033_v4  ;;  %v4058_v15 = vmul.f32 %v871_v19, %v855_v38  ;;  %v4060_v27 = vmul.f32 %v872_v41, %v856_v62  ;;  %v4063_v22 = vadd.f32 5.0, %v6407_v37  ;;  %v4066_v42 = vadd.f32 5.0, %v6411_v59  ;;  %v2670_v1 = vld [vmem:[#allocation2 + $0x10] sm:$0xff]  ;;  %v2672_v19 = vld [vmem:[#allocation2 + $0x18] sm:$0xff] }
 0x10f   :  { %6516 = vst [vmem:[#allocation68_spill] sm:$0xff] %v4038_v23  ;;  %6517 = vst [vmem:[#allocation69_spill] sm:$0xff] %v4040_v44  ;;  %v4069_v43 = vadd.f32 5.0, %v6374_v0  ;;  %v4072_v33 = vadd.f32 5.0, %v6473_v28  ;;  %2377 = vrcp.f32 %v4036_v48  ;;  %v4076_v16 = vadd.f32 5.0, %v6475_v36  ;;  %v2673_v41 = vld [vmem:[#allocation7 + $0x20] sm:$0xff] }
 0x110   :  { %6518 = vst [vmem:[#allocation70_spill] sm:$0xff] %v4042_v50  ;;  %6519 = vst [vmem:[#allocation71_spill] sm:$0xff] %v4047_v13  ;;  %v4079_v9 = vadd.f32 5.0, %v6378_v53  ;;  %v4082_v37 = vadd.f32 5.0, %v6380_v17  ;;  %2379 = vrcp.f32 %v4045_v24  ;;  %v4086_v59 = vadd.f32 5.0, %v6381_v11  ;;  %v2683_v13 = vld [vmem:[#allocation7 + $0x48] sm:$0xff] }
 0x111   :  { %6520 = vst [vmem:[#allocation116_spill] sm:$0xff] %v4049_v60  ;;  %6521 = vst [vmem:[#allocation123_spill] sm:$0xff] %v4051_v30  ;;  %v4089_v0 = vadd.f32 5.0, %v6457_v20  ;;  %v4092_v28 = vadd.f32 5.0, %v6500_v6  ;;  %2381 = vrcp.f32 %v4054_v21  ;;  %v4096_v36 = vadd.f32 5.0, %v6501_v47  ;;  %v2681_v30 = vld [vmem:[#allocation7 + $0x40] sm:$0xff] }
 0x112   :  { %6522 = vst [vmem:[#allocation72_spill] sm:$0xff] %v4056_v55  ;;  %6523 = vst [vmem:[#allocation77_spill] sm:$0xff] %v4058_v15  ;;  %v4099_v53 = vadd.f32 5.0, %v6507_v10  ;;  %v4102_v17 = vadd.f32 5.0, %v6508_v2  ;;  %2383 = vrcp.f32 %v4063_v22  ;;  %v4107_v11 = vadd.f32 -0.5, %v4036_v48  ;;  %v2671_v10 = vld [vmem:[#allocation7 + $0x18] sm:$0xff] }
 0x113   :  { %6524 = vst [vmem:[#allocation125_spill] sm:$0xff] %v4060_v27  ;;  %6525 = vst [vmem:[#allocation73_spill] sm:$0xff] %v4069_v43  ;;  %2385 = vrcp.f32 %v4066_v42  ;;  %v4110_v20 = vadd.f32 -0.5, %v4045_v24  ;;  %v4113_v58 = vadd.f32 -0.5, %v4054_v21  ;;  %v4117_v47 = vadd.f32 -0.5, %v4063_v22  ;;  %v2678_v27 = vld [vmem:[#allocation2 + $0x30] sm:$0xff] }
 0x114   :  { %6526 = vst [vmem:[#allocation127_spill] sm:$0xff] %v4072_v33  ;;  %6527 = vst [vmem:[#allocation78_spill] sm:$0xff] %v4076_v16  ;;  %2387 = vrcp.f32 %v4069_v43  ;;  %v4120_v57 = vadd.f32 -0.5, %v4066_v42  ;;  %v4123_v29 = vadd.f32 -0.5, %v4069_v43  ;;  %v4127_v63 = vadd.f32 -0.5, %v4072_v33  ;;  %v2680_v15 = vld [vmem:[#allocation2 + $0x38] sm:$0xff] }
 0x115   :  { %6528 = vst [vmem:[#allocation105_spill] sm:$0xff] %v4079_v9  ;;  %6529 = vst [vmem:[#allocation74_spill] sm:$0xff] %v4082_v37  ;;  %2389 = vrcp.f32 %v4072_v33  ;;  %v4130_v26 = vadd.f32 -0.5, %v4076_v16  ;;  %v4133_v6 = vadd.f32 -0.5, %v4079_v9  ;;  %v4137_v31 = vadd.f32 -0.5, %v4082_v37  ;;  %v2682_v60 = vld [vmem:[#allocation2 + $0x40] sm:$0xff] }
 0x116   :  { %6530 = vst [vmem:[#allocation106_spill] sm:$0xff] %v4086_v59  ;;  %6531 = vst [vmem:[#allocation75_spill] sm:$0xff] %v4089_v0  ;;  %2391 = vrcp.f32 %v4076_v16  ;;  %v4140_v38 = vadd.f32 -0.5, %v4086_v59  ;;  %v4143_v8 = vadd.f32 -0.5, %v4089_v0  ;;  %v4147_v62 = vadd.f32 -0.5, %v4092_v28  ;;  %v2684_v50 = vld [vmem:[#allocation2 + $0x48] sm:$0xff] }
 0x117   :  { %6532 = vst [vmem:[#allocation111_spill] sm:$0xff] %v4092_v28  ;;  %6533 = vst [vmem:[#allocation76_spill] sm:$0xff] %v4096_v36  ;;  %2393 = vrcp.f32 %v4079_v9  ;;  %v4150_v52 = vadd.f32 -0.5, %v4096_v36  ;;  %v4153_v61 = vadd.f32 -0.5, %v4099_v53  ;;  %v4157_v56 = vadd.f32 -0.5, %v4102_v17  ;;  %v2686_v23 = vld [vmem:[#allocation2 + $0x50] sm:$0xff] }
 0x118   :  { %6534 = vst [vmem:[#allocation112_spill] sm:$0xff] %v4099_v53  ;;  %6535 = vst [vmem:[#allocation134_spill] sm:$0xff] %v4102_v17  ;;  %2395 = vrcp.f32 %v4082_v37  ;;  %v4159_v39 = vadd.f32 %v2666_v12, %v2665_v45  ;;  %v4161_v32 = vadd.f32 %v2668_v40, %v2667_v7  ;;  %v4166_v18 = vadd.f32 %v2670_v1, %v2669_v3  ;;  %v2675_v40 = vld [vmem:[#allocation7 + $0x28] sm:$0xff]  ;;  %v2677_v1 = vld [vmem:[#allocation7 + $0x30] sm:$0xff] }
 0x119   :  { %6536 = vst [vmem:[#allocation135_spill] sm:$0xff] %v4107_v11  ;;  %6537 = vst [vmem:[#allocation89_spill] sm:$0xff] %v4110_v20  ;;  %v4163_v5 = vpop.eup %2377  ;;  %2397 = vrcp.f32 %v4086_v59  ;;  %v4168_v2 = vadd.f32 %v2672_v19, %v2671_v10  ;;  %v4170_v45 = vadd.f32 %v2674_v25, %v2673_v41  ;;  %v4179_v3 = vadd.f32 %v2676_v46, %v2675_v40  ;;  %v2679_v41 = vld [vmem:[#allocation7 + $0x38] sm:$0xff]  ;;  %v2694_v43 = vld [vmem:[#allocation2 + $0x70] sm:$0xff] }
 0x11a   :  { %6538 = vst [vmem:[#allocation130_spill] sm:$0xff] %v4113_v58  ;;  %6539 = vst [vmem:[#allocation79_spill] sm:$0xff] %v4117_v47  ;;  %v4172_v12 = vpop.eup %2379  ;;  %2399 = vrcp.f32 %v4089_v0  ;;  %v4177_v7 = vmul.f32 %v4163_v5, %v4163_v5  ;;  %v4181_v10 = vadd.f32 %v2678_v27, %v2677_v1  ;;  %v4190_v55 = vadd.f32 %v2680_v15, %v2679_v41  ;;  %v2685_v41 = vld [vmem:[#allocation7 + $0x50] sm:$0xff] }
 0x11b   :  { %6540 = vst [vmem:[#allocation131_spill] sm:$0xff] %v4120_v57  ;;  %6541 = vst [vmem:[#allocation80_spill] sm:$0xff] %v4123_v29  ;;  %v4183_v19 = vpop.eup %2381  ;;  %2401 = vrcp.f32 %v4092_v28  ;;  %v4188_v25 = vmul.f32 %v4172_v12, %v4172_v12  ;;  %v4192_v46 = vadd.f32 %v2682_v60, %v2681_v30  ;;  %v4202_v44 = vadd.f32 %v2684_v50, %v2683_v13 }
 0x11c   :  { %6542 = vst [vmem:[#allocation133_spill] sm:$0xff] %v4127_v63  ;;  %6543 = vst [vmem:[#allocation81_spill] sm:$0xff] %v4130_v26  ;;  %v4194_v40 = vpop.eup %2383  ;;  %2403 = vrcp.f32 %v4096_v36  ;;  %v4199_v27 = vmul.f32 %v4183_v19, %v4183_v19  ;;  %v937_v1 = vmul.f32 -0.0005952381, %v4177_v7  ;;  %v4212_v4 = vadd.f32 %v2686_v23, %v2685_v41  ;;  %v2689_v41 = vld [vmem:[#allocation7 + $0x60] sm:$0xff] }
 0x11d   :  { %6544 = vst [vmem:[#allocation90_spill] sm:$0xff] %v4133_v6  ;;  %6545 = vst [vmem:[#allocation117_spill] sm:$0xff] %v4137_v31  ;;  %v4204_v15 = vpop.eup %2385  ;;  %2405 = vrcp.f32 %v4099_v53  ;;  %v4209_v60 = vmul.f32 %v4194_v40, %v4194_v40  ;;  %v938_v30 = vmul.f32 -0.0005952381, %v4188_v25  ;;  %v2692_v31 = vld [vmem:[#allocation2 + $0x68] sm:$0xff] }
 0x11e   :  { %6546 = vst [vmem:[#allocation118_spill] sm:$0xff] %v4140_v38  ;;  %6547 = vst [vmem:[#allocation93_spill] sm:$0xff] %v4143_v8  ;;  %v4214_v54 = vpop.eup %2387  ;;  %2407 = vrcp.f32 %v4102_v17  ;;  %v4219_v50 = vmul.f32 %v4204_v15, %v4204_v15  ;;  %v939_v13 = vmul.f32 -0.0005952381, %v4199_v27  ;;  %v2691_v38 = vld [vmem:[#allocation7 + $0x68] sm:$0xff] }
 0x11f   :  { %6548 = vst [vmem:[#allocation119_spill] sm:$0xff] %v4147_v62  ;;  %6549 = vst [vmem:[#allocation120_spill] sm:$0xff] %v4150_v52  ;;  %v4224_v52 = vpop.eup %2389  ;;  %v4228_v23 = vmul.f32 %v4214_v54, %v4214_v54  ;;  %v2690_v62 = vld [vmem:[#allocation2 + $0x60] sm:$0xff]  ;;  %v4232_v6 = vadd.f32 %v2692_v31, %v2691_v38  ;;  %v4235_v26 = vadd.f32 1e-10, %v4159_v39  ;;  %2409 = vlog2.f32 %v4036_v48 }
 0x120   :  { %6550 = vst [vmem:[#allocation136_spill] sm:$0xff] %v4153_v61  ;;  %6551 = vst [vmem:[#allocation137_spill] sm:$0xff] %v4157_v56  ;;  %v2688_v56 = vld [vmem:[#allocation2 + $0x58] sm:$0xff]  ;;  %v4230_v8 = vadd.f32 %v2690_v62, %v2689_v41  ;;  %v4237_v63 = vpop.eup %2391  ;;  %v953_v35 = vadd.f32 0.0007936508, %v937_v1  ;;  %2411 = vlog2.f32 %v4045_v24 }
 0x121   :  { %6552 = vst [vmem:[#allocation138_spill] sm:$0xff] %v4159_v39  ;;  %6553 = vst [vmem:[#allocation139_spill] sm:$0xff] %v4161_v32  ;;  %v4222_v61 = vadd.f32 %v2688_v56, %v2687_v34  ;;  %v4241_v34 = vmul.f32 %v4224_v52, %v4224_v52  ;;  %v940_v56 = vmul.f32 -0.0005952381, %v4209_v60  ;;  %v4245_v29 = vadd.f32 1e-10, %v4161_v32  ;;  %v4247_v62 = vpop.eup %2393 }
 0x122   :  { %6554 = vst [vmem:[#allocation140_spill] sm:$0xff] %v4166_v18  ;;  %6555 = vst [vmem:[#allocation141_spill] sm:$0xff] %v4168_v2  ;;  %v4251_v31 = vmul.f32 %v4237_v63, %v4237_v63  ;;  %v941_v38 = vmul.f32 -0.0005952381, %v4219_v50  ;;  %v954_v41 = vadd.f32 0.0007936508, %v938_v30  ;;  %v4257_v49 = vpop.eup %2395  ;;  %v4261_v1 = vmul.f32 %v4247_v62, %v4247_v62 }
 0x123   :  { %6556 = vst [vmem:[#allocation142_spill] sm:$0xff] %v4170_v45  ;;  %6557 = vst [vmem:[#allocation143_spill] sm:$0xff] %v4179_v3  ;;  %v4255_v39 = vadd.f32 1e-10, %v4166_v18  ;;  %v942_v32 = vmul.f32 -0.0005952381, %v4228_v23  ;;  %v4267_v51 = vpop.eup %2397  ;;  %v4271_v30 = vmul.f32 %v4257_v49, %v4257_v49  ;;  %2413 = vlog2.f32 %v4054_v21 }
 0x124   :  { %6558 = vst [vmem:[#allocation144_spill] sm:$0xff] %v4181_v10  ;;  %6559 = vst [vmem:[#allocation145_spill] sm:$0xff] %v4190_v55  ;;  %v955_v57 = vadd.f32 0.0007936508, %v939_v13  ;;  %v4265_v14 = vadd.f32 1e-10, %v4168_v2  ;;  %v4278_v17 = vpop.eup %2399  ;;  %v4282_v13 = vmul.f32 %v4267_v51, %v4267_v51  ;;  %v970_v36 = vmul.f32 %v954_v41, %v4188_v25 }
 0x125   :  { %6560 = vst [vmem:[#allocation146_spill] sm:$0xff] %v4192_v46  ;;  %6561 = vst [vmem:[#allocation147_spill] sm:$0xff] %v4202_v44  ;;  %v943_v18 = vmul.f32 -0.0005952381, %v4241_v34  ;;  %v4276_v47 = vadd.f32 1e-10, %v4170_v45  ;;  %v4290_v53 = vmul.f32 %v4278_v17, %v4278_v17  ;;  %2415 = vlog2.f32 %v4063_v22 }
 0x126   :  { %6562 = vst [vmem:[#allocation148_spill] sm:$0xff] %v4212_v4  ;;  %6563 = vst [vmem:[#allocation149_spill] sm:$0xff] %v4222_v61  ;;  %v945_v2 = vmul.f32 -0.0005952381, %v4261_v1  ;;  %v946_v45 = vmul.f32 -0.0005952381, %v4271_v30  ;;  %v971_v61 = vmul.f32 %v955_v57, %v4199_v27  ;;  %2417 = vlog2.f32 %v4066_v42 }
 0x127   :  { %6564 = vst [vmem:[#allocation150_spill] sm:$0xff] %v4230_v8  ;;  %6565 = vst [vmem:[#allocation151_spill] sm:$0xff] %v4232_v6  ;;  %v959_v41 = vadd.f32 0.0007936508, %v943_v18 }
 0x128   :  { %6566 = vst [vmem:[#allocation152_spill] sm:$0xff] %v4235_v26  ;;  %6567 = vst [vmem:[#allocation153_spill] sm:$0xff] %v4245_v29  ;;  %v969_v29 = vmul.f32 %v953_v35, %v4177_v7  ;;  %v4286_v26 = vpop.eup %2401  ;;  %v958_v35 = vadd.f32 0.0007936508, %v942_v32  ;;  %v961_v55 = vadd.f32 0.0007936508, %v945_v2 }
 0x129   :  { %6568 = vst [vmem:[#allocation154_spill] sm:$0xff] %v4255_v39  ;;  %6569 = vst [vmem:[#allocation155_spill] sm:$0xff] %v4265_v14  ;;  %v944_v39 = vmul.f32 -0.0005952381, %v4251_v31  ;;  %v956_v14 = vadd.f32 0.0007936508, %v940_v56  ;;  %v4294_v6 = vpop.eup %2403  ;;  %v4298_v8 = vmul.f32 %v4286_v26, %v4286_v26  ;;  %v975_v2 = vmul.f32 %v959_v41, %v4241_v34 }
 0x12a   :  { %6570 = vst [vmem:[#allocation156_spill] sm:$0xff] %v4276_v47  ;;  %6571 = vst [vmem:[#allocation157_spill] sm:$0xff] %v4278_v17  ;;  %v957_v47 = vadd.f32 0.0007936508, %v941_v38  ;;  %v947_v56 = vmul.f32 -0.0005952381, %v4282_v13  ;;  %v4302_v28 = vpop.eup %2405  ;;  %v4306_v4 = vmul.f32 %v4294_v6, %v4294_v6  ;;  %v974_v16 = vmul.f32 %v958_v35, %v4228_v23 }
 0x12b   :  { %6572 = vst [vmem:[#allocation158_spill] sm:$0xff] %v4286_v26  ;;  %6573 = vst [vmem:[#allocation159_spill] sm:$0xff] %v4294_v6  ;;  %v948_v38 = vmul.f32 -0.0005952381, %v4290_v53  ;;  %v960_v0 = vadd.f32 0.0007936508, %v944_v39  ;;  %v4309_v44 = vpop.eup %2407  ;;  %v4313_v46 = vmul.f32 %v4302_v28, %v4302_v28  ;;  %v972_v37 = vmul.f32 %v956_v14, %v4209_v60 }
 0x12c   :  { %6574 = vst [vmem:[#allocation160_spill] sm:$0xff] %v4302_v28  ;;  %6575 = vst [vmem:[#allocation161_spill] sm:$0xff] %v4309_v44  ;;  %v949_v32 = vmul.f32 -0.0005952381, %v4298_v8  ;;  %v962_v57 = vadd.f32 0.0007936508, %v946_v45  ;;  %v936_v59 = vmul.f32 %v4309_v44, %v4309_v44  ;;  %v973_v20 = vmul.f32 %v957_v47, %v4219_v50 }
 0x12d   :  { %v950_v10 = vmul.f32 -0.0005952381, %v4306_v4  ;;  %v963_v3 = vadd.f32 0.0007936508, %v947_v56  ;;  %v964_v58 = vadd.f32 0.0007936508, %v948_v38  ;;  %v976_v44 = vmul.f32 %v960_v0, %v4251_v31 }
 0x12e   :  { %v951_v18 = vmul.f32 -0.0005952381, %v4313_v46  ;;  %v965_v39 = vadd.f32 0.0007936508, %v949_v32  ;;  %v952_v9 = vmul.f32 -0.0005952381, %v936_v59  ;;  %v977_v6 = vmul.f32 %v961_v55, %v4261_v1 }
 0x12f   :  { %v966_v28 = vadd.f32 0.0007936508, %v950_v10  ;;  %v978_v56 = vmul.f32 %v962_v57, %v4271_v30  ;;  %v979_v32 = vmul.f32 %v963_v3, %v4282_v13  ;;  %v980_v14 = vmul.f32 %v964_v58, %v4290_v53 }
 0x130   :  { %v967_v45 = vadd.f32 0.0007936508, %v951_v18  ;;  %v968_v38 = vadd.f32 0.0007936508, %v952_v9  ;;  %v985_v33 = vadd.f32 -0.0027777778, %v969_v29  ;;  %v981_v47 = vmul.f32 %v965_v39, %v4298_v8 }
 0x131   :  { %v982_v10 = vmul.f32 %v966_v28, %v4306_v4  ;;  %v986_v35 = vadd.f32 -0.0027777778, %v970_v36  ;;  %v987_v26 = vadd.f32 -0.0027777778, %v971_v61  ;;  %v988_v0 = vadd.f32 -0.0027777778, %v972_v37 }
 0x132   :  { %v983_v41 = vmul.f32 %v967_v45, %v4313_v46  ;;  %v984_v18 = vmul.f32 %v968_v38, %v936_v59  ;;  %v989_v17 = vadd.f32 -0.0027777778, %v973_v20  ;;  %v990_v55 = vadd.f32 -0.0027777778, %v974_v16  ;;  %v2693_v29 = vld [vmem:[#allocation7 + $0x70] sm:$0xff] }
 0x133   :  { %v991_v11 = vadd.f32 -0.0027777778, %v975_v2  ;;  %v992_v57 = vadd.f32 -0.0027777778, %v976_v44  ;;  %v993_v9 = vadd.f32 -0.0027777778, %v977_v6  ;;  %v4333_v39 = vadd.f32 %v2694_v43, %v2693_v29 }
 0x134   :  { %v994_v3 = vadd.f32 -0.0027777778, %v978_v56  ;;  %v995_v58 = vadd.f32 -0.0027777778, %v979_v32  ;;  %v996_v28 = vadd.f32 -0.0027777778, %v980_v14  ;;  %v1001_v45 = vmul.f32 %v985_v33, %v4177_v7 }
 0x135   :  { %6576 = vst [vmem:[#allocation162_spill] sm:$0xff] %v4333_v39  ;;  %v997_v36 = vadd.f32 -0.0027777778, %v981_v47  ;;  %v998_v61 = vadd.f32 -0.0027777778, %v982_v10  ;;  %v1002_v16 = vmul.f32 %v986_v35, %v4188_v25  ;;  %v1003_v44 = vmul.f32 %v987_v26, %v4199_v27  ;;  %v2696_v47 = vld [vmem:[#allocation2 + $0x78] sm:$0xff]  ;;  %v2410_v10 = vpop.eup %2409 }
 0x136   :  { %v999_v38 = vadd.f32 -0.0027777778, %v983_v41  ;;  %v1000_v37 = vadd.f32 -0.0027777778, %v984_v18  ;;  %v1004_v20 = vmul.f32 %v988_v0, %v4209_v60  ;;  %v1005_v6 = vmul.f32 %v989_v17, %v4219_v50 }
 0x137   :  { %v1006_v2 = vmul.f32 %v990_v55, %v4228_v23  ;;  %v1007_v43 = vmul.f32 %v991_v11, %v4241_v34  ;;  %v1008_v56 = vmul.f32 %v992_v57, %v4251_v31  ;;  %v1009_v32 = vmul.f32 %v993_v9, %v4261_v1 }
 0x138   :  { %v1010_v33 = vmul.f32 %v994_v3, %v4271_v30  ;;  %v1011_v7 = vmul.f32 %v995_v58, %v4282_v13  ;;  %v1012_v26 = vmul.f32 %v996_v28, %v4290_v53  ;;  %v1017_v25 = vadd.f32 0.083333336, %v1001_v45  ;;  %v2695_v13 = vld [vmem:[#allocation7 + $0x78] sm:$0xff] }
 0x139   :  { %v1013_v17 = vmul.f32 %v997_v36, %v4298_v8  ;;  %v1014_v27 = vmul.f32 %v998_v61, %v4306_v4  ;;  %v1015_v11 = vmul.f32 %v999_v38, %v4313_v46  ;;  %v1018_v60 = vadd.f32 0.083333336, %v1002_v16  ;;  %v6578_v36 = vld [vmem:[#allocation73_spill] sm:$0xff]  ;;  %v6579_v61 = vld [vmem:[#allocation135_spill] sm:$0xff] }
 0x13a   :  { %v1016_v50 = vmul.f32 %v1000_v37, %v936_v59  ;;  %v1019_v23 = vadd.f32 0.083333336, %v1003_v44  ;;  %v1020_v34 = vadd.f32 0.083333336, %v1004_v20  ;;  %v1021_v31 = vadd.f32 0.083333336, %v1005_v6 }
 0x13b   :  { %v1022_v1 = vadd.f32 0.083333336, %v1006_v2  ;;  %v1023_v30 = vadd.f32 0.083333336, %v1007_v43  ;;  %v1024_v14 = vadd.f32 0.083333336, %v1008_v56  ;;  %v4352_v53 = vadd.f32 %v2696_v47, %v2695_v13 }
 0x13c   :  { %v1025_v35 = vadd.f32 0.083333336, %v1009_v32  ;;  %v1026_v41 = vadd.f32 0.083333336, %v1010_v33  ;;  %v1027_v8 = vadd.f32 0.083333336, %v1011_v7  ;;  %v4355_v4 = vmul.f32 %v4163_v5, %v1017_v25 }
 0x13d   :  { %6577 = vst [vmem:[#allocation163_spill] sm:$0xff] %v4352_v53  ;;  %v1028_v46 = vadd.f32 0.083333336, %v1012_v26  ;;  %v1029_v18 = vadd.f32 0.083333336, %v1013_v17  ;;  %v4358_v0 = vmul.f32 %v4172_v12, %v1018_v60  ;;  %v4361_v9 = vmul.f32 %v4183_v19, %v1019_v23  ;;  %v6580_v38 = vld [vmem:[#allocation157_spill] sm:$0xff] }
 0x13e   :  { %v1030_v59 = vadd.f32 0.083333336, %v1014_v27  ;;  %v1031_v55 = vadd.f32 0.083333336, %v1015_v11  ;;  %v1032_v57 = vadd.f32 0.083333336, %v1016_v50  ;;  %v4364_v3 = vmul.f32 %v4194_v40, %v1020_v34  ;;  %v2412_v40 = vpop.eup %2411 }
 0x13f   :  { %v4367_v58 = vmul.f32 %v4204_v15, %v1021_v31  ;;  %v4370_v5 = vmul.f32 %v4214_v54, %v1022_v1  ;;  %v1066_v29 = vmul.f32 0.6931472, %v2410_v10  ;;  %v4374_v12 = vmul.f32 %v4224_v52, %v1023_v30  ;;  %v2414_v45 = vpop.eup %2413  ;;  %v6581_v37 = vld [vmem:[#allocation158_spill] sm:$0xff]  ;;  %v6582_v44 = vld [vmem:[#allocation127_spill] sm:$0xff]  ;;  %v6585_v43 = vld [vmem:[#allocation160_spill] sm:$0xff] }
 0x140   :  { %v4377_v28 = vmul.f32 %v4237_v63, %v1024_v14  ;;  %v4380_v19 = vmul.f32 %v4247_v62, %v1025_v35  ;;  %v4384_v15 = vmul.f32 %v4257_v49, %v1026_v41  ;;  %v4387_v54 = vmul.f32 %v4267_v51, %v1027_v8  ;;  %v6583_v20 = vld [vmem:[#allocation159_spill] sm:$0xff]  ;;  %v6584_v51 = vld [vmem:[#allocation78_spill] sm:$0xff]  ;;  %v6586_v32 = vld [vmem:[#allocation161_spill] sm:$0xff] }
 0x141   :  { %2419 = vlog2.f32 %v6578_v36  ;;  %v1097_v52 = vmul.f32 %v6579_v61, %v1066_v29  ;;  %v4392_v63 = vmul.f32 %v6580_v38, %v1028_v46  ;;  %v4395_v62 = vmul.f32 %v6581_v37, %v1029_v18  ;;  %v6587_v7 = vld [vmem:[#allocation105_spill] sm:$0xff]  ;;  %v6589_v17 = vld [vmem:[#allocation74_spill] sm:$0xff]  ;;  %v6591_v60 = vld [vmem:[#allocation143_spill] sm:$0xff] }
 0x142   :  { %v1068_v16 = vmul.f32 0.6931472, %v2412_v40  ;;  %2421 = vlog2.f32 %v6582_v44  ;;  %v4399_v49 = vmul.f32 %v6583_v20, %v1030_v59  ;;  %v1070_v6 = vmul.f32 0.6931472, %v2414_v45  ;;  %v6588_v26 = vld [vmem:[#allocation89_spill] sm:$0xff]  ;;  %v6590_v27 = vld [vmem:[#allocation130_spill] sm:$0xff] }
 0x143   :  { %2423 = vlog2.f32 %v6584_v51  ;;  %v1113_v2 = vsub.f32 %v1097_v52, %v4036_v48  ;;  %v4404_v56 = vmul.f32 %v6585_v43, %v1031_v55  ;;  %v4407_v33 = vmul.f32 %v6586_v32, %v1032_v57  ;;  %v6593_v23 = vld [vmem:[#allocation144_spill] sm:$0xff]  ;;  %v6595_v48 = vld [vmem:[#allocation106_spill] sm:$0xff]  ;;  %v6596_v31 = vld [vmem:[#allocation145_spill] sm:$0xff]  ;;  %v2416_v52 = vpop.eup %2415 }
 0x144   :  { %2425 = vlog2.f32 %v6587_v7  ;;  %v1098_v25 = vmul.f32 %v6588_v26, %v1068_v16  ;;  %v1099_v11 = vmul.f32 %v6590_v27, %v1070_v6  ;;  %v4414_v50 = vadd.f32 1e-10, %v6591_v60  ;;  %v6598_v30 = vld [vmem:[#allocation146_spill] sm:$0xff]  ;;  %v6600_v13 = vld [vmem:[#allocation147_spill] sm:$0xff]  ;;  %v6603_v8 = vld [vmem:[#allocation148_spill] sm:$0xff]  ;;  %v2418_v16 = vpop.eup %2417 }
 0x145   :  { %2427 = vlog2.f32 %v6589_v17  ;;  %v4417_v34 = vadd.f32 1e-10, %v6593_v23  ;;  %v4421_v1 = vadd.f32 1e-10, %v6596_v31  ;;  %v4424_v14 = vadd.f32 1e-10, %v6598_v30 }
 0x146   :  { %6592 = vst [vmem:[#allocation73_spill] sm:$0xff] %v4414_v50  ;;  %2429 = vlog2.f32 %v6595_v48  ;;  %v4427_v47 = vadd.f32 1e-10, %v6600_v13  ;;  %v6602_v10 = vld [vmem:[#allocation75_spill] sm:$0xff]  ;;  %v1114_v35 = vsub.f32 %v1098_v25, %v4045_v24  ;;  %v1129_v41 = vadd.f32 0.9189385, %v1113_v2 }
 0x147   :  { %6594 = vst [vmem:[#allocation135_spill] sm:$0xff] %v4417_v34  ;;  %6597 = vst [vmem:[#allocation157_spill] sm:$0xff] %v4421_v1  ;;  %2431 = vlog2.f32 %v6602_v10  ;;  %v4432_v46 = vadd.f32 1e-10, %v6603_v8  ;;  %v6604_v18 = vld [vmem:[#allocation111_spill] sm:$0xff]  ;;  %v6605_v59 = vld [vmem:[#allocation149_spill] sm:$0xff]  ;;  %v1115_v24 = vsub.f32 %v1099_v11, %v4054_v21 }
 0x148   :  { %6599 = vst [vmem:[#allocation158_spill] sm:$0xff] %v4424_v14  ;;  %6601 = vst [vmem:[#allocation127_spill] sm:$0xff] %v4427_v47  ;;  %2433 = vlog2.f32 %v6604_v18  ;;  %v4436_v55 = vadd.f32 1e-10, %v6605_v59  ;;  %v6607_v57 = vld [vmem:[#allocation150_spill] sm:$0xff]  ;;  %v6609_v40 = vld [vmem:[#allocation151_spill] sm:$0xff]  ;;  %v4461_v11 = vadd.f32 %v1129_v41, %v4355_v4 }
 0x149   :  { %v4439_v29 = vadd.f32 1e-10, %v6607_v57  ;;  %v4442_v61 = vadd.f32 1e-10, %v6609_v40  ;;  %v6610_v45 = vld [vmem:[#allocation76_spill] sm:$0xff]  ;;  %v6616_v32 = vld [vmem:[#allocation153_spill] sm:$0xff] }
 0x14a   :  { %6606 = vst [vmem:[#allocation159_spill] sm:$0xff] %v4436_v55  ;;  %2435 = vlog2.f32 %v6610_v45  ;;  %v4447_v38 = vadd.f32 1e-10, %v4333_v39  ;;  %v4450_v37 = vadd.f32 1e-10, %v4352_v53  ;;  %v6613_v6 = vld [vmem:[#allocation112_spill] sm:$0xff] }
 0x14b   :  { %6608 = vst [vmem:[#allocation78_spill] sm:$0xff] %v4439_v29  ;;  %v1072_v20 = vmul.f32 0.6931472, %v2416_v52  ;;  %2437 = vlog2.f32 %v6613_v6  ;;  %v6614_v2 = vld [vmem:[#allocation152_spill] sm:$0xff]  ;;  %v4457_v26 = vadd.f32 1.0, %v6616_v32  ;;  %v2420_v25 = vpop.eup %2419  ;;  %v6618_v40 = vld [vmem:[#allocation134_spill] sm:$0xff] }
 0x14c   :  { %6611 = vst [vmem:[#allocation160_spill] sm:$0xff] %v4447_v38  ;;  %6612 = vst [vmem:[#allocation161_spill] sm:$0xff] %v4450_v37  ;;  %v4454_v43 = vadd.f32 1.0, %v6614_v2  ;;  %v1074_v27 = vmul.f32 0.6931472, %v2418_v16  ;;  %2439 = vlog2.f32 %v6618_v40  ;;  %v2422_v53 = vpop.eup %2421  ;;  %v6619_v57 = vld [vmem:[#allocation79_spill] sm:$0xff] }
 0x14d   :  { %6617 = vst [vmem:[#allocation89_spill] sm:$0xff] %v4457_v26  ;;  %v1130_v21 = vadd.f32 0.9189385, %v1114_v35  ;;  %v1076_v39 = vmul.f32 0.6931472, %v2420_v25  ;;  %v1100_v52 = vmul.f32 %v6619_v57, %v1072_v20  ;;  %v6620_v59 = vld [vmem:[#allocation154_spill] sm:$0xff]  ;;  %v2424_v31 = vpop.eup %2423 }
 0x14e   :  { %6615 = vst [vmem:[#allocation105_spill] sm:$0xff] %v4454_v43  ;;  %v4465_v8 = vadd.f32 1.0, %v6620_v59  ;;  %v6622_v13 = vld [vmem:[#allocation155_spill] sm:$0xff]  ;;  %v1078_v23 = vmul.f32 0.6931472, %v2422_v53  ;;  %v6625_v26 = vld [vmem:[#allocation156_spill] sm:$0xff]  ;;  %v2426_v4 = vpop.eup %2425 }
 0x14f   :  { %v4468_v30 = vadd.f32 1.0, %v6622_v13  ;;  %v1131_v60 = vadd.f32 0.9189385, %v1115_v24  ;;  %v6624_v16 = vld [vmem:[#allocation99_spill] sm:$0xff]  ;;  %v4472_v35 = vadd.f32 1.0, %v6625_v26  ;;  %v6627_v32 = vld [vmem:[#allocation100_spill] sm:$0xff]  ;;  %v2428_v25 = vpop.eup %2427  ;;  %v4483_v24 = vadd.f32 %v1130_v21, %v4358_v0 }
 0x150   :  { %6621 = vst [vmem:[#allocation74_spill] sm:$0xff] %v4465_v8  ;;  %2441 = vlog2.f32 %v6624_v16  ;;  %v1080_v41 = vmul.f32 0.6931472, %v2424_v31  ;;  %v4476_v57 = vadd.f32 1.0, %v4414_v50  ;;  %v4479_v20 = vadd.f32 1.0, %v4417_v34  ;;  %v6630_v13 = vld [vmem:[#allocation131_spill] sm:$0xff] }
 0x151   :  { %6623 = vst [vmem:[#allocation130_spill] sm:$0xff] %v4468_v30  ;;  %6626 = vst [vmem:[#allocation106_spill] sm:$0xff] %v4472_v35  ;;  %2443 = vlog2.f32 %v6627_v32  ;;  %v1082_v30 = vmul.f32 0.6931472, %v2426_v4  ;;  %v1101_v53 = vmul.f32 %v6630_v13, %v1074_v27  ;;  %v6631_v16 = vld [vmem:[#allocation101_spill] sm:$0xff]  ;;  %v2430_v35 = vpop.eup %2429  ;;  %v6632_v31 = vld [vmem:[#allocation80_spill] sm:$0xff]  ;;  %v1116_v32 = vsub.f32 %v1100_v52, %v4063_v22 }
 0x152   :  { %6628 = vst [vmem:[#allocation75_spill] sm:$0xff] %v4476_v57  ;;  %6629 = vst [vmem:[#allocation111_spill] sm:$0xff] %v4479_v20  ;;  %2445 = vlog2.f32 %v6631_v16  ;;  %v1084_v26 = vmul.f32 0.6931472, %v2428_v25  ;;  %v1102_v8 = vmul.f32 %v6632_v31, %v1076_v39  ;;  %v6633_v50 = vld [vmem:[#allocation102_spill] sm:$0xff]  ;;  %v2432_v57 = vpop.eup %2431  ;;  %v6634_v20 = vld [vmem:[#allocation133_spill] sm:$0xff]  ;;  %v4497_v39 = vadd.f32 %v1131_v60, %v4361_v9 }
 0x153   :  { %2447 = vlog2.f32 %v6633_v50  ;;  %v1086_v34 = vmul.f32 0.6931472, %v2430_v35  ;;  %v1103_v59 = vmul.f32 %v6634_v20, %v1078_v23  ;;  %v6635_v4 = vld [vmem:[#allocation81_spill] sm:$0xff]  ;;  %v4492_v13 = vadd.f32 1.0, %v4421_v1  ;;  %v2434_v0 = vpop.eup %2433  ;;  %v6636_v21 = vld [vmem:[#allocation90_spill] sm:$0xff]  ;;  %v6641_v9 = vld [vmem:[#allocation119_spill] sm:$0xff] }
 0x154   :  { %v1104_v43 = vmul.f32 %v6635_v4, %v1080_v41  ;;  %v1088_v27 = vmul.f32 0.6931472, %v2432_v57  ;;  %v1105_v16 = vmul.f32 %v6636_v21, %v1082_v30  ;;  %v6637_v25 = vld [vmem:[#allocation117_spill] sm:$0xff]  ;;  %v2436_v22 = vpop.eup %2435  ;;  %v1090_v50 = vmul.f32 0.6931472, %v2434_v0  ;;  %v6638_v52 = vld [vmem:[#allocation118_spill] sm:$0xff] }
 0x155   :  { %v1106_v2 = vmul.f32 %v6637_v25, %v1084_v26  ;;  %v1107_v35 = vmul.f32 %v6638_v52, %v1086_v34  ;;  %v1117_v23 = vsub.f32 %v1101_v53, %v4066_v42  ;;  %v4502_v41 = vadd.f32 1.0, %v4424_v14  ;;  %v2438_v20 = vpop.eup %2437  ;;  %v6640_v4 = vld [vmem:[#allocation93_spill] sm:$0xff]  ;;  %v6642_v42 = vld [vmem:[#allocation120_spill] sm:$0xff] }
 0x156   :  { %v1092_v31 = vmul.f32 0.6931472, %v2436_v22  ;;  %v1108_v57 = vmul.f32 %v6640_v4, %v1088_v27  ;;  %v1118_v30 = vsub.f32 %v1102_v8, %v6578_v36  ;;  %v1132_v21 = vadd.f32 0.9189385, %v1116_v32  ;;  %v2440_v26 = vpop.eup %2439  ;;  %v6643_v27 = vld [vmem:[#allocation136_spill] sm:$0xff] }
 0x157   :  { %6639 = vst [vmem:[#allocation76_spill] sm:$0xff] %v4502_v41  ;;  %v1094_v25 = vmul.f32 0.6931472, %v2438_v20  ;;  %v1109_v60 = vmul.f32 %v6641_v9, %v1090_v50  ;;  %v1119_v0 = vsub.f32 %v1103_v59, %v6582_v44  ;;  %v1120_v34 = vsub.f32 %v1104_v43, %v6584_v51  ;;  %v6644_v20 = vld [vmem:[#allocation137_spill] sm:$0xff] }
 0x158   :  { %v1096_v52 = vmul.f32 0.6931472, %v2440_v26  ;;  %v1110_v53 = vmul.f32 %v6642_v42, %v1092_v31  ;;  %v1121_v41 = vsub.f32 %v1105_v16, %v6587_v7  ;;  %v1122_v22 = vsub.f32 %v1106_v2, %v6589_v17 }
 0x159   :  { %v1111_v4 = vmul.f32 %v6643_v27, %v1094_v25  ;;  %v1123_v36 = vsub.f32 %v1107_v35, %v6595_v48  ;;  %v1124_v8 = vsub.f32 %v1108_v57, %v6602_v10  ;;  %v1133_v32 = vadd.f32 0.9189385, %v1117_v23 }
 0x15a   :  { %v2442_v14 = vpop.eup %2441  ;;  %v1112_v44 = vmul.f32 %v6644_v20, %v1096_v52  ;;  %v1125_v51 = vsub.f32 %v1109_v60, %v6604_v18  ;;  %v1126_v59 = vsub.f32 %v1110_v53, %v6610_v45  ;;  %v1134_v43 = vadd.f32 0.9189385, %v1118_v30 }
 0x15b   :  { %v2444_v50 = vpop.eup %2443  ;;  %v1135_v7 = vadd.f32 0.9189385, %v1119_v0  ;;  %v1136_v16 = vadd.f32 0.9189385, %v1120_v34  ;;  %v4519_v17 = vadd.f32 1.0, %v4427_v47  ;;  %v4522_v2 = vadd.f32 1.0, %v4432_v46 }
 0x15c   :  { %v2446_v31 = vpop.eup %2445  ;;  %v1127_v10 = vsub.f32 %v1111_v4, %v6613_v6  ;;  %v1128_v35 = vsub.f32 %v1112_v44, %v6618_v40  ;;  %v1137_v23 = vadd.f32 0.9189385, %v1121_v41  ;;  %v1138_v57 = vadd.f32 0.9189385, %v1122_v22  ;;  %v6647_v22 = vld [vmem:[#allocation67_spill] sm:$0xff] }
 0x15d   :  { %v2448_v48 = vpop.eup %2447  ;;  %v1139_v18 = vadd.f32 0.9189385, %v1123_v36  ;;  %v1140_v26 = vadd.f32 0.9189385, %v1124_v8  ;;  %v1148_v45 = vadd.f32 %v1132_v21, %v4364_v3  ;;  %v4528_v30 = vadd.f32 %v1133_v32, %v4367_v58  ;;  %v6645_v3 = vld [vmem:[#allocation103_spill] sm:$0xff]  ;;  %v6652_v32 = vld [vmem:[#allocation114_spill] sm:$0xff] }
 0x15e   :  { %v1141_v25 = vadd.f32 0.9189385, %v1125_v51  ;;  %v1142_v9 = vadd.f32 0.9189385, %v1126_v59  ;;  %v4531_v60 = vadd.f32 %v1134_v43, %v4370_v5  ;;  %v1162_v0 = vmul.f32 0.6931472, %v2442_v14 }
 0x15f   :  { %v4534_v34 = vadd.f32 %v1135_v7, %v4374_v12  ;;  %v1164_v6 = vmul.f32 0.6931472, %v2444_v50  ;;  %v1166_v40 = vmul.f32 0.6931472, %v2446_v31  ;;  %v1168_v41 = vmul.f32 0.6931472, %v2448_v48 }
 0x160   :  { %v1143_v52 = vadd.f32 0.9189385, %v1127_v10  ;;  %v1144_v42 = vadd.f32 0.9189385, %v1128_v35  ;;  %v4537_v53 = vadd.f32 %v1136_v16, %v4377_v28  ;;  %2449 = vlog2.f32 %v6645_v3  ;;  %v6646_v14 = vld [vmem:[#allocation104_spill] sm:$0xff]  ;;  %v6655_v44 = vld [vmem:[#allocation71_spill] sm:$0xff] }
 0x161   :  { %v4541_v58 = vadd.f32 %v1137_v23, %v4380_v19  ;;  %v4544_v5 = vadd.f32 %v1138_v57, %v4384_v15  ;;  %2451 = vlog2.f32 %v6646_v14  ;;  %v1193_v12 = vsub.f32 %v4461_v11, %v1162_v0  ;;  %v6648_v15 = vld [vmem:[#allocation68_spill] sm:$0xff]  ;;  %v6657_v51 = vld [vmem:[#allocation85_spill] sm:$0xff]  ;;  %v6660_v43 = vld [vmem:[#allocation82_spill] sm:$0xff] }
 0x162   :  { %v4549_v21 = vadd.f32 %v1139_v18, %v4387_v54  ;;  %2453 = vlog2.f32 %v6647_v22  ;;  %v1194_v28 = vsub.f32 %v4483_v24, %v1164_v6  ;;  %v1195_v27 = vsub.f32 %v4497_v39, %v1166_v40  ;;  %v6649_v24 = vld [vmem:[#allocation69_spill] sm:$0xff]  ;;  %v6650_v39 = vld [vmem:[#allocation70_spill] sm:$0xff]  ;;  %v6664_v10 = vld [vmem:[#allocation116_spill] sm:$0xff] }
 0x163   :  { %v4555_v4 = vadd.f32 %v1140_v26, %v4392_v63  ;;  %v4558_v19 = vadd.f32 %v1141_v25, %v4395_v62  ;;  %2455 = vlog2.f32 %v6648_v15  ;;  %v1196_v36 = vsub.f32 %v1148_v45, %v1168_v41  ;;  %v6651_v63 = vld [vmem:[#allocation129_spill] sm:$0xff]  ;;  %v6661_v31 = vld [vmem:[#allocation86_spill] sm:$0xff]  ;;  %v6665_v35 = vld [vmem:[#allocation91_spill] sm:$0xff] }
 0x164   :  { %v4562_v11 = vadd.f32 %v1142_v9, %v4399_v49  ;;  %v4565_v54 = vadd.f32 %v1143_v52, %v4404_v56  ;;  %v4568_v8 = vadd.f32 %v1144_v42, %v4407_v33  ;;  %2457 = vlog2.f32 %v6649_v24  ;;  %v6656_v56 = vld [vmem:[#allocation132_spill] sm:$0xff]  ;;  %v6669_v25 = vld [vmem:[#allocation123_spill] sm:$0xff]  ;;  %v6671_v0 = vld [vmem:[#allocation105_spill] sm:$0xff] }
 0x165   :  { %2459 = vlog2.f32 %v6650_v39  ;;  %v6653_v62 = vsub.f32 %v6651_v63, %v6652_v32  ;;  %v1268_v20 = vadd.f32 1.0, %v4436_v55  ;;  %v1269_v49 = vadd.f32 1.0, %v4439_v29  ;;  %v6666_v23 = vld [vmem:[#allocation88_spill] sm:$0xff]  ;;  %v6672_v40 = vld [vmem:[#allocation153_spill] sm:$0xff]  ;;  %v6674_v42 = vld [vmem:[#allocation154_spill] sm:$0xff] }
 0x166   :  { %2461 = vlog2.f32 %v6655_v44  ;;  %v6658_v59 = vsub.f32 %v6656_v56, %v6657_v51  ;;  %v6662_v7 = vsub.f32 %v6660_v43, %v6661_v31  ;;  %v1270_v48 = vadd.f32 1.0, %v4442_v61  ;;  %v6670_v9 = vld [vmem:[#allocation152_spill] sm:$0xff]  ;;  %v6673_v41 = vld [vmem:[#allocation89_spill] sm:$0xff]  ;;  %v6675_v3 = vld [vmem:[#allocation74_spill] sm:$0xff] }
 0x167   :  { %v4575_v50 = vadd.f32 %v1193_v12, %v6653_v62  ;;  %2463 = vlog2.f32 %v6664_v10  ;;  %v6667_v57 = vsub.f32 %v6665_v35, %v6666_v23  ;;  %v1271_v26 = vadd.f32 1.0, %v4447_v38  ;;  %v6676_v12 = vld [vmem:[#allocation72_spill] sm:$0xff]  ;;  %v6677_v22 = vld [vmem:[#allocation155_spill] sm:$0xff]  ;;  %v6681_v39 = vld [vmem:[#allocation73_spill] sm:$0xff] }
 0x168   :  { %v4583_v33 = vadd.f32 %v1194_v28, %v6658_v59  ;;  %v4588_v16 = vadd.f32 %v1195_v27, %v6662_v7  ;;  %v1272_v45 = vadd.f32 1.0, %v4450_v37  ;;  %2465 = vlog2.f32 %v6669_v25  ;;  %v6678_v28 = vld [vmem:[#allocation130_spill] sm:$0xff]  ;;  %v6679_v15 = vld [vmem:[#allocation156_spill] sm:$0xff]  ;;  %v6682_v63 = vld [vmem:[#allocation75_spill] sm:$0xff] }
 0x169   :  { %6654 = vst [vmem:[#allocation112_spill] sm:$0xff] %v4575_v50  ;;  %v4595_v18 = vadd.f32 %v1196_v36, %v6667_v57  ;;  %v4602_v6 = vmul.f32 %v6671_v0, %v6670_v9  ;;  %v4606_v52 = vmul.f32 %v6673_v41, %v6672_v40  ;;  %v4610_v14 = vmul.f32 %v6675_v3, %v6674_v42  ;;  %v6680_v36 = vld [vmem:[#allocation106_spill] sm:$0xff]  ;;  %v6683_v44 = vld [vmem:[#allocation77_spill] sm:$0xff]  ;;  %v6684_v56 = vld [vmem:[#allocation135_spill] sm:$0xff] }
 0x16a   :  { %6659 = vst [vmem:[#allocation134_spill] sm:$0xff] %v4583_v33  ;;  %6663 = vst [vmem:[#allocation79_spill] sm:$0xff] %v4588_v16  ;;  %2467 = vlog2.f32 %v6676_v12  ;;  %v4615_v27 = vmul.f32 %v6678_v28, %v6677_v22  ;;  %v4619_v24 = vmul.f32 %v6680_v36, %v6679_v15  ;;  %v4623_v32 = vmul.f32 %v6682_v63, %v6681_v39  ;;  %v2450_v62 = vpop.eup %2449  ;;  %v6685_v51 = vld [vmem:[#allocation111_spill] sm:$0xff]  ;;  %v6686_v31 = vld [vmem:[#allocation158_spill] sm:$0xff] }
 0x16b   :  { %6668 = vst [vmem:[#allocation99_spill] sm:$0xff] %v4595_v18  ;;  %2469 = vlog2.f32 %v6683_v44  ;;  %v4628_v59 = vmul.f32 %v6685_v51, %v6684_v56  ;;  %v4632_v43 = vmul.f32 %v4492_v13, %v4421_v1  ;;  %v6687_v7 = vld [vmem:[#allocation76_spill] sm:$0xff]  ;;  %v2452_v35 = vpop.eup %2451  ;;  %v1170_v23 = vmul.f32 0.6931472, %v2450_v62  ;;  %v6688_v57 = vld [vmem:[#allocation125_spill] sm:$0xff] }
 0x16c   :  { %v4636_v10 = vmul.f32 %v6687_v7, %v6686_v31  ;;  %2471 = vlog2.f32 %v6688_v57  ;;  %v4641_v25 = vmul.f32 %v4519_v17, %v4427_v47  ;;  %v4645_v0 = vmul.f32 %v4522_v2, %v4432_v46  ;;  %v2454_v41 = vpop.eup %2453 }
 0x16d   :  { %v1172_v3 = vmul.f32 0.6931472, %v2452_v35  ;;  %v4648_v13 = vmul.f32 %v1268_v20, %v4436_v55  ;;  %v4651_v12 = vmul.f32 %v1269_v49, %v4439_v29  ;;  %v4654_v28 = vmul.f32 %v1270_v48, %v4442_v61  ;;  %v2456_v36 = vpop.eup %2455 }
 0x16e   :  { %v1174_v63 = vmul.f32 0.6931472, %v2454_v41  ;;  %v4657_v17 = vmul.f32 %v1271_v26, %v4447_v38  ;;  %v4660_v62 = vmul.f32 %v1272_v45, %v4450_v37  ;;  %v1289_v2 = vadd.f32 2.0, %v6670_v9  ;;  %v2458_v44 = vpop.eup %2457 }
 0x16f   :  { %v1197_v20 = vsub.f32 %v4528_v30, %v1170_v23  ;;  %v1290_v51 = vadd.f32 2.0, %v6672_v40  ;;  %v1291_v49 = vadd.f32 2.0, %v6674_v42  ;;  %v1292_v48 = vadd.f32 2.0, %v6677_v22  ;;  %v2460_v7 = vpop.eup %2459  ;;  %v6690_v40 = vld [vmem:[#allocation110_spill] sm:$0xff] }
 0x170   :  { %6689 = vst [vmem:[#allocation100_spill] sm:$0xff] %v4660_v62  ;;  %v1176_v35 = vmul.f32 0.6931472, %v2456_v36  ;;  %v1178_v57 = vmul.f32 0.6931472, %v2458_v44  ;;  %v1293_v26 = vadd.f32 2.0, %v6679_v15  ;;  %v2462_v45 = vpop.eup %2461  ;;  %v1198_v16 = vsub.f32 %v4531_v60, %v1172_v3 }
 0x171   :  { %v1294_v41 = vadd.f32 2.0, %v6681_v39  ;;  %v1180_v18 = vmul.f32 0.6931472, %v2460_v7  ;;  %v1295_v33 = vadd.f32 2.0, %v6684_v56  ;;  %v1296_v30 = vadd.f32 2.0, %v4421_v1  ;;  %v2464_v23 = vpop.eup %2463  ;;  %v6691_v39 = vld [vmem:[#allocation126_spill] sm:$0xff] }
 0x172   :  { %v1182_v50 = vmul.f32 0.6931472, %v2462_v45  ;;  %v1199_v42 = vsub.f32 %v4534_v34, %v1174_v63  ;;  %v1297_v22 = vadd.f32 2.0, %v6686_v31  ;;  %v1298_v36 = vadd.f32 2.0, %v4427_v47  ;;  %v2466_v44 = vpop.eup %2465  ;;  %v6694_v62 = vld [vmem:[#allocation83_spill] sm:$0xff] }
 0x173   :  { %v1184_v15 = vmul.f32 0.6931472, %v2464_v23  ;;  %v6692_v9 = vsub.f32 %v6690_v40, %v6691_v39  ;;  %v1299_v60 = vadd.f32 2.0, %v4432_v46  ;;  %v1300_v3 = vadd.f32 2.0, %v4436_v55  ;;  %v6695_v40 = vld [vmem:[#allocation109_spill] sm:$0xff] }
 0x174   :  { %v2468_v1 = vpop.eup %2467  ;;  %v1186_v56 = vmul.f32 0.6931472, %v2466_v44  ;;  %v1200_v45 = vsub.f32 %v4537_v53, %v1176_v35  ;;  %v1201_v34 = vsub.f32 %v4541_v58, %v1178_v57  ;;  %v1301_v63 = vadd.f32 2.0, %v4439_v29  ;;  %v6698_v58 = vld [vmem:[#allocation113_spill] sm:$0xff]  ;;  %v6699_v35 = vld [vmem:[#allocation128_spill] sm:$0xff] }
 0x175   :  { %v4678_v7 = vadd.f32 %v1197_v20, %v6692_v9  ;;  %v2470_v47 = vpop.eup %2469  ;;  %v1188_v31 = vmul.f32 0.6931472, %v2468_v1  ;;  %v1202_v23 = vsub.f32 %v4544_v5, %v1180_v18  ;;  %v6696_v9 = vsub.f32 %v6694_v62, %v6695_v40  ;;  %v6702_v40 = vld [vmem:[#allocation84_spill] sm:$0xff] }
 0x176   :  { %v1302_v20 = vadd.f32 2.0, %v4442_v61  ;;  %v1190_v55 = vmul.f32 0.6931472, %v2470_v47  ;;  %v1203_v44 = vsub.f32 %v4549_v21, %v1182_v50  ;;  %v1204_v53 = vsub.f32 %v4555_v4, %v1184_v15  ;;  %v6703_v47 = vld [vmem:[#allocation94_spill] sm:$0xff]  ;;  %v6706_v4 = vld [vmem:[#allocation115_spill] sm:$0xff]  ;;  %v6707_v50 = vld [vmem:[#allocation16_spill] sm:$0xff] }
 0x177   :  { %6693 = vst [vmem:[#allocation131_spill] sm:$0xff] %v4678_v7  ;;  %v4689_v39 = vadd.f32 %v1198_v16, %v6696_v9  ;;  %v2472_v7 = vpop.eup %2471  ;;  %v6700_v57 = vsub.f32 %v6698_v58, %v6699_v35  ;;  %v1205_v5 = vsub.f32 %v4558_v19, %v1186_v56  ;;  %v1206_v18 = vsub.f32 %v4562_v11, %v1188_v31  ;;  %v6710_v56 = vld [vmem:[#allocation87_spill] sm:$0xff]  ;;  %v6715_v35 = vld [vmem:[#allocation64_spill] sm:$0xff] }
 0x178   :  { %v1192_v1 = vmul.f32 0.6931472, %v2472_v7  ;;  %v1303_v16 = vadd.f32 2.0, %v4447_v38  ;;  %v1207_v62 = vsub.f32 %v4565_v54, %v1190_v55  ;;  %v6704_v9 = vsub.f32 %v6702_v40, %v6703_v47  ;;  %v6711_v11 = vld [vmem:[#allocation95_spill] sm:$0xff]  ;;  %v6719_v47 = vld [vmem:[#allocation96_spill] sm:$0xff] }
 0x179   :  { %6697 = vst [vmem:[#allocation101_spill] sm:$0xff] %v4689_v39  ;;  %v4697_v29 = vadd.f32 %v1199_v42, %v6700_v57  ;;  %v6708_v15 = vsub.f32 %v6706_v4, %v6707_v50  ;;  %v1304_v42 = vadd.f32 2.0, %v4450_v37  ;;  %v6712_v31 = vsub.f32 %v6710_v56, %v6711_v11  ;;  %v6723_v50 = vld [vmem:[#allocation65_spill] sm:$0xff] }
 0x17a   :  { %v4706_v21 = vadd.f32 %v1200_v45, %v6704_v9  ;;  %v1208_v19 = vsub.f32 %v4568_v8, %v1192_v1  ;;  %v1305_v55 = vmul.f32 %v1289_v2, %v4602_v6  ;;  %v1306_v54 = vmul.f32 %v1290_v51, %v4606_v52  ;;  %v6714_v45 = vld [vmem:[#allocation121_spill] sm:$0xff]  ;;  %v6726_v52 = vld [vmem:[#allocation107_spill] sm:$0xff] }
 0x17b   :  { %6701 = vst [vmem:[#allocation80_spill] sm:$0xff] %v4697_v29  ;;  %v4711_v58 = vadd.f32 %v1201_v34, %v6708_v15  ;;  %v4718_v7 = vadd.f32 %v1202_v23, %v6712_v31  ;;  %v6716_v57 = vsub.f32 %v6714_v45, %v6715_v35  ;;  %v6718_v34 = vld [vmem:[#allocation122_spill] sm:$0xff]  ;;  %v1307_v8 = vmul.f32 %v1291_v49, %v4610_v14  ;;  %v6722_v23 = vld [vmem:[#allocation92_spill] sm:$0xff]  ;;  %v6727_v2 = vld [vmem:[#allocation97_spill] sm:$0xff] }
 0x17c   :  { %6705 = vst [vmem:[#allocation102_spill] sm:$0xff] %v4706_v21  ;;  %v6720_v9 = vsub.f32 %v6718_v34, %v6719_v47  ;;  %v1308_v1 = vmul.f32 %v1292_v48, %v4615_v27  ;;  %v6724_v15 = vsub.f32 %v6722_v23, %v6723_v50  ;;  %v6728_v51 = vsub.f32 %v6726_v52, %v6727_v2  ;;  %v6731_v31 = vld [vmem:[#allocation98_spill] sm:$0xff]  ;;  %v6749_v50 = vld [vmem:[#allocation159_spill] sm:$0xff] }
 0x17d   :  { %6709 = vst [vmem:[#allocation133_spill] sm:$0xff] %v4711_v58  ;;  %6713 = vst [vmem:[#allocation81_spill] sm:$0xff] %v4718_v7  ;;  %v4725_v40 = vadd.f32 %v1203_v44, %v6716_v57  ;;  %v1309_v44 = vmul.f32 %v1293_v26, %v4619_v24  ;;  %v1310_v11 = vmul.f32 %v1294_v41, %v4623_v32  ;;  %v6735_v35 = vld [vmem:[#allocation66_spill] sm:$0xff]  ;;  %v1331_v23 = vadd.f32 3.0, %v4432_v46 }
 0x17e   :  { %v4730_v4 = vadd.f32 %v1204_v53, %v6720_v9  ;;  %v4737_v6 = vadd.f32 %v1205_v5, %v6724_v15  ;;  %v4742_v56 = vadd.f32 %v1206_v18, %v6728_v51  ;;  %v6730_v53 = vld [vmem:[#allocation124_spill] sm:$0xff]  ;;  %v1311_v27 = vmul.f32 %v1295_v33, %v4628_v59  ;;  %v6742_v9 = vld [vmem:[#allocation155_spill] sm:$0xff]  ;;  %v6750_v52 = vld [vmem:[#allocation78_spill] sm:$0xff] }
 0x17f   :  { %6717 = vst [vmem:[#allocation90_spill] sm:$0xff] %v4725_v40  ;;  %v6732_v45 = vsub.f32 %v6730_v53, %v6731_v31  ;;  %v1312_v49 = vmul.f32 %v1296_v30, %v4632_v43  ;;  %v1313_v48 = vmul.f32 %v1297_v22, %v4636_v10  ;;  %v6734_v5 = vld [vmem:[#allocation108_spill] sm:$0xff]  ;;  %v1314_v24 = vmul.f32 %v1298_v36, %v4641_v25  ;;  %v6740_v30 = vld [vmem:[#allocation153_spill] sm:$0xff] }
 0x180   :  { %6721 = vst [vmem:[#allocation117_spill] sm:$0xff] %v4730_v4  ;;  %6725 = vst [vmem:[#allocation118_spill] sm:$0xff] %v4737_v6  ;;  %v6736_v57 = vsub.f32 %v6734_v5, %v6735_v35  ;;  %v1315_v32 = vmul.f32 %v1299_v60, %v4645_v0  ;;  %v1316_v26 = vmul.f32 %v1300_v3, %v4648_v13  ;;  %v6738_v59 = vld [vmem:[#allocation100_spill] sm:$0xff]  ;;  %v1322_v34 = vadd.f32 3.0, %v6740_v30  ;;  %v6744_v60 = vld [vmem:[#allocation73_spill] sm:$0xff] }
 0x181   :  { %6729 = vst [vmem:[#allocation93_spill] sm:$0xff] %v4742_v56  ;;  %v4749_v14 = vadd.f32 %v1207_v62, %v6732_v45  ;;  %v1317_v41 = vmul.f32 %v1301_v63, %v4651_v12  ;;  %v1318_v62 = vmul.f32 %v1302_v20, %v4654_v28  ;;  %v1319_v33 = vmul.f32 %v1303_v16, %v4657_v17  ;;  %v6739_v22 = vld [vmem:[#allocation152_spill] sm:$0xff]  ;;  %v6745_v3 = vld [vmem:[#allocation135_spill] sm:$0xff]  ;;  %v6746_v63 = vld [vmem:[#allocation157_spill] sm:$0xff] }
 0x182   :  { %v4757_v18 = vadd.f32 %v1208_v19, %v6736_v57  ;;  %v1320_v43 = vmul.f32 %v1304_v42, %v6738_v59  ;;  %v1321_v10 = vadd.f32 3.0, %v6739_v22  ;;  %v6741_v19 = vld [vmem:[#allocation154_spill] sm:$0xff]  ;;  %v1324_v25 = vadd.f32 3.0, %v6742_v9  ;;  %v6743_v36 = vld [vmem:[#allocation156_spill] sm:$0xff]  ;;  %v6748_v16 = vld [vmem:[#allocation127_spill] sm:$0xff] }
 0x183   :  { %6733 = vst [vmem:[#allocation119_spill] sm:$0xff] %v4749_v14  ;;  %v1323_v47 = vadd.f32 3.0, %v6741_v19  ;;  %v1325_v0 = vadd.f32 3.0, %v6743_v36  ;;  %v1326_v13 = vadd.f32 3.0, %v6744_v60  ;;  %v1327_v12 = vadd.f32 3.0, %v6745_v3  ;;  %v6747_v20 = vld [vmem:[#allocation158_spill] sm:$0xff] }
 0x184   :  { %6737 = vst [vmem:[#allocation120_spill] sm:$0xff] %v4757_v18  ;;  %v1328_v28 = vadd.f32 3.0, %v6746_v63  ;;  %v1329_v17 = vadd.f32 3.0, %v6747_v20  ;;  %v1330_v42 = vadd.f32 3.0, %v6748_v16  ;;  %v1332_v15 = vadd.f32 3.0, %v6749_v50 }
 0x185   :  { %v1333_v2 = vadd.f32 3.0, %v6750_v52  ;;  %v1334_v51 = vadd.f32 3.0, %v4442_v61  ;;  %v1335_v53 = vadd.f32 3.0, %v4447_v38  ;;  %v1336_v31 = vadd.f32 3.0, %v4450_v37 }
 0x186   :  { %v1337_v45 = vmul.f32 %v1321_v10, %v1305_v55  ;;  %v1338_v5 = vmul.f32 %v1322_v34, %v1306_v54  ;;  %v1339_v35 = vmul.f32 %v1323_v47, %v1307_v8  ;;  %v1340_v57 = vmul.f32 %v1324_v25, %v1308_v1 }
 0x187   :  { %v1341_v59 = vmul.f32 %v1325_v0, %v1309_v44  ;;  %v1342_v18 = vmul.f32 %v1326_v13, %v1310_v11  ;;  %v1343_v14 = vmul.f32 %v1327_v12, %v1311_v27  ;;  %v1344_v56 = vmul.f32 %v1328_v28, %v1312_v49 }
 0x188   :  { %v1345_v6 = vmul.f32 %v1329_v17, %v1313_v48  ;;  %v1346_v4 = vmul.f32 %v1330_v42, %v1314_v24  ;;  %v1347_v40 = vmul.f32 %v1331_v23, %v1315_v32  ;;  %v1348_v7 = vmul.f32 %v1332_v15, %v1316_v26 }
 0x189   :  { %v1349_v58 = vmul.f32 %v1333_v2, %v1317_v41  ;;  %v1350_v21 = vmul.f32 %v1334_v51, %v1318_v62  ;;  %v1351_v29 = vmul.f32 %v1335_v53, %v1319_v33  ;;  %v1352_v39 = vmul.f32 %v1336_v31, %v1320_v43  ;;  %v6751_v41 = vld [vmem:[#allocation160_spill] sm:$0xff]  ;;  %v6752_v33 = vld [vmem:[#allocation161_spill] sm:$0xff] }
 0x18a   :  { %v1353_v38 = vadd.f32 4.0, %v6739_v22  ;;  %v1354_v37 = vadd.f32 4.0, %v6740_v30  ;;  %v1355_v55 = vadd.f32 4.0, %v6741_v19  ;;  %v1356_v54 = vadd.f32 4.0, %v6742_v9 }
 0x18b   :  { %v1357_v8 = vadd.f32 4.0, %v6743_v36  ;;  %v1358_v1 = vadd.f32 4.0, %v6744_v60  ;;  %v1359_v44 = vadd.f32 4.0, %v6745_v3  ;;  %v1360_v11 = vadd.f32 4.0, %v6746_v63 }
 0x18c   :  { %v1361_v27 = vadd.f32 4.0, %v6747_v20  ;;  %v1362_v49 = vadd.f32 4.0, %v6748_v16  ;;  %v1363_v48 = vadd.f32 4.0, %v4432_v46  ;;  %v1364_v24 = vadd.f32 4.0, %v6749_v50 }
 0x18d   :  { %v1365_v32 = vadd.f32 4.0, %v6750_v52  ;;  %v1366_v26 = vadd.f32 4.0, %v4442_v61  ;;  %v1367_v62 = vadd.f32 4.0, %v6751_v41  ;;  %v1368_v43 = vadd.f32 4.0, %v6752_v33 }
 0x18e   :  { %v4798_v10 = vmul.f32 %v1353_v38, %v1337_v45  ;;  %v4800_v34 = vmul.f32 %v1354_v37, %v1338_v5  ;;  %v4802_v47 = vmul.f32 %v1355_v55, %v1339_v35  ;;  %v4804_v25 = vmul.f32 %v1356_v54, %v1340_v57  ;;  %v6797_v55 = vld [vmem:[#allocation17_spill] sm:$0xff]  ;;  %v6798_v54 = vld [vmem:[#allocation48_spill] sm:$0xff] }
 0x18f   :  { %v4806_v0 = vmul.f32 %v1357_v8, %v1341_v59  ;;  %v4808_v13 = vmul.f32 %v1358_v1, %v1342_v18  ;;  %v4810_v12 = vmul.f32 %v1359_v44, %v1343_v14  ;;  %v4813_v28 = vadd.f32 5.0, %v6739_v22  ;;  %v6799_v1 = vld [vmem:[#allocation19_spill] sm:$0xff]  ;;  %v6800_v44 = vld [vmem:[#allocation49_spill] sm:$0xff] }
 0x190   :  { %6753 = vst [vmem:[#allocation136_spill] sm:$0xff] %v4798_v10  ;;  %6754 = vst [vmem:[#allocation137_spill] sm:$0xff] %v4800_v34  ;;  %v4815_v17 = vmul.f32 %v1360_v11, %v1344_v56  ;;  %v4817_v42 = vmul.f32 %v1361_v27, %v1345_v6  ;;  %v4819_v38 = vmul.f32 %v1362_v49, %v1346_v4  ;;  %v4822_v37 = vadd.f32 5.0, %v6740_v30  ;;  %v6801_v49 = vld [vmem:[#allocation20_spill] sm:$0xff] }
 0x191   :  { %6755 = vst [vmem:[#allocation103_spill] sm:$0xff] %v4802_v47  ;;  %6756 = vst [vmem:[#allocation104_spill] sm:$0xff] %v4804_v25  ;;  %v4824_v23 = vmul.f32 %v1363_v48, %v1347_v40  ;;  %v4826_v15 = vmul.f32 %v1364_v24, %v1348_v7  ;;  %v4828_v18 = vmul.f32 %v1365_v32, %v1349_v58  ;;  %v4831_v14 = vadd.f32 5.0, %v6741_v19  ;;  %v6802_v48 = vld [vmem:[#allocation50_spill] sm:$0xff]  ;;  %v6803_v32 = vld [vmem:[#allocation21_spill] sm:$0xff] }
 0x192   :  { %6757 = vst [vmem:[#allocation67_spill] sm:$0xff] %v4806_v0  ;;  %6758 = vst [vmem:[#allocation68_spill] sm:$0xff] %v4808_v13  ;;  %v4833_v22 = vmul.f32 %v1366_v26, %v1350_v21  ;;  %v4835_v56 = vmul.f32 %v1367_v62, %v1351_v29  ;;  %v4837_v6 = vmul.f32 %v1368_v43, %v1352_v39  ;;  %v4840_v4 = vadd.f32 5.0, %v6742_v9  ;;  %v6804_v26 = vld [vmem:[#allocation51_spill] sm:$0xff]  ;;  %v6805_v62 = vld [vmem:[#allocation22_spill] sm:$0xff] }
 0x193   :  { %6759 = vst [vmem:[#allocation69_spill] sm:$0xff] %v4810_v12  ;;  %6760 = vst [vmem:[#allocation70_spill] sm:$0xff] %v4815_v17  ;;  %v4843_v30 = vadd.f32 5.0, %v6743_v36  ;;  %v4846_v7 = vadd.f32 5.0, %v6744_v60  ;;  %v4849_v58 = vadd.f32 5.0, %v6745_v3  ;;  %2473 = vrcp.f32 %v4813_v28 }
 0x194   :  { %6761 = vst [vmem:[#allocation129_spill] sm:$0xff] %v4817_v42  ;;  %6762 = vst [vmem:[#allocation114_spill] sm:$0xff] %v4819_v38  ;;  %v4853_v21 = vadd.f32 5.0, %v6746_v63  ;;  %v4856_v29 = vadd.f32 5.0, %v6747_v20  ;;  %v4859_v39 = vadd.f32 5.0, %v6748_v16  ;;  %2475 = vrcp.f32 %v4822_v37 }
 0x195   :  { %6763 = vst [vmem:[#allocation71_spill] sm:$0xff] %v4824_v23  ;;  %6764 = vst [vmem:[#allocation132_spill] sm:$0xff] %v4826_v15  ;;  %v4863_v40 = vadd.f32 5.0, %v4432_v46  ;;  %v4866_v19 = vadd.f32 5.0, %v6749_v50  ;;  %v4869_v9 = vadd.f32 5.0, %v6750_v52  ;;  %2477 = vrcp.f32 %v4831_v14 }
 0x196   :  { %6765 = vst [vmem:[#allocation85_spill] sm:$0xff] %v4828_v18  ;;  %6766 = vst [vmem:[#allocation82_spill] sm:$0xff] %v4833_v22  ;;  %v4873_v36 = vadd.f32 5.0, %v4442_v61  ;;  %v4876_v60 = vadd.f32 5.0, %v6751_v41  ;;  %v4879_v3 = vadd.f32 5.0, %v6752_v33  ;;  %2479 = vrcp.f32 %v4840_v4  ;;  %v6806_v33 = vld [vmem:[#allocation52_spill] sm:$0xff] }
 0x197   :  { %6767 = vst [vmem:[#allocation86_spill] sm:$0xff] %v4835_v56  ;;  %6768 = vst [vmem:[#allocation116_spill] sm:$0xff] %v4837_v6  ;;  %2481 = vrcp.f32 %v4843_v30  ;;  %v4884_v46 = vadd.f32 -0.5, %v4813_v28  ;;  %v4887_v63 = vadd.f32 -0.5, %v4822_v37  ;;  %v4890_v20 = vadd.f32 -0.5, %v4831_v14 }
 0x198   :  { %6769 = vst [vmem:[#allocation91_spill] sm:$0xff] %v4843_v30  ;;  %6770 = vst [vmem:[#allocation88_spill] sm:$0xff] %v4846_v7  ;;  %2483 = vrcp.f32 %v4846_v7  ;;  %v4894_v61 = vadd.f32 -0.5, %v4840_v4  ;;  %v4897_v16 = vadd.f32 -0.5, %v4843_v30  ;;  %v4900_v50 = vadd.f32 -0.5, %v4846_v7 }
 0x199   :  { %6771 = vst [vmem:[#allocation123_spill] sm:$0xff] %v4849_v58  ;;  %6772 = vst [vmem:[#allocation105_spill] sm:$0xff] %v4853_v21  ;;  %2485 = vrcp.f32 %v4849_v58  ;;  %v4904_v52 = vadd.f32 -0.5, %v4849_v58  ;;  %v4907_v2 = vadd.f32 -0.5, %v4853_v21  ;;  %v4910_v51 = vadd.f32 -0.5, %v4856_v29 }
 0x19a   :  { %6773 = vst [vmem:[#allocation89_spill] sm:$0xff] %v4856_v29  ;;  %6774 = vst [vmem:[#allocation74_spill] sm:$0xff] %v4859_v39  ;;  %2487 = vrcp.f32 %v4853_v21  ;;  %v4914_v53 = vadd.f32 -0.5, %v4859_v39  ;;  %v4917_v31 = vadd.f32 -0.5, %v4863_v40  ;;  %v4920_v45 = vadd.f32 -0.5, %v4866_v19 }
 0x19b   :  { %6775 = vst [vmem:[#allocation72_spill] sm:$0xff] %v4863_v40  ;;  %6776 = vst [vmem:[#allocation130_spill] sm:$0xff] %v4866_v19  ;;  %2489 = vrcp.f32 %v4856_v29  ;;  %v4924_v5 = vadd.f32 -0.5, %v4869_v9  ;;  %v4927_v35 = vadd.f32 -0.5, %v4873_v36  ;;  %v4930_v57 = vadd.f32 -0.5, %v4876_v60 }
 0x19c   :  { %6777 = vst [vmem:[#allocation106_spill] sm:$0xff] %v4869_v9  ;;  %6778 = vst [vmem:[#allocation75_spill] sm:$0xff] %v4873_v36  ;;  %2491 = vrcp.f32 %v4859_v39  ;;  %v4934_v59 = vadd.f32 -0.5, %v4879_v3  ;;  %v1721_v8 = vsub.f32 %v6798_v54, %v6797_v55  ;;  %v1722_v11 = vsub.f32 %v6800_v44, %v6799_v1  ;;  %v6830_v1 = vld [vmem:[#allocation138_spill] sm:$0xff] }
 0x19d   :  { %6779 = vst [vmem:[#allocation77_spill] sm:$0xff] %v4876_v60  ;;  %6780 = vst [vmem:[#allocation111_spill] sm:$0xff] %v4879_v3  ;;  %v4940_v27 = vpop.eup %2473  ;;  %2493 = vrcp.f32 %v4863_v40  ;;  %v1723_v24 = vsub.f32 %v6802_v48, %v6801_v49 }
 0x19e   :  { %6781 = vst [vmem:[#allocation76_spill] sm:$0xff] %v4884_v46  ;;  %6782 = vst [vmem:[#allocation125_spill] sm:$0xff] %v4887_v63  ;;  %v4949_v6 = vpop.eup %2475  ;;  %2495 = vrcp.f32 %v4866_v19  ;;  %v4954_v44 = vmul.f32 %v4940_v27, %v4940_v27  ;;  %v5030_v55 = vmul.f32 %v1721_v8, %v6830_v1 }
 0x19f   :  { %6783 = vst [vmem:[#allocation110_spill] sm:$0xff] %v4890_v20  ;;  %6784 = vst [vmem:[#allocation126_spill] sm:$0xff] %v4894_v61  ;;  %v4960_v23 = vpop.eup %2477  ;;  %2497 = vrcp.f32 %v4869_v9  ;;  %v4965_v43 = vmul.f32 %v4949_v6, %v4949_v6 }
 0x1a0   :  { %6785 = vst [vmem:[#allocation83_spill] sm:$0xff] %v4897_v16  ;;  %6786 = vst [vmem:[#allocation109_spill] sm:$0xff] %v4900_v50  ;;  %v4971_v0 = vpop.eup %2479  ;;  %2499 = vrcp.f32 %v4873_v36  ;;  %v4976_v48 = vmul.f32 %v4960_v23, %v4960_v23  ;;  %v1433_v22 = vmul.f32 -0.0005952381, %v4954_v44 }
 0x1a1   :  { %6787 = vst [vmem:[#allocation113_spill] sm:$0xff] %v4904_v52  ;;  %6788 = vst [vmem:[#allocation128_spill] sm:$0xff] %v4907_v2  ;;  %2501 = vrcp.f32 %v4876_v60  ;;  %v4986_v13 = vmul.f32 %v4971_v0, %v4971_v0  ;;  %v1434_v42 = vmul.f32 -0.0005952381, %v4965_v43 }
 0x1a2   :  { %6789 = vst [vmem:[#allocation84_spill] sm:$0xff] %v4910_v51  ;;  %6790 = vst [vmem:[#allocation94_spill] sm:$0xff] %v4914_v53  ;;  %2503 = vrcp.f32 %v4879_v3  ;;  %v1435_v2 = vmul.f32 -0.0005952381, %v4976_v48  ;;  %v1449_v25 = vadd.f32 0.0007936508, %v1433_v22 }
 0x1a3   :  { %6791 = vst [vmem:[#allocation115_spill] sm:$0xff] %v4917_v31  ;;  %6792 = vst [vmem:[#allocation16_spill] sm:$0xff] %v4920_v45  ;;  %v1436_v52 = vmul.f32 -0.0005952381, %v4986_v13  ;;  %v1450_v10 = vadd.f32 0.0007936508, %v1434_v42  ;;  %2505 = vlog2.f32 %v4813_v28 }
 0x1a4   :  { %6793 = vst [vmem:[#allocation87_spill] sm:$0xff] %v4924_v5  ;;  %6794 = vst [vmem:[#allocation95_spill] sm:$0xff] %v4927_v35  ;;  %v4981_v5 = vpop.eup %2481  ;;  %v1451_v9 = vadd.f32 0.0007936508, %v1435_v2  ;;  %v6833_v45 = vld [vmem:[#allocation139_spill] sm:$0xff]  ;;  %2507 = vlog2.f32 %v4822_v37 }
 0x1a5   :  { %6795 = vst [vmem:[#allocation121_spill] sm:$0xff] %v4930_v57  ;;  %6796 = vst [vmem:[#allocation64_spill] sm:$0xff] %v4934_v59  ;;  %v4991_v51 = vpop.eup %2483  ;;  %v4996_v35 = vmul.f32 %v4981_v5, %v4981_v5  ;;  %v5040_v61 = vmul.f32 %v1722_v11, %v6833_v45  ;;  %v1452_v11 = vadd.f32 0.0007936508, %v1436_v52  ;;  %2509 = vlog2.f32 %v4831_v14 }
 0x1a6   :  { %v5001_v47 = vpop.eup %2485  ;;  %v5005_v16 = vmul.f32 %v4991_v51, %v4991_v51  ;;  %6831 = vst [vmem:[#allocation96_spill] sm:$0xff] %v5030_v55  ;;  %v6836_v55 = vld [vmem:[#allocation140_spill] sm:$0xff]  ;;  %v1467_v38 = vmul.f32 %v1451_v9, %v4976_v48  ;;  %2511 = vlog2.f32 %v4840_v4 }
 0x1a7   :  { %v5013_v36 = vpop.eup %2487  ;;  %v5017_v50 = vmul.f32 %v5001_v47, %v5001_v47  ;;  %v1437_v60 = vmul.f32 -0.0005952381, %v4996_v35  ;;  %6834 = vst [vmem:[#allocation65_spill] sm:$0xff] %v5040_v61  ;;  %v5051_v34 = vmul.f32 %v1723_v24, %v6836_v55  ;;  %v1465_v61 = vmul.f32 %v1449_v25, %v4954_v44 }
 0x1a8   :  { %v5022_v19 = vpop.eup %2489  ;;  %v5026_v3 = vmul.f32 %v5013_v36, %v5013_v36  ;;  %v1438_v31 = vmul.f32 -0.0005952381, %v5005_v16 }
 0x1a9   :  { %6829 = vst [vmem:[#allocation122_spill] sm:$0xff] %v5022_v19  ;;  %v5032_v49 = vpop.eup %2491  ;;  %v5036_v22 = vmul.f32 %v5022_v19, %v5022_v19  ;;  %v1439_v8 = vmul.f32 -0.0005952381, %v5017_v50  ;;  %6837 = vst [vmem:[#allocation97_spill] sm:$0xff] %v5051_v34  ;;  %v1453_v24 = vadd.f32 0.0007936508, %v1437_v60  ;;  %v1466_v34 = vmul.f32 %v1450_v10, %v4965_v43 }
 0x1aa   :  { %6832 = vst [vmem:[#allocation92_spill] sm:$0xff] %v5032_v49  ;;  %v5042_v53 = vpop.eup %2493  ;;  %v5046_v42 = vmul.f32 %v5032_v49, %v5032_v49  ;;  %v1440_v1 = vmul.f32 -0.0005952381, %v5026_v3  ;;  %v1454_v25 = vadd.f32 0.0007936508, %v1438_v31 }
 0x1ab   :  { %6835 = vst [vmem:[#allocation107_spill] sm:$0xff] %v5042_v53  ;;  %v5053_v59 = vpop.eup %2495  ;;  %v5057_v2 = vmul.f32 %v5042_v53, %v5042_v53  ;;  %v1441_v45 = vmul.f32 -0.0005952381, %v5036_v22  ;;  %v1455_v10 = vadd.f32 0.0007936508, %v1439_v8  ;;  %v1468_v8 = vmul.f32 %v1452_v11, %v4986_v13 }
 0x1ac   :  { %6838 = vst [vmem:[#allocation124_spill] sm:$0xff] %v5053_v59  ;;  %v5061_v57 = vpop.eup %2497  ;;  %v5065_v17 = vmul.f32 %v5053_v59, %v5053_v59  ;;  %v1442_v55 = vmul.f32 -0.0005952381, %v5046_v42  ;;  %v1456_v15 = vadd.f32 0.0007936508, %v1440_v1  ;;  %v1469_v1 = vmul.f32 %v1453_v24, %v4996_v35 }
 0x1ad   :  { %6839 = vst [vmem:[#allocation98_spill] sm:$0xff] %v5061_v57  ;;  %v5069_v12 = vpop.eup %2499  ;;  %v5073_v41 = vmul.f32 %v5061_v57, %v5061_v57  ;;  %v1443_v52 = vmul.f32 -0.0005952381, %v5057_v2  ;;  %v1457_v31 = vadd.f32 0.0007936508, %v1441_v45  ;;  %v1471_v45 = vmul.f32 %v1455_v10, %v5017_v50 }
 0x1ae   :  { %6840 = vst [vmem:[#allocation108_spill] sm:$0xff] %v5069_v12  ;;  %v5077_v40 = vpop.eup %2501  ;;  %v5081_v18 = vmul.f32 %v5069_v12, %v5069_v12  ;;  %v1444_v60 = vmul.f32 -0.0005952381, %v5065_v17  ;;  %v1458_v39 = vadd.f32 0.0007936508, %v1442_v55  ;;  %v1472_v46 = vmul.f32 %v1456_v15, %v5026_v3 }
 0x1af   :  { %6841 = vst [vmem:[#allocation66_spill] sm:$0xff] %v5077_v40  ;;  %v5084_v54 = vpop.eup %2503  ;;  %v1431_v56 = vmul.f32 %v5077_v40, %v5077_v40  ;;  %v1445_v20 = vmul.f32 -0.0005952381, %v5073_v41  ;;  %v1459_v29 = vadd.f32 0.0007936508, %v1443_v52  ;;  %v1470_v40 = vmul.f32 %v1454_v25, %v5005_v16 }
 0x1b0   :  { %6842 = vst [vmem:[#allocation100_spill] sm:$0xff] %v5084_v54  ;;  %v1432_v9 = vmul.f32 %v5084_v54, %v5084_v54  ;;  %v1446_v63 = vmul.f32 -0.0005952381, %v5081_v18  ;;  %v1460_v21 = vadd.f32 0.0007936508, %v1444_v60  ;;  %v1473_v54 = vmul.f32 %v1457_v31, %v5036_v22 }
 0x1b1   :  { %v1447_v12 = vmul.f32 -0.0005952381, %v1431_v56  ;;  %v1461_v58 = vadd.f32 0.0007936508, %v1445_v20  ;;  %v1474_v52 = vmul.f32 %v1458_v39, %v5046_v42  ;;  %v1475_v20 = vmul.f32 %v1459_v29, %v5057_v2 }
 0x1b2   :  { %v1448_v57 = vmul.f32 -0.0005952381, %v1432_v9  ;;  %v1462_v59 = vadd.f32 0.0007936508, %v1446_v63  ;;  %v1476_v11 = vmul.f32 %v1460_v21, %v5065_v17  ;;  %v1481_v7 = vadd.f32 -0.0027777778, %v1465_v61 }
 0x1b3   :  { %v1463_v55 = vadd.f32 0.0007936508, %v1447_v12  ;;  %v1477_v24 = vmul.f32 %v1461_v58, %v5073_v41  ;;  %v1482_v25 = vadd.f32 -0.0027777778, %v1466_v34  ;;  %v1483_v53 = vadd.f32 -0.0027777778, %v1467_v38 }
 0x1b4   :  { %v1464_v60 = vadd.f32 0.0007936508, %v1448_v57  ;;  %v1478_v63 = vmul.f32 %v1462_v59, %v5081_v18  ;;  %v1484_v49 = vadd.f32 -0.0027777778, %v1468_v8  ;;  %v1485_v15 = vadd.f32 -0.0027777778, %v1469_v1 }
 0x1b5   :  { %v1479_v10 = vmul.f32 %v1463_v55, %v1431_v56  ;;  %v1486_v30 = vadd.f32 -0.0027777778, %v1470_v40  ;;  %v1487_v31 = vadd.f32 -0.0027777778, %v1471_v45  ;;  %v1488_v19 = vadd.f32 -0.0027777778, %v1472_v46 }
 0x1b6   :  { %v1480_v12 = vmul.f32 %v1464_v60, %v1432_v9  ;;  %v1489_v39 = vadd.f32 -0.0027777778, %v1473_v54  ;;  %v1490_v29 = vadd.f32 -0.0027777778, %v1474_v52  ;;  %v1491_v57 = vadd.f32 -0.0027777778, %v1475_v20 }
 0x1b7   :  { %v6843_v21 = vld [vmem:[#allocation141_spill] sm:$0xff]  ;;  %v6844_v58 = vsub.f32 %v6804_v26, %v6803_v32  ;;  %v1492_v34 = vadd.f32 -0.0027777778, %v1476_v11  ;;  %v1493_v38 = vadd.f32 -0.0027777778, %v1477_v24  ;;  %v1497_v8 = vmul.f32 %v1481_v7, %v4954_v44  ;;  %v6846_v24 = vld [vmem:[#allocation142_spill] sm:$0xff] }
 0x1b8   :  { %v1494_v59 = vadd.f32 -0.0027777778, %v1478_v63  ;;  %v1495_v1 = vadd.f32 -0.0027777778, %v1479_v10  ;;  %v1496_v40 = vadd.f32 -0.0027777778, %v1480_v12  ;;  %v1498_v46 = vmul.f32 %v1482_v25, %v4965_v43  ;;  %v2506_v63 = vpop.eup %2505 }
 0x1b9   :  { %v5108_v61 = vmul.f32 %v6844_v58, %v6843_v21  ;;  %v1499_v45 = vmul.f32 %v1483_v53, %v4976_v48  ;;  %v1500_v54 = vmul.f32 %v1484_v49, %v4986_v13  ;;  %v1501_v55 = vmul.f32 %v1485_v15, %v4996_v35  ;;  %v6943_v32 = vld [vmem:[#allocation104_spill] sm:$0xff] }
 0x1ba   :  { %v1502_v52 = vmul.f32 %v1486_v30, %v5005_v16  ;;  %v1503_v60 = vmul.f32 %v1487_v31, %v5017_v50  ;;  %v1504_v20 = vmul.f32 %v1488_v19, %v5026_v3  ;;  %v1505_v11 = vmul.f32 %v1489_v39, %v5036_v22 }
 0x1bb   :  { %6845 = vst [vmem:[#allocation152_spill] sm:$0xff] %v5108_v61  ;;  %v1506_v7 = vmul.f32 %v1490_v29, %v5046_v42  ;;  %v1507_v44 = vmul.f32 %v1491_v57, %v5057_v2  ;;  %v1508_v53 = vmul.f32 %v1492_v34, %v5065_v17  ;;  %v1513_v48 = vadd.f32 0.083333336, %v1497_v8  ;;  %v6944_v61 = vld [vmem:[#allocation113_spill] sm:$0xff] }
 0x1bc   :  { %v1509_v13 = vmul.f32 %v1493_v38, %v5073_v41  ;;  %v1510_v30 = vmul.f32 %v1494_v59, %v5081_v18  ;;  %v1511_v16 = vmul.f32 %v1495_v1, %v1431_v56  ;;  %v1514_v50 = vadd.f32 0.083333336, %v1498_v46  ;;  %v2508_v59 = vpop.eup %2507  ;;  %v6854_v46 = vld [vmem:[#allocation76_spill] sm:$0xff] }
 0x1bd   :  { %v1512_v19 = vmul.f32 %v1496_v40, %v1432_v9  ;;  %v1515_v3 = vadd.f32 0.083333336, %v1499_v45  ;;  %v1516_v35 = vadd.f32 0.083333336, %v1500_v54  ;;  %v1517_v49 = vadd.f32 0.083333336, %v1501_v55  ;;  %v2510_v45 = vpop.eup %2509 }
 0x1be   :  { %v1518_v43 = vadd.f32 0.083333336, %v1502_v52  ;;  %v1519_v22 = vadd.f32 0.083333336, %v1503_v60  ;;  %v1520_v42 = vadd.f32 0.083333336, %v1504_v20  ;;  %v6847_v17 = vsub.f32 %v6806_v33, %v6805_v62 }
 0x1bf   :  { %v1521_v25 = vadd.f32 0.083333336, %v1505_v11  ;;  %v1522_v41 = vadd.f32 0.083333336, %v1506_v7  ;;  %v1523_v10 = vadd.f32 0.083333336, %v1507_v44  ;;  %v5133_v18 = vmul.f32 %v4940_v27, %v1513_v48 }
 0x1c0   :  { %v5130_v2 = vmul.f32 %v6847_v17, %v6846_v24  ;;  %v1524_v56 = vadd.f32 0.083333336, %v1508_v53  ;;  %v1525_v9 = vadd.f32 0.083333336, %v1509_v13  ;;  %v1526_v12 = vadd.f32 0.083333336, %v1510_v30 }
 0x1c1   :  { %v5136_v15 = vmul.f32 %v4949_v6, %v1514_v50  ;;  %v1527_v31 = vadd.f32 0.083333336, %v1511_v16  ;;  %v1528_v39 = vadd.f32 0.083333336, %v1512_v19  ;;  %v5139_v29 = vmul.f32 %v4960_v23, %v1515_v3  ;;  %v6849_v23 = vld [vmem:[#allocation122_spill] sm:$0xff]  ;;  %v6853_v40 = vld [vmem:[#allocation88_spill] sm:$0xff] }
 0x1c2   :  { %6848 = vst [vmem:[#allocation153_spill] sm:$0xff] %v5130_v2  ;;  %v5142_v57 = vmul.f32 %v4971_v0, %v1516_v35  ;;  %v5145_v21 = vmul.f32 %v4981_v5, %v1517_v49  ;;  %v5148_v27 = vmul.f32 %v4991_v51, %v1518_v43  ;;  %v1562_v58 = vmul.f32 0.6931472, %v2506_v63  ;;  %v6850_v0 = vld [vmem:[#allocation91_spill] sm:$0xff]  ;;  %v6851_v5 = vld [vmem:[#allocation92_spill] sm:$0xff]  ;;  %v6856_v55 = vld [vmem:[#allocation98_spill] sm:$0xff] }
 0x1c3   :  { %v5152_v6 = vmul.f32 %v5001_v47, %v1519_v22  ;;  %v5155_v34 = vmul.f32 %v5013_v36, %v1520_v42  ;;  %v5158_v38 = vmul.f32 %v6849_v23, %v1521_v25  ;;  %2513 = vlog2.f32 %v6850_v0  ;;  %v6852_v51 = vld [vmem:[#allocation107_spill] sm:$0xff]  ;;  %v6855_v54 = vld [vmem:[#allocation124_spill] sm:$0xff]  ;;  %v6859_v53 = vld [vmem:[#allocation105_spill] sm:$0xff] }
 0x1c4   :  { %v5162_v8 = vmul.f32 %v6851_v5, %v1522_v41  ;;  %v5165_v1 = vmul.f32 %v6852_v51, %v1523_v10  ;;  %2515 = vlog2.f32 %v6853_v40  ;;  %v1593_v47 = vmul.f32 %v6854_v46, %v1562_v58  ;;  %v6857_v20 = vld [vmem:[#allocation123_spill] sm:$0xff]  ;;  %v6858_v11 = vld [vmem:[#allocation108_spill] sm:$0xff]  ;;  %v6860_v13 = vld [vmem:[#allocation66_spill] sm:$0xff] }
 0x1c5   :  { %v5170_v36 = vmul.f32 %v6855_v54, %v1524_v56  ;;  %v5173_v52 = vmul.f32 %v6856_v55, %v1525_v9  ;;  %v1564_v60 = vmul.f32 0.6931472, %v2508_v59  ;;  %2517 = vlog2.f32 %v6857_v20  ;;  %v6861_v16 = vld [vmem:[#allocation100_spill] sm:$0xff]  ;;  %v6862_v19 = vld [vmem:[#allocation89_spill] sm:$0xff]  ;;  %v6864_v49 = vld [vmem:[#allocation74_spill] sm:$0xff] }
 0x1c6   :  { %v5177_v7 = vmul.f32 %v6858_v11, %v1526_v12  ;;  %v1566_v44 = vmul.f32 0.6931472, %v2510_v45  ;;  %2519 = vlog2.f32 %v6859_v53  ;;  %v1609_v48 = vsub.f32 %v1593_v47, %v4813_v28  ;;  %v6863_v3 = vld [vmem:[#allocation125_spill] sm:$0xff]  ;;  %v6865_v43 = vld [vmem:[#allocation110_spill] sm:$0xff]  ;;  %v6866_v42 = vld [vmem:[#allocation143_spill] sm:$0xff] }
 0x1c7   :  { %v5182_v30 = vmul.f32 %v6860_v13, %v1527_v31  ;;  %v5185_v50 = vmul.f32 %v6861_v16, %v1528_v39  ;;  %2521 = vlog2.f32 %v6862_v19  ;;  %v1594_v35 = vmul.f32 %v6863_v3, %v1564_v60  ;;  %v6867_v24 = vld [vmem:[#allocation53_spill] sm:$0xff]  ;;  %v6868_v17 = vld [vmem:[#allocation23_spill] sm:$0xff]  ;;  %v6871_v28 = vld [vmem:[#allocation144_spill] sm:$0xff] }
 0x1c8   :  { %2523 = vlog2.f32 %v6864_v49  ;;  %v1595_v22 = vmul.f32 %v6865_v43, %v1566_v44  ;;  %v6869_v63 = vsub.f32 %v6867_v24, %v6868_v17  ;;  %v6872_v41 = vld [vmem:[#allocation54_spill] sm:$0xff]  ;;  %v6876_v12 = vld [vmem:[#allocation72_spill] sm:$0xff]  ;;  %v6877_v31 = vld [vmem:[#allocation145_spill] sm:$0xff]  ;;  %v1625_v3 = vadd.f32 0.9189385, %v1609_v48 }
 0x1c9   :  { %v6873_v10 = vld [vmem:[#allocation26_spill] sm:$0xff]  ;;  %2525 = vlog2.f32 %v6876_v12  ;;  %v6878_v39 = vld [vmem:[#allocation55_spill] sm:$0xff]  ;;  %v6879_v58 = vld [vmem:[#allocation29_spill] sm:$0xff]  ;;  %v1610_v16 = vsub.f32 %v1594_v35, %v4822_v37 }
 0x1ca   :  { %v5195_v25 = vmul.f32 %v6869_v63, %v6866_v42  ;;  %v6874_v56 = vsub.f32 %v6872_v41, %v6873_v10  ;;  %v6880_v23 = vsub.f32 %v6878_v39, %v6879_v58  ;;  %v6882_v5 = vld [vmem:[#allocation146_spill] sm:$0xff]  ;;  %v6883_v51 = vld [vmem:[#allocation56_spill] sm:$0xff]  ;;  %v6884_v46 = vld [vmem:[#allocation31_spill] sm:$0xff]  ;;  %v1611_v26 = vsub.f32 %v1595_v22, %v4831_v14 }
 0x1cb   :  { %v6885_v47 = vsub.f32 %v6883_v51, %v6884_v46  ;;  %v6887_v54 = vld [vmem:[#allocation147_spill] sm:$0xff]  ;;  %v6888_v55 = vld [vmem:[#allocation57_spill] sm:$0xff]  ;;  %v6889_v60 = vld [vmem:[#allocation32_spill] sm:$0xff] }
 0x1cc   :  { %6870 = vst [vmem:[#allocation154_spill] sm:$0xff] %v5195_v25  ;;  %v5201_v9 = vmul.f32 %v6874_v56, %v6871_v28  ;;  %v5208_v59 = vmul.f32 %v6880_v23, %v6877_v31  ;;  %v6890_v11 = vsub.f32 %v6888_v55, %v6889_v60  ;;  %v6892_v13 = vld [vmem:[#allocation130_spill] sm:$0xff]  ;;  %v6893_v43 = vld [vmem:[#allocation148_spill] sm:$0xff]  ;;  %v6895_v63 = vld [vmem:[#allocation33_spill] sm:$0xff]  ;;  %v1627_v14 = vadd.f32 0.9189385, %v1611_v26 }
 0x1cd   :  { %v5214_v45 = vmul.f32 %v6885_v47, %v6882_v5  ;;  %2527 = vlog2.f32 %v6892_v13  ;;  %v6894_v42 = vld [vmem:[#allocation58_spill] sm:$0xff]  ;;  %v6899_v23 = vld [vmem:[#allocation149_spill] sm:$0xff]  ;;  %v6900_v5 = vld [vmem:[#allocation59_spill] sm:$0xff] }
 0x1ce   :  { %6875 = vst [vmem:[#allocation155_spill] sm:$0xff] %v5201_v9  ;;  %6881 = vst [vmem:[#allocation156_spill] sm:$0xff] %v5208_v59  ;;  %v5220_v44 = vmul.f32 %v6890_v11, %v6887_v54  ;;  %v6896_v28 = vsub.f32 %v6894_v42, %v6895_v63  ;;  %v6898_v31 = vld [vmem:[#allocation106_spill] sm:$0xff]  ;;  %v6905_v11 = vld [vmem:[#allocation60_spill] sm:$0xff] }
 0x1cf   :  { %6886 = vst [vmem:[#allocation73_spill] sm:$0xff] %v5214_v45  ;;  %2529 = vlog2.f32 %v6898_v31  ;;  %v6901_v47 = vld [vmem:[#allocation34_spill] sm:$0xff]  ;;  %v6906_v39 = vld [vmem:[#allocation35_spill] sm:$0xff]  ;;  %v6910_v35 = vld [vmem:[#allocation61_spill] sm:$0xff] }
 0x1d0   :  { %6891 = vst [vmem:[#allocation135_spill] sm:$0xff] %v5220_v44  ;;  %v5228_v56 = vmul.f32 %v6896_v28, %v6893_v43  ;;  %v6902_v51 = vsub.f32 %v6900_v5, %v6901_v47  ;;  %v6904_v54 = vld [vmem:[#allocation150_spill] sm:$0xff]  ;;  %v6907_v41 = vsub.f32 %v6905_v11, %v6906_v39  ;;  %v6909_v48 = vld [vmem:[#allocation151_spill] sm:$0xff]  ;;  %v6911_v24 = vld [vmem:[#allocation36_spill] sm:$0xff]  ;;  %v2512_v28 = vpop.eup %2511 }
 0x1d1   :  { %v6912_v42 = vsub.f32 %v6910_v35, %v6911_v24  ;;  %v6914_v33 = vld [vmem:[#allocation75_spill] sm:$0xff]  ;;  %v6915_v5 = vld [vmem:[#allocation162_spill] sm:$0xff]  ;;  %v2514_v35 = vpop.eup %2513  ;;  %v6937_v45 = vld [vmem:[#allocation137_spill] sm:$0xff] }
 0x1d2   :  { %6897 = vst [vmem:[#allocation157_spill] sm:$0xff] %v5228_v56  ;;  %v5235_v55 = vmul.f32 %v6902_v51, %v6899_v23  ;;  %v5241_v37 = vmul.f32 %v6907_v41, %v6904_v54  ;;  %2531 = vlog2.f32 %v6914_v33  ;;  %v6916_v51 = vld [vmem:[#allocation62_spill] sm:$0xff]  ;;  %v6917_v23 = vld [vmem:[#allocation37_spill] sm:$0xff]  ;;  %v6920_v11 = vld [vmem:[#allocation163_spill] sm:$0xff]  ;;  %v2516_v25 = vpop.eup %2515 }
 0x1d3   :  { %v5247_v43 = vmul.f32 %v6912_v42, %v6909_v48  ;;  %v6921_v41 = vld [vmem:[#allocation63_spill] sm:$0xff]  ;;  %v6922_v54 = vld [vmem:[#allocation38_spill] sm:$0xff]  ;;  %v1568_v42 = vmul.f32 0.6931472, %v2512_v28  ;;  %v6925_v48 = vld [vmem:[#allocation77_spill] sm:$0xff] }
 0x1d4   :  { %6903 = vst [vmem:[#allocation158_spill] sm:$0xff] %v5235_v55  ;;  %6908 = vst [vmem:[#allocation127_spill] sm:$0xff] %v5241_v37  ;;  %v6918_v55 = vsub.f32 %v6916_v51, %v6917_v23  ;;  %v6923_v37 = vsub.f32 %v6921_v41, %v6922_v54  ;;  %2533 = vlog2.f32 %v6925_v48  ;;  %v1570_v51 = vmul.f32 0.6931472, %v2514_v35  ;;  %v6931_v41 = vld [vmem:[#allocation126_spill] sm:$0xff]  ;;  %v6935_v35 = vld [vmem:[#allocation136_spill] sm:$0xff] }
 0x1d5   :  { %6913 = vst [vmem:[#allocation159_spill] sm:$0xff] %v5247_v43  ;;  %v1596_v28 = vmul.f32 %v6931_v41, %v1568_v42  ;;  %v6940_v54 = vld [vmem:[#allocation83_spill] sm:$0xff] }
 0x1d6   :  { %v5255_v56 = vmul.f32 %v6918_v55, %v6915_v5  ;;  %v5261_v44 = vmul.f32 %v6923_v37, %v6920_v11  ;;  %v6930_v55 = vld [vmem:[#allocation111_spill] sm:$0xff]  ;;  %v1626_v5 = vadd.f32 0.9189385, %v1610_v16  ;;  %v2518_v11 = vpop.eup %2517  ;;  %v1572_v37 = vmul.f32 0.6931472, %v2516_v25 }
 0x1d7   :  { %2535 = vlog2.f32 %v6930_v55  ;;  %v2520_v43 = vpop.eup %2519  ;;  %v1574_v9 = vmul.f32 0.6931472, %v2518_v11  ;;  %v1597_v11 = vmul.f32 %v6940_v54, %v1570_v51  ;;  %v6946_v51 = vld [vmem:[#allocation41_spill] sm:$0xff] }
 0x1d8   :  { %6919 = vst [vmem:[#allocation78_spill] sm:$0xff] %v5255_v56  ;;  %6924 = vst [vmem:[#allocation160_spill] sm:$0xff] %v5261_v44  ;;  %v5270_v56 = vadd.f32 %v1625_v3, %v5133_v18  ;;  %2537 = vlog2.f32 %v6935_v35  ;;  %v2522_v18 = vpop.eup %2521  ;;  %v1576_v3 = vmul.f32 0.6931472, %v2520_v43  ;;  %v5287_v26 = vadd.f32 %v1626_v5, %v5136_v15  ;;  %v6941_v35 = vld [vmem:[#allocation103_spill] sm:$0xff]  ;;  %v6942_v43 = vld [vmem:[#allocation109_spill] sm:$0xff] }
 0x1d9   :  { %2539 = vlog2.f32 %v6937_v45  ;;  %v2524_v44 = vpop.eup %2523  ;;  %v1578_v59 = vmul.f32 0.6931472, %v2522_v18  ;;  %v1598_v62 = vmul.f32 %v6942_v43, %v1572_v37  ;;  %v1612_v45 = vsub.f32 %v1596_v28, %v4840_v4  ;;  %v6945_v18 = vld [vmem:[#allocation128_spill] sm:$0xff]  ;;  %v6949_v28 = vld [vmem:[#allocation115_spill] sm:$0xff] }
 0x1da   :  { %2541 = vlog2.f32 %v6941_v35  ;;  %v2526_v16 = vpop.eup %2525  ;;  %v1580_v22 = vmul.f32 0.6931472, %v2524_v44  ;;  %v1599_v42 = vmul.f32 %v6944_v61, %v1574_v9  ;;  %v1600_v10 = vmul.f32 %v6945_v18, %v1576_v3  ;;  %v6947_v35 = vld [vmem:[#allocation84_spill] sm:$0xff]  ;;  %v6948_v44 = vld [vmem:[#allocation94_spill] sm:$0xff] }
 0x1db   :  { %2543 = vlog2.f32 %v6943_v32  ;;  %v2528_v41 = vpop.eup %2527  ;;  %v1582_v25 = vmul.f32 0.6931472, %v2526_v16  ;;  %v1601_v17 = vmul.f32 %v6947_v35, %v1578_v59  ;;  %v5300_v37 = vadd.f32 %v1627_v14, %v5139_v29  ;;  %v6951_v15 = vld [vmem:[#allocation16_spill] sm:$0xff]  ;;  %v6952_v29 = vld [vmem:[#allocation87_spill] sm:$0xff] }
 0x1dc   :  { %v2530_v54 = vpop.eup %2529  ;;  %v1584_v5 = vmul.f32 0.6931472, %v2528_v41  ;;  %v1602_v2 = vmul.f32 %v6948_v44, %v1580_v22  ;;  %v1613_v61 = vsub.f32 %v1597_v11, %v6850_v0  ;;  %v1614_v59 = vsub.f32 %v1598_v62, %v6853_v40  ;;  %v6953_v0 = vld [vmem:[#allocation95_spill] sm:$0xff] }
 0x1dd   :  { %v2532_v4 = vpop.eup %2531  ;;  %v1586_v32 = vmul.f32 0.6931472, %v2530_v54  ;;  %v1603_v16 = vmul.f32 %v6949_v28, %v1582_v25  ;;  %v1628_v35 = vadd.f32 0.9189385, %v1612_v45  ;;  %v1615_v54 = vsub.f32 %v1599_v42, %v6857_v20 }
 0x1de   :  { %v2534_v43 = vpop.eup %2533  ;;  %v1588_v18 = vmul.f32 0.6931472, %v2532_v4  ;;  %v1604_v41 = vmul.f32 %v6951_v15, %v1584_v5  ;;  %v1616_v25 = vsub.f32 %v1600_v10, %v6859_v53  ;;  %v1617_v3 = vsub.f32 %v1601_v17, %v6862_v19  ;;  %v6954_v15 = vld [vmem:[#allocation121_spill] sm:$0xff] }
 0x1df   :  { %v1590_v44 = vmul.f32 0.6931472, %v2534_v43  ;;  %v1605_v14 = vmul.f32 %v6952_v29, %v1586_v32  ;;  %v1618_v4 = vsub.f32 %v1602_v2, %v6864_v49  ;;  %v1619_v62 = vsub.f32 %v1603_v16, %v6876_v12  ;;  %v6955_v43 = vld [vmem:[#allocation64_spill] sm:$0xff]  ;;  %v6956_v2 = vld [vmem:[#allocation43_spill] sm:$0xff] }
 0x1e0   :  { %v1606_v11 = vmul.f32 %v6953_v0, %v1588_v18  ;;  %v1620_v40 = vsub.f32 %v1604_v41, %v6892_v13  ;;  %v1629_v45 = vadd.f32 0.9189385, %v1613_v61  ;;  %v1630_v42 = vadd.f32 0.9189385, %v1614_v59 }
 0x1e1   :  { %v2536_v22 = vpop.eup %2535  ;;  %v1607_v5 = vmul.f32 %v6954_v15, %v1590_v44  ;;  %v1621_v53 = vsub.f32 %v1605_v14, %v6898_v31  ;;  %v1631_v19 = vadd.f32 0.9189385, %v1615_v54  ;;  %v1632_v17 = vadd.f32 0.9189385, %v1616_v25 }
 0x1e2   :  { %v1592_v28 = vmul.f32 0.6931472, %v2536_v22  ;;  %v2538_v9 = vpop.eup %2537  ;;  %v1622_v10 = vsub.f32 %v1606_v11, %v6914_v33  ;;  %v6957_v22 = vld [vmem:[#allocation44_spill] sm:$0xff]  ;;  %v1633_v41 = vadd.f32 0.9189385, %v1617_v3  ;;  %v1644_v33 = vadd.f32 %v1628_v35, %v5142_v57  ;;  %v6958_v57 = vld [vmem:[#allocation67_spill] sm:$0xff] }
 0x1e3   :  { %v2540_v32 = vpop.eup %2539  ;;  %v1623_v13 = vsub.f32 %v1607_v5, %v6925_v48  ;;  %v1634_v44 = vadd.f32 0.9189385, %v1618_v4  ;;  %v1635_v31 = vadd.f32 0.9189385, %v1619_v62  ;;  %v1636_v29 = vadd.f32 0.9189385, %v1620_v40 }
 0x1e4   :  { %v1608_v20 = vmul.f32 %v6955_v43, %v1592_v28  ;;  %v2542_v18 = vpop.eup %2541  ;;  %v5328_v59 = vadd.f32 %v1629_v45, %v5145_v21  ;;  %v1637_v14 = vadd.f32 0.9189385, %v1621_v53  ;;  %v1638_v54 = vadd.f32 0.9189385, %v1622_v10  ;;  %v6960_v5 = vld [vmem:[#allocation69_spill] sm:$0xff]  ;;  %v6966_v53 = vld [vmem:[#allocation46_spill] sm:$0xff] }
 0x1e5   :  { %v2544_v16 = vpop.eup %2543  ;;  %v5331_v25 = vadd.f32 %v1630_v42, %v5148_v27  ;;  %v1658_v28 = vmul.f32 0.6931472, %v2538_v9  ;;  %v5334_v0 = vadd.f32 %v1631_v19, %v5152_v6  ;;  %v1660_v48 = vmul.f32 0.6931472, %v2540_v32  ;;  %v6959_v9 = vld [vmem:[#allocation68_spill] sm:$0xff]  ;;  %v6967_v10 = vld [vmem:[#allocation71_spill] sm:$0xff] }
 0x1e6   :  { %v1624_v61 = vsub.f32 %v1608_v20, %v6930_v55  ;;  %v1662_v55 = vmul.f32 0.6931472, %v2542_v18  ;;  %v1664_v3 = vmul.f32 0.6931472, %v2544_v16  ;;  %v1639_v11 = vadd.f32 0.9189385, %v1623_v13 }
 0x1e7   :  { %v5337_v15 = vadd.f32 %v1632_v17, %v5155_v34  ;;  %2545 = vlog2.f32 %v6958_v57  ;;  %v5341_v21 = vadd.f32 %v1633_v41, %v5158_v38  ;;  %v5344_v27 = vadd.f32 %v1634_v44, %v5162_v8  ;;  %v6961_v8 = vld [vmem:[#allocation70_spill] sm:$0xff]  ;;  %v6970_v19 = vld [vmem:[#allocation15_spill] sm:$0xff]  ;;  %v6971_v16 = vld [vmem:[#allocation132_spill] sm:$0xff] }
 0x1e8   :  { %v1640_v4 = vadd.f32 0.9189385, %v1624_v61  ;;  %2547 = vlog2.f32 %v6959_v9  ;;  %v1689_v6 = vsub.f32 %v5270_v56, %v1658_v28  ;;  %v5349_v35 = vadd.f32 %v1635_v31, %v5165_v1  ;;  %v6972_v13 = vld [vmem:[#allocation99_spill] sm:$0xff]  ;;  %v6973_v41 = vld [vmem:[#allocation18_spill] sm:$0xff]  ;;  %v6978_v28 = vld [vmem:[#allocation17_spill] sm:$0xff] }
 0x1e9   :  { %2549 = vlog2.f32 %v6960_v5  ;;  %v1690_v34 = vsub.f32 %v5287_v26, %v1660_v48  ;;  %v1691_v62 = vsub.f32 %v5300_v37, %v1662_v55  ;;  %v5355_v40 = vadd.f32 %v1636_v29, %v5170_v36  ;;  %v6962_v26 = vld [vmem:[#allocation129_spill] sm:$0xff]  ;;  %v6963_v37 = vld [vmem:[#allocation114_spill] sm:$0xff]  ;;  %v6964_v36 = vld [vmem:[#allocation112_spill] sm:$0xff] }
 0x1ea   :  { %v5358_v38 = vadd.f32 %v1637_v14, %v5173_v52  ;;  %2551 = vlog2.f32 %v6961_v8  ;;  %v1692_v45 = vsub.f32 %v1644_v33, %v1664_v3  ;;  %v5362_v56 = vadd.f32 %v1638_v54, %v5177_v7  ;;  %v6965_v52 = vld [vmem:[#allocation45_spill] sm:$0xff]  ;;  %v6974_v31 = vld [vmem:[#allocation47_spill] sm:$0xff]  ;;  %v6975_v29 = vld [vmem:[#allocation38_spill] sm:$0xff] }
 0x1eb   :  { %v5365_v1 = vadd.f32 %v1639_v11, %v5182_v30  ;;  %v5368_v32 = vadd.f32 %v1640_v4, %v5185_v50  ;;  %2553 = vlog2.f32 %v6962_v26  ;;  %v5373_v43 = vsub.f32 %v6964_v36, %v1689_v6  ;;  %v6968_v30 = vld [vmem:[#allocation134_spill] sm:$0xff]  ;;  %v6969_v50 = vld [vmem:[#allocation79_spill] sm:$0xff]  ;;  %v6976_v14 = vld [vmem:[#allocation85_spill] sm:$0xff] }
 0x1ec   :  { %2555 = vlog2.f32 %v6963_v37  ;;  %v1764_v20 = vsub.f32 %v6901_v47, %v6965_v52  ;;  %v1765_v7 = vsub.f32 %v6906_v39, %v6966_v53  ;;  %v5381_v42 = vsub.f32 %v6968_v30, %v1690_v34  ;;  %v5397_v54 = vld [vmem:[#allocation2] sm:$0xff]  ;;  %v6979_v48 = vld [vmem:[#allocation24_spill] sm:$0xff]  ;;  %v5403_v11 = vld [vmem:[#allocation2 + $0x8] sm:$0xff] }
 0x1ed   :  { %2557 = vlog2.f32 %v6967_v10  ;;  %v5384_v18 = vsub.f32 %v6969_v50, %v1691_v62  ;;  %v1766_v17 = vsub.f32 %v6911_v24, %v6970_v19  ;;  %v5390_v61 = vsub.f32 %v6972_v13, %v1692_v45  ;;  %6977 = vst [vmem:[#allocation161_spill] sm:$0xff] %v5397_v54  ;;  %6981 = vst [vmem:[#allocation138_spill] sm:$0xff] %v5403_v11  ;;  %v6982_v4 = vld [vmem:[#allocation19_spill] sm:$0xff]  ;;  %v6983_v57 = vld [vmem:[#allocation25_spill] sm:$0xff] }
 0x1ee   :  { %2559 = vlog2.f32 %v6971_v16  ;;  %v1767_v44 = vsub.f32 %v6917_v23, %v6973_v41  ;;  %v1768_v33 = vsub.f32 %v6975_v29, %v6974_v31  ;;  %v6980_v55 = vsub.f32 %v6978_v28, %v6979_v48  ;;  %v5409_v5 = vld [vmem:[#allocation2 + $0x10] sm:$0xff]  ;;  %v6987_v62 = vld [vmem:[#allocation27_spill] sm:$0xff]  ;;  %v6989_v26 = vld [vmem:[#allocation82_spill] sm:$0xff] }
 0x1ef   :  { %2561 = vlog2.f32 %v6976_v14  ;;  %v6984_v9 = vsub.f32 %v6982_v4, %v6983_v57  ;;  %6985 = vst [vmem:[#allocation139_spill] sm:$0xff] %v5409_v5  ;;  %v6986_v34 = vld [vmem:[#allocation20_spill] sm:$0xff]  ;;  %v5416_v37 = vld [vmem:[#allocation2 + $0x18] sm:$0xff]  ;;  %v5422_v30 = vld [vmem:[#allocation2 + $0x20] sm:$0xff] }
 0x1f0   :  { %v1769_v3 = vmul.f32 %v5397_v54, %v6980_v55  ;;  %v6988_v8 = vsub.f32 %v6986_v34, %v6987_v62  ;;  %2563 = vlog2.f32 %v6989_v26  ;;  %6990 = vst [vmem:[#allocation140_spill] sm:$0xff] %v5416_v37  ;;  %v6991_v36 = vld [vmem:[#allocation21_spill] sm:$0xff]  ;;  %v6992_v52 = vld [vmem:[#allocation28_spill] sm:$0xff]  ;;  %6994 = vst [vmem:[#allocation141_spill] sm:$0xff] %v5422_v30 }
 0x1f1   :  { %v1770_v6 = vmul.f32 %v5403_v11, %v6984_v9  ;;  %v6993_v53 = vsub.f32 %v6991_v36, %v6992_v52  ;;  %v6995_v50 = vld [vmem:[#allocation22_spill] sm:$0xff]  ;;  %v5428_v41 = vld [vmem:[#allocation2 + $0x28] sm:$0xff]  ;;  %v2546_v57 = vpop.eup %2545  ;;  %v5435_v62 = vld [vmem:[#allocation2 + $0x30] sm:$0xff] }
 0x1f2   :  { %v1771_v45 = vmul.f32 %v5409_v5, %v6988_v8  ;;  %v6996_v19 = vld [vmem:[#allocation30_spill] sm:$0xff]  ;;  %6998 = vst [vmem:[#allocation142_spill] sm:$0xff] %v5428_v41  ;;  %v6999_v31 = vld [vmem:[#allocation23_spill] sm:$0xff]  ;;  %7003 = vst [vmem:[#allocation122_spill] sm:$0xff] %v5435_v62 }
 0x1f3   :  { %v1772_v10 = vmul.f32 %v5416_v37, %v6993_v53  ;;  %v6997_v16 = vsub.f32 %v6995_v50, %v6996_v19  ;;  %v7000_v14 = vld [vmem:[#allocation39_spill] sm:$0xff]  ;;  %v7002_v9 = vld [vmem:[#allocation86_spill] sm:$0xff]  ;;  %v7005_v26 = vld [vmem:[#allocation40_spill] sm:$0xff] }
 0x1f4   :  { %v7001_v48 = vsub.f32 %v6999_v31, %v7000_v14  ;;  %2565 = vlog2.f32 %v7002_v9  ;;  %v7004_v8 = vld [vmem:[#allocation26_spill] sm:$0xff]  ;;  %v5441_v19 = vld [vmem:[#allocation2 + $0x38] sm:$0xff]  ;;  %v7012_v37 = vld [vmem:[#allocation116_spill] sm:$0xff] }
 0x1f5   :  { %v1773_v13 = vmul.f32 %v5422_v30, %v6997_v16  ;;  %v7006_v52 = vsub.f32 %v7004_v8, %v7005_v26  ;;  %7007 = vst [vmem:[#allocation91_spill] sm:$0xff] %v5441_v19  ;;  %v7008_v16 = vsub.f32 %v6879_v58, %v6946_v51  ;;  %v5447_v14 = vld [vmem:[#allocation2 + $0x40] sm:$0xff]  ;;  %v1666_v30 = vmul.f32 0.6931472, %v2546_v57  ;;  %v5454_v26 = vld [vmem:[#allocation2 + $0x48] sm:$0xff]  ;;  %v7022_v54 = vld [vmem:[#allocation96_spill] sm:$0xff] }
 0x1f6   :  { %v1774_v55 = vmul.f32 %v5428_v41, %v7001_v48  ;;  %7009 = vst [vmem:[#allocation92_spill] sm:$0xff] %v5447_v14  ;;  %v7010_v48 = vld [vmem:[#allocation42_spill] sm:$0xff]  ;;  %v2548_v41 = vpop.eup %2547  ;;  %2567 = vlog2.f32 %v7012_v37  ;;  %7013 = vst [vmem:[#allocation107_spill] sm:$0xff] %v5454_v26  ;;  %v5472_v5 = vld [vmem:[#allocation2 + $0x68] sm:$0xff] }
 0x1f7   :  { %v1775_v53 = vmul.f32 %v5435_v62, %v7006_v52  ;;  %v1776_v12 = vmul.f32 %v5441_v19, %v7008_v16  ;;  %v7011_v49 = vsub.f32 %v6884_v46, %v7010_v48  ;;  %v7014_v52 = vsub.f32 %v6889_v60, %v6956_v2  ;;  %v5460_v62 = vld [vmem:[#allocation2 + $0x50] sm:$0xff]  ;;  %v2550_v19 = vpop.eup %2549  ;;  %v5469_v37 = vld [vmem:[#allocation2 + $0x60] sm:$0xff]  ;;  %7019 = vst [vmem:[#allocation98_spill] sm:$0xff] %v5472_v5  ;;  %v7024_v24 = vld [vmem:[#allocation97_spill] sm:$0xff] }
 0x1f8   :  { %7015 = vst [vmem:[#allocation88_spill] sm:$0xff] %v5460_v62  ;;  %v7016_v16 = vsub.f32 %v6895_v63, %v6957_v22  ;;  %7018 = vst [vmem:[#allocation124_spill] sm:$0xff] %v5469_v37  ;;  %v1782_v2 = vmul.f32 %v5472_v5, %v1766_v17  ;;  %v2552_v22 = vpop.eup %2551  ;;  %v1668_v11 = vmul.f32 0.6931472, %v2548_v41  ;;  %v1787_v17 = vadd.f32 %v1771_v45, %v7024_v24  ;;  %v7025_v5 = vld [vmem:[#allocation152_spill] sm:$0xff]  ;;  %v7026_v41 = vld [vmem:[#allocation153_spill] sm:$0xff] }
 0x1f9   :  { %v1777_v9 = vmul.f32 %v5447_v14, %v7011_v49  ;;  %v1778_v51 = vmul.f32 %v5454_v26, %v7014_v52  ;;  %v5466_v49 = vld [vmem:[#allocation2 + $0x58] sm:$0xff]  ;;  %v1781_v14 = vmul.f32 %v5469_v37, %v1765_v7  ;;  %v5475_v52 = vld [vmem:[#allocation2 + $0x70] sm:$0xff]  ;;  %v2554_v23 = vpop.eup %2553  ;;  %v1670_v7 = vmul.f32 0.6931472, %v2550_v19  ;;  %v7027_v60 = vld [vmem:[#allocation154_spill] sm:$0xff] }
 0x1fa   :  { %v1779_v48 = vmul.f32 %v5460_v62, %v7016_v16  ;;  %7017 = vst [vmem:[#allocation76_spill] sm:$0xff] %v5466_v49  ;;  %v1780_v57 = vmul.f32 %v5466_v49, %v1764_v20  ;;  %7020 = vst [vmem:[#allocation123_spill] sm:$0xff] %v5475_v52  ;;  %v1783_v26 = vmul.f32 %v5475_v52, %v1767_v44  ;;  %v5478_v16 = vld [vmem:[#allocation2 + $0x78] sm:$0xff]  ;;  %v2556_v47 = vpop.eup %2555  ;;  %v1672_v44 = vmul.f32 0.6931472, %v2552_v22 }
 0x1fb   :  { %7021 = vst [vmem:[#allocation108_spill] sm:$0xff] %v5478_v16  ;;  %v1784_v62 = vmul.f32 %v5478_v16, %v1768_v33  ;;  %v1785_v20 = vadd.f32 %v1769_v3, %v7022_v54  ;;  %v7023_v49 = vld [vmem:[#allocation65_spill] sm:$0xff]  ;;  %v1693_v37 = vsub.f32 %v5328_v59, %v1666_v30  ;;  %v1788_v39 = vadd.f32 %v1772_v10, %v7025_v5  ;;  %v2558_v33 = vpop.eup %2557  ;;  %v7028_v54 = vld [vmem:[#allocation155_spill] sm:$0xff] }
 0x1fc   :  { %v1786_v29 = vadd.f32 %v1770_v6, %v7023_v49  ;;  %v1674_v52 = vmul.f32 0.6931472, %v2554_v23  ;;  %v1789_v63 = vadd.f32 %v1773_v13, %v7026_v41  ;;  %v1790_v46 = vadd.f32 %v1774_v55, %v7027_v60  ;;  %v7029_v6 = vld [vmem:[#allocation156_spill] sm:$0xff]  ;;  %v7030_v19 = vld [vmem:[#allocation73_spill] sm:$0xff]  ;;  %v2560_v59 = vpop.eup %2559  ;;  %v7031_v5 = vld [vmem:[#allocation135_spill] sm:$0xff] }
 0x1fd   :  { %v1676_v16 = vmul.f32 0.6931472, %v2556_v47  ;;  %v1791_v3 = vadd.f32 %v1775_v53, %v7028_v54  ;;  %v1792_v49 = vadd.f32 %v1776_v12, %v7029_v6  ;;  %v1793_v58 = vadd.f32 %v1777_v9, %v7030_v19  ;;  %v7032_v10 = vld [vmem:[#allocation157_spill] sm:$0xff]  ;;  %v2562_v22 = vpop.eup %2561  ;;  %v7033_v55 = vld [vmem:[#allocation131_spill] sm:$0xff]  ;;  %v7034_v41 = vld [vmem:[#allocation158_spill] sm:$0xff] }
 0x1fe   :  { %v1678_v30 = vmul.f32 0.6931472, %v2558_v33  ;;  %v1694_v24 = vsub.f32 %v5331_v25, %v1668_v11  ;;  %v1794_v45 = vadd.f32 %v1778_v51, %v7031_v5  ;;  %v1795_v23 = vadd.f32 %v1779_v48, %v7032_v10  ;;  %v2564_v54 = vpop.eup %2563  ;;  %v7035_v6 = vld [vmem:[#allocation127_spill] sm:$0xff] }
 0x1ff   :  { %v1680_v13 = vmul.f32 0.6931472, %v2560_v59  ;;  %v1695_v60 = vsub.f32 %v5334_v0, %v1670_v7  ;;  %v1709_v47 = vsub.f32 %v7033_v55, %v1693_v37  ;;  %v1796_v53 = vadd.f32 %v1780_v57, %v7034_v41  ;;  %v2566_v11 = vpop.eup %2565  ;;  %v7036_v59 = vld [vmem:[#allocation101_spill] sm:$0xff]  ;;  %v7037_v10 = vld [vmem:[#allocation159_spill] sm:$0xff] }
 0x200   :  { %v1682_v12 = vmul.f32 0.6931472, %v2562_v22  ;;  %v1696_v9 = vsub.f32 %v5337_v15, %v1672_v44  ;;  %v1697_v33 = vsub.f32 %v5341_v21, %v1674_v52  ;;  %v1797_v25 = vadd.f32 %v1781_v14, %v7035_v6  ;;  %v2568_v7 = vpop.eup %2567  ;;  %v7038_v14 = vld [vmem:[#allocation80_spill] sm:$0xff]  ;;  %v7039_v22 = vld [vmem:[#allocation78_spill] sm:$0xff]  ;;  %v7045_v6 = vld [vmem:[#allocation117_spill] sm:$0xff] }
 0x201   :  { %v1684_v51 = vmul.f32 0.6931472, %v2564_v54  ;;  %v1698_v48 = vsub.f32 %v5344_v27, %v1676_v16  ;;  %v1699_v19 = vsub.f32 %v5349_v35, %v1678_v30  ;;  %v1700_v0 = vsub.f32 %v5355_v40, %v1680_v13  ;;  %v7040_v35 = vld [vmem:[#allocation102_spill] sm:$0xff]  ;;  %v7041_v40 = vld [vmem:[#allocation133_spill] sm:$0xff]  ;;  %v7042_v13 = vld [vmem:[#allocation160_spill] sm:$0xff] }
 0x202   :  { %v1686_v37 = vmul.f32 0.6931472, %v2566_v11  ;;  %v1701_v57 = vsub.f32 %v5358_v38, %v1682_v12  ;;  %v1710_v5 = vsub.f32 %v7036_v59, %v1694_v24  ;;  %v1798_v15 = vadd.f32 %v1782_v2, %v7037_v10  ;;  %v7043_v24 = vld [vmem:[#allocation81_spill] sm:$0xff]  ;;  %v7044_v2 = vld [vmem:[#allocation90_spill] sm:$0xff] }
 0x203   :  { %v1688_v44 = vmul.f32 0.6931472, %v2568_v7  ;;  %v1702_v21 = vsub.f32 %v5362_v56, %v1684_v51  ;;  %v1711_v52 = vsub.f32 %v7038_v14, %v1695_v60  ;;  %v1799_v55 = vadd.f32 %v1783_v26, %v7039_v22  ;;  %v5517_v11 = vld [vmem:[#allocation8] sm:$0xff]  ;;  %v7047_v51 = vld [vmem:[#allocation93_spill] sm:$0xff]  ;;  %v7049_v7 = vld [vmem:[#allocation120_spill] sm:$0xff] }
 0x204   :  { %v1703_v27 = vsub.f32 %v5365_v1, %v1686_v37  ;;  %v1712_v16 = vsub.f32 %v7040_v35, %v1696_v9  ;;  %v1713_v30 = vsub.f32 %v7041_v40, %v1697_v33  ;;  %v1800_v41 = vadd.f32 %v1784_v62, %v7042_v13  ;;  %v7046_v60 = vld [vmem:[#allocation118_spill] sm:$0xff]  ;;  %v5527_v62 = vld [vmem:[#allocation8 + $0x8] sm:$0xff]  ;;  %v5555_v14 = vld [vmem:[#allocation8 + $0x38] sm:$0xff] }
 0x205   :  { %v1704_v38 = vsub.f32 %v5368_v32, %v1688_v44  ;;  %v1714_v54 = vsub.f32 %v7043_v24, %v1698_v48  ;;  %v1715_v12 = vsub.f32 %v7044_v2, %v1699_v19  ;;  %v1716_v56 = vsub.f32 %v7045_v6, %v1700_v0  ;;  %v5529_v32 = vld [vmem:[#allocation8 + $0x10] sm:$0xff]  ;;  %v5531_v48 = vld [vmem:[#allocation8 + $0x18] sm:$0xff]  ;;  %v7048_v19 = vld [vmem:[#allocation119_spill] sm:$0xff]  ;;  %7052 = vst [vmem:[#allocation100_spill] sm:$0xff] %v5555_v14 }
 0x206   :  { %v1717_v26 = vsub.f32 %v7046_v60, %v1701_v57  ;;  %v1718_v1 = vsub.f32 %v7047_v51, %v1702_v21  ;;  %v5522_v9 = vadd.f32 %v1785_v20, %v5373_v43  ;;  %v5525_v33 = vadd.f32 %v1786_v29, %v5381_v42  ;;  %v5541_v43 = vld [vmem:[#allocation8 + $0x20] sm:$0xff]  ;;  %v5543_v42 = vld [vmem:[#allocation8 + $0x28] sm:$0xff]  ;;  %v5545_v29 = vld [vmem:[#allocation8 + $0x30] sm:$0xff] }
 0x207   :  { %v1719_v0 = vsub.f32 %v7048_v19, %v1703_v27  ;;  %v1720_v37 = vsub.f32 %v7049_v7, %v1704_v38  ;;  %v5536_v57 = vadd.f32 %v1787_v17, %v5384_v18  ;;  %v5539_v59 = vadd.f32 %v1788_v39, %v5390_v61  ;;  %7050 = vst [vmem:[#allocation105_spill] sm:$0xff] %v5543_v42  ;;  %v5557_v18 = vld [vmem:[#allocation8 + $0x40] sm:$0xff]  ;;  %v5559_v39 = vld [vmem:[#allocation8 + $0x48] sm:$0xff] }
 0x208   :  { %7051 = vst [vmem:[#allocation66_spill] sm:$0xff] %v5545_v29  ;;  %v5547_v20 = vadd.f32 %v1789_v63, %v1709_v47  ;;  %v5549_v10 = vadd.f32 %v1790_v46, %v1710_v5  ;;  %v5551_v44 = vadd.f32 %v1791_v3, %v1711_v52  ;;  %v5553_v21 = vadd.f32 %v1792_v49, %v1712_v16  ;;  %v5569_v46 = vld [vmem:[#allocation8 + $0x50] sm:$0xff]  ;;  %v5571_v3 = vld [vmem:[#allocation8 + $0x58] sm:$0xff]  ;;  %v5573_v49 = vld [vmem:[#allocation8 + $0x60] sm:$0xff] }
 0x209   :  { %7053 = vst [vmem:[#allocation89_spill] sm:$0xff] %v5557_v18  ;;  %7054 = vst [vmem:[#allocation125_spill] sm:$0xff] %v5559_v39  ;;  %v5561_v61 = vadd.f32 %v1793_v58, %v1713_v30  ;;  %v5563_v17 = vadd.f32 %v1794_v45, %v1714_v54  ;;  %v5565_v22 = vadd.f32 %v1795_v23, %v1715_v12  ;;  %v6205_v52 = vsub.f32 1.0, %v5517_v11  ;;  %v5581_v45 = vld [vmem:[#allocation8 + $0x68] sm:$0xff]  ;;  %v5583_v23 = vld [vmem:[#allocation8 + $0x70] sm:$0xff] }
 0x20a   :  { %v5567_v63 = vadd.f32 %v1796_v53, %v1716_v56  ;;  %7055 = vst [vmem:[#allocation74_spill] sm:$0xff] %v5569_v46  ;;  %7056 = vst [vmem:[#allocation110_spill] sm:$0xff] %v5571_v3  ;;  %v5575_v47 = vadd.f32 %v1797_v25, %v1717_v26  ;;  %v5577_v5 = vadd.f32 %v1798_v15, %v1718_v1  ;;  %v6204_v58 = vsub.f32 1.0, %v5527_v62  ;;  %v5585_v53 = vld [vmem:[#allocation8 + $0x78] sm:$0xff] }
 0x20b   :  { %7057 = vst [vmem:[#allocation143_spill] sm:$0xff] %v5573_v49  ;;  %7058 = vst [vmem:[#allocation144_spill] sm:$0xff] %v5581_v45  ;;  %v5587_v27 = vadd.f32 %v1799_v55, %v1719_v0  ;;  %v5589_v35 = vadd.f32 %v1800_v41, %v1720_v37  ;;  %v6202_v16 = vsub.f32 1.0, %v5529_v32  ;;  %v6199_v25 = vsub.f32 1.0, %v5531_v48 }
 0x20c   :  { %7059 = vst [vmem:[#allocation72_spill] sm:$0xff] %v5583_v23  ;;  %7060 = vst [vmem:[#allocation145_spill] sm:$0xff] %v5585_v53  ;;  %v6190_v15 = vsub.f32 1.0, %v5541_v43  ;;  %v6191_v40 = vsub.f32 1.0, %v5543_v42  ;;  %v1833_v30 = vadd.f32 1e-10, %v6205_v52 }
 0x20d   :  { %7061 = vst [vmem:[#allocation146_spill] sm:$0xff] %v5589_v35  ;;  %v1834_v13 = vadd.f32 1e-10, %v6204_v58  ;;  %v6192_v38 = vsub.f32 1.0, %v5545_v29  ;;  %v6197_v55 = vsub.f32 1.0, %v5555_v14  ;;  %v6193_v54 = vsub.f32 1.0, %v5557_v18 }
 0x20e   :  { %v1835_v41 = vadd.f32 1e-10, %v6202_v16  ;;  %v1836_v24 = vadd.f32 1e-10, %v6199_v25  ;;  %v6194_v2 = vsub.f32 1.0, %v5559_v39  ;;  %v6195_v12 = vsub.f32 1.0, %v5569_v46 }
 0x20f   :  { %2569 = vlog2.f32 %v1833_v30  ;;  %v6196_v6 = vsub.f32 1.0, %v5571_v3  ;;  %v6198_v56 = vsub.f32 1.0, %v5573_v49  ;;  %v1837_v60 = vadd.f32 1e-10, %v6190_v15  ;;  %v7066_v25 = vld [vmem:[#allocation52_spill] sm:$0xff]  ;;  %v7068_v16 = vld [vmem:[#allocation54_spill] sm:$0xff] }
 0x210   :  { %2571 = vlog2.f32 %v1834_v13  ;;  %v6200_v26 = vsub.f32 1.0, %v5581_v45  ;;  %v6201_v51 = vsub.f32 1.0, %v5583_v23  ;;  %v6203_v1 = vsub.f32 1.0, %v5585_v53  ;;  %v7069_v58 = vld [vmem:[#allocation55_spill] sm:$0xff]  ;;  %v7070_v52 = vld [vmem:[#allocation29_spill] sm:$0xff]  ;;  %v7078_v45 = vld [vmem:[#allocation34_spill] sm:$0xff] }
 0x211   :  { %2573 = vlog2.f32 %v1835_v41  ;;  %v1838_v19 = vadd.f32 1e-10, %v6191_v40  ;;  %v1839_v0 = vadd.f32 1e-10, %v6192_v38  ;;  %v1840_v7 = vadd.f32 1e-10, %v6197_v55 }
 0x212   :  { %2575 = vlog2.f32 %v1836_v24  ;;  %v1841_v37 = vadd.f32 1e-10, %v6193_v54  ;;  %v1842_v30 = vadd.f32 1e-10, %v6194_v2  ;;  %v1843_v13 = vadd.f32 1e-10, %v6195_v12 }
 0x213   :  { %v7062_v41 = vld [vmem:[#allocation48_spill] sm:$0xff]  ;;  %v1844_v40 = vadd.f32 1e-10, %v6196_v6  ;;  %v1845_v38 = vadd.f32 1e-10, %v6198_v56  ;;  %2577 = vlog2.f32 %v1837_v60  ;;  %v7063_v12 = vld [vmem:[#allocation49_spill] sm:$0xff]  ;;  %v1901_v60 = vsub.f32 %v6995_v50, %v7066_v25 }
 0x214   :  { %v1897_v15 = vsub.f32 %v6978_v28, %v7062_v41  ;;  %v1846_v24 = vadd.f32 1e-10, %v6200_v26  ;;  %v1847_v54 = vadd.f32 1e-10, %v6201_v51  ;;  %v5639_v2 = vadd.f32 1e-10, %v6203_v1 }
 0x215   :  { %v1898_v28 = vsub.f32 %v6982_v4, %v7063_v12  ;;  %v7064_v41 = vld [vmem:[#allocation50_spill] sm:$0xff]  ;;  %2579 = vlog2.f32 %v1838_v19  ;;  %v7065_v55 = vld [vmem:[#allocation51_spill] sm:$0xff]  ;;  %v7067_v26 = vld [vmem:[#allocation53_spill] sm:$0xff]  ;;  %v1903_v1 = vsub.f32 %v7004_v8, %v7068_v16  ;;  %v1904_v4 = vsub.f32 %v7070_v52, %v7069_v58 }
 0x216   :  { %v1899_v6 = vsub.f32 %v6986_v34, %v7064_v41  ;;  %v1900_v56 = vsub.f32 %v6991_v36, %v7065_v55  ;;  %v1902_v51 = vsub.f32 %v6999_v31, %v7067_v26  ;;  %2581 = vlog2.f32 %v1839_v0  ;;  %v7071_v12 = vld [vmem:[#allocation56_spill] sm:$0xff]  ;;  %v7072_v53 = vld [vmem:[#allocation31_spill] sm:$0xff]  ;;  %v7073_v19 = vld [vmem:[#allocation57_spill] sm:$0xff] }
 0x217   :  { %v1905_v34 = vsub.f32 %v7072_v53, %v7071_v12  ;;  %2583 = vlog2.f32 %v1840_v7  ;;  %v7074_v41 = vld [vmem:[#allocation32_spill] sm:$0xff]  ;;  %v7075_v55 = vld [vmem:[#allocation58_spill] sm:$0xff]  ;;  %v7076_v23 = vld [vmem:[#allocation33_spill] sm:$0xff] }
 0x218   :  { %v1906_v36 = vsub.f32 %v7074_v41, %v7073_v19  ;;  %v1907_v50 = vsub.f32 %v7076_v23, %v7075_v55  ;;  %v7077_v25 = vld [vmem:[#allocation59_spill] sm:$0xff]  ;;  %2585 = vlog2.f32 %v1841_v37  ;;  %v7079_v0 = vld [vmem:[#allocation60_spill] sm:$0xff]  ;;  %v7081_v49 = vld [vmem:[#allocation61_spill] sm:$0xff] }
 0x219   :  { %v1908_v31 = vsub.f32 %v7078_v45, %v7077_v25  ;;  %v2570_v26 = vpop.eup %2569  ;;  %v7080_v8 = vld [vmem:[#allocation35_spill] sm:$0xff]  ;;  %v7082_v52 = vld [vmem:[#allocation36_spill] sm:$0xff]  ;;  %v7083_v3 = vld [vmem:[#allocation62_spill] sm:$0xff]  ;;  %2587 = vlog2.f32 %v1842_v30 }
 0x21a   :  { %v1909_v16 = vsub.f32 %v7080_v8, %v7079_v0  ;;  %v1910_v58 = vsub.f32 %v7082_v52, %v7081_v49  ;;  %v7084_v53 = vld [vmem:[#allocation37_spill] sm:$0xff]  ;;  %v2572_v12 = vpop.eup %2571  ;;  %v7085_v19 = vld [vmem:[#allocation63_spill] sm:$0xff]  ;;  %v7086_v41 = vld [vmem:[#allocation38_spill] sm:$0xff]  ;;  %v5671_v37 = vmul.f32 0.6931472, %v2570_v26  ;;  %2589 = vlog2.f32 %v1843_v13 }
 0x21b   :  { %v2713_v23 = vld [vmem:[#allocation7] sm:$0xff]  ;;  %v2714_v39 = vld [vmem:[#allocation7 + $0x8] sm:$0xff]  ;;  %v2574_v25 = vpop.eup %2573  ;;  %v2715_v0 = vld [vmem:[#allocation7 + $0x10] sm:$0xff]  ;;  %v5673_v14 = vmul.f32 0.6931472, %v2572_v12  ;;  %2591 = vlog2.f32 %v1844_v40 }
 0x21c   :  { %v1913_v55 = vmul.f32 %v2713_v23, %v1897_v15  ;;  %v1914_v45 = vmul.f32 %v2714_v39, %v1898_v28  ;;  %v1915_v8 = vmul.f32 %v2715_v0, %v1899_v6  ;;  %v2716_v18 = vld [vmem:[#allocation7 + $0x18] sm:$0xff]  ;;  %v2576_v52 = vpop.eup %2575  ;;  %v2717_v30 = vld [vmem:[#allocation7 + $0x20] sm:$0xff]  ;;  %v2718_v29 = vld [vmem:[#allocation7 + $0x28] sm:$0xff]  ;;  %2593 = vlog2.f32 %v1845_v38 }
 0x21d   :  { %v1916_v49 = vmul.f32 %v2716_v18, %v1900_v56  ;;  %v1917_v7 = vmul.f32 %v2717_v30, %v1901_v60  ;;  %v1918_v46 = vmul.f32 %v2718_v29, %v1902_v51  ;;  %v2719_v15 = vld [vmem:[#allocation7 + $0x30] sm:$0xff]  ;;  %v2720_v39 = vld [vmem:[#allocation7 + $0x38] sm:$0xff]  ;;  %v2721_v26 = vld [vmem:[#allocation7 + $0x40] sm:$0xff]  ;;  %v2578_v13 = vpop.eup %2577  ;;  %v5675_v35 = vmul.f32 0.6931472, %v2574_v25 }
 0x21e   :  { %v1919_v23 = vmul.f32 %v2719_v15, %v1903_v1  ;;  %v1920_v28 = vmul.f32 %v2720_v39, %v1904_v4  ;;  %v1921_v42 = vmul.f32 %v2721_v26, %v1905_v34  ;;  %2595 = vlog2.f32 %v1846_v24  ;;  %v2722_v18 = vld [vmem:[#allocation7 + $0x48] sm:$0xff]  ;;  %v2723_v56 = vld [vmem:[#allocation7 + $0x50] sm:$0xff]  ;;  %v2724_v38 = vld [vmem:[#allocation7 + $0x58] sm:$0xff] }
 0x21f   :  { %v1922_v6 = vmul.f32 %v2722_v18, %v1906_v36  ;;  %v1923_v12 = vmul.f32 %v2723_v56, %v1907_v50  ;;  %v5677_v40 = vmul.f32 0.6931472, %v2576_v52  ;;  %2597 = vlog2.f32 %v1847_v54  ;;  %v2580_v1 = vpop.eup %2579  ;;  %v2725_v4 = vld [vmem:[#allocation7 + $0x60] sm:$0xff] }
 0x220   :  { %v1881_v29 = vsub.f32 %v5522_v9, %v5671_v37  ;;  %v1924_v51 = vmul.f32 %v2724_v38, %v1908_v31  ;;  %v1882_v60 = vsub.f32 %v5525_v33, %v5673_v14  ;;  %v1925_v34 = vmul.f32 %v2725_v4, %v1909_v16  ;;  %v2582_v0 = vpop.eup %2581  ;;  %v2726_v31 = vld [vmem:[#allocation7 + $0x68] sm:$0xff]  ;;  %v2728_v38 = vld [vmem:[#allocation7 + $0x78] sm:$0xff] }
 0x221   :  { %v1929_v25 = vmul.f32 1.442695, %v1913_v55  ;;  %v1931_v24 = vmul.f32 1.442695, %v1914_v45  ;;  %v5683_v36 = vmul.f32 0.6931472, %v2578_v13  ;;  %2599 = vlog2.f32 %v5639_v2  ;;  %v2584_v52 = vpop.eup %2583 }
 0x222   :  { %v1933_v50 = vmul.f32 1.442695, %v1915_v8  ;;  %v1935_v54 = vmul.f32 1.442695, %v1916_v49  ;;  %v1926_v15 = vmul.f32 %v2726_v31, %v1910_v58  ;;  %v1937_v39 = vmul.f32 1.442695, %v1917_v7  ;;  %v2586_v26 = vpop.eup %2585 }
 0x223   :  { %2601 = vpow2.f32 %v1929_v25  ;;  %v5688_v18 = vmul.f32 0.6931472, %v2580_v1  ;;  %v1939_v55 = vmul.f32 1.442695, %v1918_v46  ;;  %v2588_v45 = vpop.eup %2587  ;;  %v5692_v2 = vmul.f32 0.6931472, %v2582_v0 }
 0x224   :  { %2603 = vpow2.f32 %v1931_v24  ;;  %v2727_v8 = vld [vmem:[#allocation7 + $0x70] sm:$0xff]  ;;  %v7087_v49 = vsub.f32 %v7084_v53, %v7083_v3  ;;  %v1941_v58 = vmul.f32 1.442695, %v1919_v23  ;;  %v2590_v56 = vpop.eup %2589  ;;  %v5697_v7 = vmul.f32 0.6931472, %v2584_v52 }
 0x225   :  { %2605 = vpow2.f32 %v1933_v50  ;;  %v7088_v1 = vsub.f32 %v7086_v41, %v7085_v19  ;;  %v1943_v46 = vmul.f32 1.442695, %v1920_v28  ;;  %v2592_v25 = vpop.eup %2591  ;;  %v5702_v24 = vmul.f32 0.6931472, %v2586_v26 }
 0x226   :  { %v1927_v13 = vmul.f32 %v2727_v8, %v7087_v49  ;;  %2607 = vpow2.f32 %v1935_v54  ;;  %v1945_v3 = vmul.f32 1.442695, %v1921_v42  ;;  %v2594_v53 = vpop.eup %2593  ;;  %v5706_v23 = vmul.f32 0.6931472, %v2588_v45 }
 0x227   :  { %v1928_v4 = vmul.f32 %v2728_v38, %v7088_v1  ;;  %2609 = vpow2.f32 %v1937_v39  ;;  %v1947_v52 = vmul.f32 1.442695, %v1922_v6  ;;  %v5710_v41 = vmul.f32 0.6931472, %v2590_v56 }
 0x228   :  { %2611 = vpow2.f32 %v1939_v55  ;;  %v2596_v19 = vpop.eup %2595  ;;  %v1949_v54 = vmul.f32 1.442695, %v1923_v12  ;;  %v5714_v26 = vmul.f32 0.6931472, %v2592_v25  ;;  %v1951_v39 = vmul.f32 1.442695, %v1924_v51 }
 0x229   :  { %2613 = vpow2.f32 %v1941_v58  ;;  %v2598_v31 = vpop.eup %2597  ;;  %v5718_v45 = vmul.f32 0.6931472, %v2594_v53  ;;  %v1953_v55 = vmul.f32 1.442695, %v1925_v34  ;;  %v5722_v49 = vmul.f32 0.6931472, %v2596_v19 }
 0x22a   :  { %2615 = vpow2.f32 %v1943_v46  ;;  %v1955_v58 = vmul.f32 1.442695, %v1926_v15  ;;  %v5726_v38 = vmul.f32 0.6931472, %v2598_v31  ;;  %v1957_v1 = vmul.f32 1.442695, %v1927_v13 }
 0x22b   :  { %2617 = vpow2.f32 %v1945_v3  ;;  %v2600_v8 = vpop.eup %2599  ;;  %v1959_v25 = vmul.f32 1.442695, %v1928_v4  ;;  %v7089_v3 = vsub.f32 1.0, %v5517_v11  ;;  %v7090_v31 = vsub.f32 1.0, %v5527_v62  ;;  %v7095_v12 = vld [vmem:[#allocation105_spill] sm:$0xff] }
 0x22c   :  { %2619 = vpow2.f32 %v1947_v52  ;;  %v5734_v52 = vmul.f32 0.6931472, %v2600_v8  ;;  %v7091_v4 = vsub.f32 1.0, %v5529_v32  ;;  %v7093_v51 = vsub.f32 1.0, %v5541_v43 }
 0x22d   :  { %v2602_v56 = vpop.eup %2601  ;;  %2621 = vpow2.f32 %v1949_v54  ;;  %v7096_v8 = vsub.f32 1.0, %v7095_v12  ;;  %v7132_v9 = vsub.f32 %v5536_v57, %v5675_v35 }
 0x22e   :  { %v2604_v46 = vpop.eup %2603  ;;  %2623 = vpow2.f32 %v1951_v39  ;;  %v1961_v53 = vmul.f32 %v2602_v56, %v7089_v3 }
 0x22f   :  { %v2606_v19 = vpop.eup %2605  ;;  %2625 = vpow2.f32 %v1953_v55  ;;  %v1962_v54 = vmul.f32 %v2604_v46, %v7090_v31  ;;  %v7092_v55 = vsub.f32 1.0, %v5531_v48 }
 0x230   :  { %v2608_v13 = vpop.eup %2607  ;;  %2627 = vpow2.f32 %v1955_v58  ;;  %v1963_v39 = vmul.f32 %v2606_v19, %v7091_v4  ;;  %v1977_v56 = vadd.f32 %v1961_v53, %v5517_v11  ;;  %v7094_v11 = vld [vmem:[#allocation146_spill] sm:$0xff] }
 0x231   :  { %v2610_v3 = vpop.eup %2609  ;;  %2629 = vpow2.f32 %v1957_v1  ;;  %v1964_v15 = vmul.f32 %v2608_v13, %v7092_v55  ;;  %v1978_v46 = vadd.f32 %v1962_v54, %v5527_v62  ;;  %v7097_v62 = vld [vmem:[#allocation66_spill] sm:$0xff] }
 0x232   :  { %v2612_v31 = vpop.eup %2611  ;;  %2631 = vpow2.f32 %v1959_v25  ;;  %v1965_v58 = vmul.f32 %v2610_v3, %v7093_v51  ;;  %v1979_v34 = vadd.f32 %v1963_v39, %v5529_v32  ;;  %v1993_v19 = vadd.f32 1e-10, %v1977_v56  ;;  %v7099_v39 = vld [vmem:[#allocation100_spill] sm:$0xff] }
 0x233   :  { %v2614_v4 = vpop.eup %2613  ;;  %v1966_v1 = vmul.f32 %v2612_v31, %v7096_v8  ;;  %v1980_v6 = vadd.f32 %v1964_v15, %v5531_v48  ;;  %v1994_v13 = vadd.f32 1e-10, %v1978_v46  ;;  %v7098_v54 = vsub.f32 1.0, %v7097_v62  ;;  %v7101_v31 = vld [vmem:[#allocation89_spill] sm:$0xff] }
 0x234   :  { %v2616_v55 = vpop.eup %2615  ;;  %v1981_v42 = vadd.f32 %v1965_v58, %v5541_v43  ;;  %v1995_v51 = vadd.f32 1e-10, %v1979_v34  ;;  %2633 = vlog2.f32 %v1993_v19  ;;  %v7100_v56 = vsub.f32 1.0, %v7099_v39  ;;  %v7103_v43 = vld [vmem:[#allocation125_spill] sm:$0xff] }
 0x235   :  { %v1967_v25 = vmul.f32 %v2614_v4, %v7098_v54  ;;  %v2618_v32 = vpop.eup %2617  ;;  %v1982_v53 = vadd.f32 %v1966_v1, %v7095_v12  ;;  %v1996_v28 = vadd.f32 1e-10, %v1980_v6  ;;  %2635 = vlog2.f32 %v1994_v13  ;;  %v7105_v12 = vld [vmem:[#allocation74_spill] sm:$0xff] }
 0x236   :  { %v1968_v3 = vmul.f32 %v2616_v55, %v7100_v56  ;;  %v2620_v8 = vpop.eup %2619  ;;  %v7102_v48 = vsub.f32 1.0, %v7101_v31  ;;  %v1997_v50 = vadd.f32 1e-10, %v1981_v42  ;;  %2637 = vlog2.f32 %v1995_v51 }
 0x237   :  { %v1983_v46 = vadd.f32 %v1967_v25, %v7097_v62  ;;  %v2622_v4 = vpop.eup %2621  ;;  %v7104_v34 = vsub.f32 1.0, %v7103_v43  ;;  %v1998_v54 = vadd.f32 1e-10, %v1982_v53  ;;  %2639 = vlog2.f32 %v1996_v28  ;;  %v7107_v62 = vld [vmem:[#allocation110_spill] sm:$0xff]  ;;  %v7110_v28 = vld [vmem:[#allocation143_spill] sm:$0xff] }
 0x238   :  { %v1969_v15 = vmul.f32 %v2618_v32, %v7102_v48  ;;  %v1984_v19 = vadd.f32 %v1968_v3, %v7099_v39  ;;  %v2624_v55 = vpop.eup %2623  ;;  %v7106_v6 = vsub.f32 1.0, %v7105_v12  ;;  %2641 = vlog2.f32 %v1997_v50 }
 0x239   :  { %v1970_v58 = vmul.f32 %v2620_v8, %v7104_v34  ;;  %v1999_v56 = vadd.f32 1e-10, %v1983_v46  ;;  %v2626_v32 = vpop.eup %2625  ;;  %v7108_v42 = vsub.f32 1.0, %v7107_v62  ;;  %2643 = vlog2.f32 %v1998_v54  ;;  %v7109_v8 = vld [vmem:[#allocation161_spill] sm:$0xff]  ;;  %v7116_v54 = vld [vmem:[#allocation140_spill] sm:$0xff] }
 0x23a   :  { %v1971_v1 = vmul.f32 %v2622_v4, %v7106_v6  ;;  %v1985_v13 = vadd.f32 %v1969_v15, %v7101_v31  ;;  %v2000_v48 = vadd.f32 1e-10, %v1984_v19  ;;  %vm2057_vm0 = vcmp.le.f32.partialorder %v7109_v8, 1e-08  ;;  %v2628_v53 = vpop.eup %2627  ;;  %v7112_v31 = vld [vmem:[#allocation138_spill] sm:$0xff]  ;;  %v7113_v15 = vld [vmem:[#allocation144_spill] sm:$0xff] }
 0x23b   :  { %v1972_v25 = vmul.f32 %v2624_v55, %v7108_v42  ;;  %v1986_v51 = vadd.f32 %v1970_v58, %v7103_v43  ;;  %v7111_v39 = vsub.f32 1.0, %v7110_v28  ;;  %2645 = vlog2.f32 %v1999_v56  ;;  %v2630_v50 = vpop.eup %2629  ;;  %v7115_v19 = vld [vmem:[#allocation139_spill] sm:$0xff]  ;;  %v7119_v56 = vld [vmem:[#allocation141_spill] sm:$0xff] }
 0x23c   :  { %v1987_v4 = vadd.f32 %v1971_v1, %v7105_v12  ;;  %v2001_v34 = vadd.f32 1e-10, %v1985_v13  ;;  %vm2058_vm1 = vcmp.le.f32.partialorder %v7112_v31, 1e-08  ;;  %v7114_v46 = vsub.f32 1.0, %v7113_v15  ;;  %v2632_v6 = vpop.eup %2631 }
 0x23d   :  { %v1973_v3 = vmul.f32 %v2626_v32, %v7111_v39  ;;  %v1988_v43 = vadd.f32 %v1972_v25, %v7107_v62  ;;  %v2002_v58 = vadd.f32 1e-10, %v1986_v51  ;;  %2647 = vlog2.f32 %v2000_v48  ;;  %v7117_v32 = vld [vmem:[#allocation72_spill] sm:$0xff]  ;;  %v7120_v39 = vld [vmem:[#allocation145_spill] sm:$0xff]  ;;  %v7122_v51 = vld [vmem:[#allocation142_spill] sm:$0xff] }
 0x23e   :  { %v1974_v55 = vmul.f32 %v2628_v53, %v7114_v46  ;;  %vm2059_vm2 = vcmp.le.f32.partialorder %v7115_v19, 1e-08  ;;  %vm2060_vm3 = vcmp.le.f32.partialorder %v7116_v54, 1e-08  ;;  %v7118_v42 = vsub.f32 1.0, %v7117_v32  ;;  %v2634_v48 = vpop.eup %2633 }
 0x23f   :  { %v1989_v1 = vadd.f32 %v1973_v3, %v7110_v28  ;;  %v2003_v13 = vadd.f32 1e-10, %v1987_v4  ;;  %2649 = vlog2.f32 %v2001_v34  ;;  %vm2061_vm4 = vcmp.le.f32.partialorder %v7119_v56, 1e-08  ;;  %v2636_v28 = vpop.eup %2635 }
 0x240   :  { %v1975_v12 = vmul.f32 %v2630_v50, %v7118_v42  ;;  %v7121_v53 = vsub.f32 1.0, %v7120_v39  ;;  %v1990_v62 = vadd.f32 %v1974_v55, %v7113_v15  ;;  %v2004_v25 = vadd.f32 1e-10, %v1988_v43  ;;  %v7123_v50 = vld [vmem:[#allocation122_spill] sm:$0xff]  ;;  %v2638_v15 = vpop.eup %2637 }
 0x241   :  { %2651 = vlog2.f32 %v2002_v58  ;;  %vm2062_vm5 = vcmp.le.f32.partialorder %v7122_v51, 1e-08  ;;  %v2005_v16 = vadd.f32 1e-10, %v1989_v1  ;;  %vm2063_vm6 = vcmp.le.f32.partialorder %v7123_v50, 1e-08  ;;  %v2640_v42 = vpop.eup %2639 }
 0x242   :  { %v1976_v46 = vmul.f32 %v2632_v6, %v7121_v53  ;;  %v1991_v0 = vadd.f32 %v1975_v12, %v7117_v32  ;;  %2653 = vlog2.f32 %v2003_v13  ;;  %v2006_v4 = vadd.f32 1e-10, %v1990_v62  ;;  %v7124_v6 = vld [vmem:[#allocation91_spill] sm:$0xff]  ;;  %v7125_v58 = vld [vmem:[#allocation92_spill] sm:$0xff]  ;;  %v2642_v53 = vpop.eup %2641 }
 0x243   :  { %v2010_v34 = vmul.f32 0.6931472, %v2634_v48  ;;  %2655 = vlog2.f32 %v2004_v25  ;;  %vm2064_vm7 = vcmp.le.f32.partialorder %v7124_v6, 1e-08  ;;  %v2012_v43 = vmul.f32 0.6931472, %v2636_v28  ;;  %v2644_v25 = vpop.eup %2643 }
 0x244   :  { %v1992_v3 = vadd.f32 %v1976_v46, %v7120_v39  ;;  %v2007_v55 = vadd.f32 1e-10, %v1991_v0  ;;  %2657 = vlog2.f32 %v2005_v16  ;;  %vm2065_vm8 = vcmp.le.f32.partialorder %v7125_v58, 1e-08  ;;  %v7126_v13 = vld [vmem:[#allocation107_spill] sm:$0xff]  ;;  %v7127_v62 = vld [vmem:[#allocation88_spill] sm:$0xff] }
 0x245   :  { %v2014_v12 = vmul.f32 0.6931472, %v2638_v15  ;;  %2659 = vlog2.f32 %v2006_v4  ;;  %v2041_v1 = vsub.f32 0.0, %v2010_v34  ;;  %vm2066_vm9 = vcmp.le.f32.partialorder %v7126_v13, 1e-08  ;;  %v7128_v16 = vld [vmem:[#allocation76_spill] sm:$0xff]  ;;  %v2646_v28 = vpop.eup %2645 }
 0x246   :  { %v2008_v32 = vadd.f32 1e-10, %v1992_v3  ;;  %v2016_v39 = vmul.f32 0.6931472, %v2640_v42  ;;  %2661 = vlog2.f32 %v2007_v55  ;;  %v2042_v46 = vsub.f32 0.0, %v2012_v43  ;;  %v7129_v15 = vld [vmem:[#allocation124_spill] sm:$0xff] }
 0x247   :  { %vm2067_vm10 = vcmp.le.f32.partialorder %v7127_v62, 1e-08  ;;  %v2018_v48 = vmul.f32 0.6931472, %v2642_v53  ;;  %v2043_v0 = vsub.f32 0.0, %v2014_v12  ;;  %v2073_v4 = vsel %vm2057_vm0, %v2041_v1, %v1881_v29  ;;  %v2648_v34 = vpop.eup %2647  ;;  %v7130_v42 = vld [vmem:[#allocation98_spill] sm:$0xff] }
 0x248   :  { %2663 = vlog2.f32 %v2008_v32  ;;  %vm2068_vm11 = vcmp.le.f32.partialorder %v7128_v16, 1e-08  ;;  %v2020_v30 = vmul.f32 0.6931472, %v2644_v25  ;;  %v2044_v3 = vsub.f32 0.0, %v2016_v39  ;;  %v7131_v25 = vld [vmem:[#allocation123_spill] sm:$0xff] }
 0x249   :  { %vm2069_vm12 = vcmp.le.f32.partialorder %v7129_v15, 1e-08  ;;  %v2022_v55 = vmul.f32 0.6931472, %v2646_v28  ;;  %v2045_v43 = vsub.f32 0.0, %v2018_v48  ;;  %v2074_v32 = vsel %vm2058_vm1, %v2042_v46, %v1882_v60  ;;  %v2650_v12 = vpop.eup %2649 }
 0x24a   :  { %vm2070_vm13 = vcmp.le.f32.partialorder %v7130_v42, 1e-08  ;;  %v2024_v53 = vmul.f32 0.6931472, %v2648_v34  ;;  %v2046_v39 = vsub.f32 0.0, %v2020_v30  ;;  %v2075_v37 = vsel %vm2059_vm2, %v2043_v0, %v7132_v9 }
 0x24b   :  { %vm2071_vm14 = vcmp.le.f32.partialorder %v7131_v25, 1e-08  ;;  %v7133_v29 = vsub.f32 %v5539_v59, %v5677_v40  ;;  %v2652_v14 = vpop.eup %2651  ;;  %v2026_v8 = vmul.f32 0.6931472, %v2650_v12  ;;  %v2047_v60 = vsub.f32 0.0, %v2022_v55 }
 0x24c   :  { %v7134_v30 = vsub.f32 %v5547_v20, %v5683_v36  ;;  %v2089_v1 = vadd.f32 %v2074_v32, %v2073_v4  ;;  %v2654_v57 = vpop.eup %2653  ;;  %v2028_v35 = vmul.f32 0.6931472, %v2652_v14  ;;  %v2048_v19 = vsub.f32 0.0, %v2024_v53 }
 0x24d   :  { %v2076_v33 = vsel %vm2060_vm3, %v2044_v3, %v7133_v29  ;;  %v7135_v46 = vsub.f32 %v5549_v10, %v5688_v18  ;;  %v2656_v54 = vpop.eup %2655  ;;  %v2030_v48 = vmul.f32 0.6931472, %v2654_v57  ;;  %v2049_v0 = vsub.f32 0.0, %v2026_v8  ;;  %v7142_v8 = vld [vmem:[#allocation108_spill] sm:$0xff] }
 0x24e   :  { %v2077_v31 = vsel %vm2061_vm4, %v2045_v43, %v7134_v30  ;;  %v2090_v40 = vadd.f32 %v2076_v33, %v2075_v37  ;;  %v7136_v20 = vsub.f32 %v5551_v44, %v5692_v2  ;;  %v2658_v28 = vpop.eup %2657  ;;  %v2032_v3 = vmul.f32 0.6931472, %v2656_v54 }
 0x24f   :  { %v2078_v59 = vsel %vm2062_vm5, %v2046_v39, %v7135_v46  ;;  %v2050_v4 = vsub.f32 0.0, %v2028_v35  ;;  %v7137_v10 = vsub.f32 %v5553_v21, %v5697_v7  ;;  %v2660_v34 = vpop.eup %2659  ;;  %v2034_v55 = vmul.f32 0.6931472, %v2658_v28 }
 0x250   :  { %v2079_v36 = vsel %vm2063_vm6, %v2047_v60, %v7136_v20  ;;  %v2091_v56 = vadd.f32 %v2078_v59, %v2077_v31  ;;  %v2097_v51 = vadd.f32 %v2090_v40, %v2089_v1  ;;  %v2051_v43 = vsub.f32 0.0, %v2030_v48  ;;  %v2662_v32 = vpop.eup %2661 }
 0x251   :  { %v2080_v18 = vsel %vm2064_vm7, %v2048_v19, %v7137_v10  ;;  %v7138_v44 = vsub.f32 %v5561_v61, %v5702_v24  ;;  %v2036_v12 = vmul.f32 0.6931472, %v2660_v34  ;;  %v2052_v53 = vsub.f32 0.0, %v2032_v3 }
 0x252   :  { %v2092_v50 = vadd.f32 %v2080_v18, %v2079_v36  ;;  %v7139_v21 = vsub.f32 %v5563_v17, %v5706_v23  ;;  %v2098_v6 = vadd.f32 %v2097_v51, %v2091_v56  ;;  %v2664_v39 = vpop.eup %2663  ;;  %v2038_v9 = vmul.f32 0.6931472, %v2662_v32 }
 0x253   :  { %v2081_v2 = vsel %vm2065_vm8, %v2049_v0, %v7138_v44  ;;  %v2053_v37 = vsub.f32 0.0, %v2034_v55  ;;  %v7140_v61 = vsub.f32 %v5565_v22, %v5710_v41  ;;  %v2040_v29 = vmul.f32 0.6931472, %v2664_v39 }
 0x254   :  { %v2082_v7 = vsel %vm2066_vm9, %v2050_v4, %v7139_v21  ;;  %v2054_v33 = vsub.f32 0.0, %v2036_v12  ;;  %v7141_v14 = vsub.f32 %v5567_v63, %v5714_v26  ;;  %v2099_v23 = vadd.f32 %v2098_v6, %v2092_v50 }
 0x255   :  { %v2083_v24 = vsel %vm2067_vm10, %v2051_v43, %v7140_v61  ;;  %v2093_v58 = vadd.f32 %v2082_v7, %v2081_v2  ;;  %v2055_v13 = vsub.f32 0.0, %v2038_v9  ;;  %vm2072_vm15 = vcmp.le.f32.partialorder %v7142_v8, 1e-08 }
 0x256   :  { %v2084_v17 = vsel %vm2068_vm11, %v2052_v53, %v7141_v14  ;;  %v7143_v60 = vsub.f32 %v5575_v47, %v5718_v45  ;;  %v2056_v62 = vsub.f32 0.0, %v2040_v29  ;;  %v7144_v30 = vsub.f32 %v5577_v5, %v5722_v49 }
 0x257   :  { %v2094_v41 = vadd.f32 %v2084_v17, %v2083_v24  ;;  %v2100_v26 = vadd.f32 %v2099_v23, %v2093_v58  ;;  %v7145_v16 = vsub.f32 %v5587_v27, %v5726_v38  ;;  %v7146_v47 = vsub.f32 %v7094_v11, %v5734_v52 }
 0x258   :  { %v2085_v22 = vsel %vm2069_vm12, %v2053_v37, %v7143_v60  ;;  %v2086_v63 = vsel %vm2070_vm13, %v2054_v33, %v7144_v30 }
 0x259   :  { %v2087_v31 = vsel %vm2071_vm14, %v2055_v13, %v7145_v16  ;;  %v2095_v1 = vadd.f32 %v2086_v63, %v2085_v22  ;;  %v2088_v45 = vsel %vm2072_vm15, %v2056_v62, %v7146_v47  ;;  %v2101_v15 = vadd.f32 %v2100_v26, %v2094_v41 }
 0x25a   :  { %v2096_v57 = vadd.f32 %v2088_v45, %v2087_v31 }
 0x25b   :  { %v2102_v35 = vadd.f32 %v2101_v15, %v2095_v1 }
 0x25d   :  { %v2103_v5 = vadd.f32 %v2102_v35, %v2096_v57 }
 0x25f   :  { %2111 = vst [vmem:[#allocation10] sm:$0xff] %v2103_v5 }
 0x260   :  { %2828 = shalt.err (!%p2825_p8)
}
 0x261   :  { %s2829_s13 = scalar_lea.hbm %s5900_s4, 128 }
 0x262   :  { %p2830_p9 = scmp.ne.s32.totalorder %s5900_s4, %s2829_s13  ;;  %p2833_p10 = scmp.lt.u32.totalorder %s2829_s13, %s5900_s4 }
 0x264   :  { %p2835_p11 = pnand %p2833_p10, %p2830_p9 }
 0x266   :  { %2838 = shalt.err (!%p2835_p11)
}
 0x267   :  { %2121 = dma.vmem_to_hbm [thread:$0]  %s2119_s27, 128, %s5900_s4, [#allocation4]  }
 0x268   :  { %2845 = dma.done.wait [#allocation4], 128  }
 0x269   :  { %2846 = vsyncadd [#allocation4], 4294967168 }
 0x26a   :  { %2125 = vsyncpa [#allocation3], 1 }
 0x26b   :  { %2126 = vsyncpa [#allocation6], 1 }
 0x26c   :  { %2127 = vsyncpa [#allocation9], 1 }
 0x26d   :  { %2128 = vsyncpa [#allocation4], 1 }

</bundles_post_ra>
